<compile_context>
chip_gen: v7x
topology: tpu7x:2x2x1
jax: 0.10.0
libtpu: 0.0.40
codegen_flags: <defaults>
</compile_context>

<pallas_src>
import jax
import jax.numpy as jnp
from jax.experimental import pallas as pl
from jax.experimental.pallas import tpu as pltpu

# ----- `param` module constants (hyperparameters, not learnable) -------------
EPS = 1e-6          # param.eps
DT = 1e-2           # param.dt
DX = 1.0            # param.dx
DY = 1.0            # param.dy
N_PARAM = 1.0       # param.N
FLUCT_NORM = 1e4    # param.fluct_norm (unused: reference zeroes ksai1/2/3)

INV_DX2 = 1.0 / (DX * DX)
INV_DY2 = 1.0 / (DY * DY)


def _laplacian(c):
    """Periodic-BC 5-point Laplacian (LaplacianOp: circular pad + 3x3 conv)."""
    H, W = c.shape
    # pltpu.roll requires non-negative shifts; roll by (dim-1) == roll by -1.
    x_m = pltpu.roll(c, 1, axis=1)      # neighbor at x-1 (periodic)
    x_p = pltpu.roll(c, W - 1, axis=1)  # neighbor at x+1 (periodic)
    y_m = pltpu.roll(c, 1, axis=0)      # neighbor at y-1 (periodic)
    y_p = pltpu.roll(c, H - 1, axis=0)  # neighbor at y+1 (periodic)
    if DX == 1.0 and DY == 1.0:
        # No divides: fold the 1/dx^2 scaling away entirely.
        return x_m + x_p + y_m + y_p - 4.0 * c
    return (x_m + x_p - 2.0 * c) * INV_DX2 + (y_m + y_p - 2.0 * c) * INV_DY2


def _log_with_mask(x, eps=EPS):
    # torch: masked_fill(x < eps, eps) then log  ==  log(max(x, eps))
    return jnp.log(jnp.maximum(x, eps))


def irradiation_kernel(params_ref,                       # SMEM: (14,) f32 scalars
                       cv_ref, ci_ref, eta_ref,          # VMEM: (H, W) fields
                       r1_ref, r2_ref,                   # VMEM: (H, W) uniforms
                       cv_out, ci_out, eta_out):         # VMEM: (H, W) outputs
    energy_v = params_ref[0]
    energy_i = params_ref[1]
    kBT = params_ref[2]
    kappa_v = params_ref[3]
    kappa_i = params_ref[4]
    kappa_eta = params_ref[5]
    r_bulk = params_ref[6]
    r_surf = params_ref[7]
    p_casc = params_ref[8]
    bias = params_ref[9]
    vg = params_ref[10]
    diff_v = params_ref[11]
    diff_i = params_ref[12]
    L = params_ref[13]

    # Scalar-unit work (idle slots): hoist the division by kBT once.
    inv_kBT = 1.0 / kBT
    mv_coef = diff_v * inv_kBT          # mv = mv_coef * cv
    mi_coef = diff_i * inv_kBT          # mi = mi_coef * ci

    cv = cv_ref[...]
    ci = ci_ref[...]
    eta = eta_ref[...]

    # ---- shared elementwise terms (computed once, reused by all branches) ---
    eta_m1 = eta - 1.0
    eta_sq = eta * eta
    h = eta_m1 * eta_m1                 # (eta - 1)^2
    j = eta_sq                          # eta^2

    cv_m1 = cv - 1.0
    cva = 1.0 - cv - ci
    log_cv = _log_with_mask(cv)
    log_ci = _log_with_mask(ci)
    log_cva = _log_with_mask(cva)
    fs_mask = cva < EPS

    fs = energy_v * cv + energy_i * ci + kBT * (
        cv * log_cv + ci * log_ci + cva * log_cva)
    fs = jnp.where(fs_mask, 0.0, fs)
    dfs_dcv = jnp.where(fs_mask, 0.0, energy_v + kBT * (log_cv - log_cva))
    dfs_dci = jnp.where(fs_mask, 0.0, energy_i + kBT * (log_ci - log_cva))

    fv = cv_m1 * cv_m1 + ci * ci

    R_iv = (r_bulk + eta_sq * r_surf) * cv * ci

    # source_term(eta, p_casc, vg): zero where (eta >= 0.8) | (R1 > p_casc)
    src_mask = (eta >= 0.8) | (r1_ref[...] > p_casc)
    src = jnp.where(src_mask, 0.0, r2_ref[...] * vg)
    Pv = bias * src
    Pi = (1.0 - bias) * src
    Pvi = Pv - Pi

    # ksai1 = ksai2 = ksai3 = 0.0 in the reference (noiseless); SvGB = SiGB = 0

    # ---- cv branch: finish end-to-end to keep the live vreg set small -------
    dF_dcv = h * dfs_dcv + j * (2.0 * cv_m1) - kappa_v * _laplacian(cv)
    cv_new = cv + DT * ((mv_coef * cv) * _laplacian(dF_dcv) + Pv - R_iv)
    cv_out[...] = jnp.clip(cv_new, 0.0, 1.0)

    # ---- ci branch -----------------------------------------------------------
    dF_dci = h * dfs_dci + j * (2.0 * ci) - kappa_i * _laplacian(ci)
    ci_new = ci + DT * ((mi_coef * ci) * _laplacian(dF_dci) + Pi - R_iv)
    ci_out[...] = jnp.clip(ci_new, 0.0, 1.0)

    # ---- eta branch (single Laplacian, pure VPU otherwise) ------------------
    dF_deta = N_PARAM * (fs * (2.0 * eta_m1) + fv * (2.0 * eta)
                         - kappa_eta * _laplacian(eta))
    eta_new = eta + DT * (-L * dF_deta + Pvi)
    eta_out[...] = jnp.clip(eta_new, 0.0, 1.0)


def irradiation_step(params, cv, ci, eta, r1, r2):
    H, W = cv.shape
    vmem_spec = pl.BlockSpec(memory_space=pltpu.MemorySpace.VMEM)
    out_sds = jax.ShapeDtypeStruct((H, W), cv.dtype)
    return pl.pallas_call(
        irradiation_kernel,
        out_shape=(out_sds, out_sds, out_sds),
        # No grid: single invocation, whole arrays resident in VMEM,
        # no double-buffered pipeline buffers.
        in_specs=[
            pl.BlockSpec(memory_space=pltpu.MemorySpace.SMEM),  # scalar params
            vmem_spec, vmem_spec, vmem_spec,                    # cv, ci, eta
            vmem_spec, vmem_spec,                               # R1, R2
        ],
        out_specs=(vmem_spec, vmem_spec, vmem_spec),
        # Update cv/ci/eta in place (inputs 1,2,3 -> outputs 0,1,2).
        input_output_aliases={1: 0, 2: 1, 3: 2},
    )(params, cv, ci, eta, r1, r2)


def init_module_params(key):
    """Deterministic equivalent of IrradiationSingleTimestep.__init__, with the
    forward pass's abs()+0.001 already applied (plain-JAX glue)."""
    ks = jax.random.split(key, 9)
    energy_v0 = jax.random.normal(ks[0], (1,)) * 5 + 0.1
    energy_i0 = jax.random.normal(ks[1], (1,)) * 5 + 0.1
    kBT0 = jax.random.normal(ks[2], (1,)) * 5 + 0.1
    kappa_v0 = jax.random.normal(ks[3], (1,)) / 2.0 + 0.1
    kappa_i0 = jax.random.normal(ks[4], (1,)) / 2.0 + 0.1
    kappa_eta0 = jax.random.normal(ks[5], (1,)) / 2.0 + 0.1
    r_bulk0 = jnp.array([5.0 - 0.001])
    r_surf0 = jnp.array([10.0 - 0.001])
    p_casc0 = jnp.array([0.01 - 0.001])
    bias0 = jnp.array([0.3 - 0.001])
    vg0 = jnp.array([0.01 - 0.001])
    diff_v0 = jax.random.normal(ks[6], (1,)) / 2.0 + 0.1
    diff_i0 = jax.random.normal(ks[7], (1,)) / 2.0 + 0.1
    L0 = jax.random.normal(ks[8], (1,)) / 2.0 + 0.1
    raw = jnp.concatenate([
        energy_v0, energy_i0, kBT0, kappa_v0, kappa_i0, kappa_eta0,
        r_bulk0, r_surf0, p_casc0, bias0, vg0, diff_v0, diff_i0, L0])
    return (jnp.abs(raw) + 0.001).astype(jnp.float32)


if __name__ == "__main__":
    key = jax.random.PRNGKey(0)
    k_par, k_cv, k_ci, k_eta, k_r1, k_r2 = jax.random.split(key, 6)

    params = init_module_params(k_par)  # (14,) f32

    H, W = 64, 128
    cv = jax.random.uniform(k_cv, (H, W), jnp.float32, 0.02, 0.2)
    ci = jax.random.uniform(k_ci, (H, W), jnp.float32, 0.02, 0.2)
    eta = jax.random.uniform(k_eta, (H, W), jnp.float32, 0.0, 1.0)
    # torch.rand_like draws inside source_term, supplied as explicit inputs here
    R1 = jax.random.uniform(k_r1, (H, W), jnp.float32)
    R2 = jax.random.uniform(k_r2, (H, W), jnp.float32)

    cv_new, ci_new, eta_new = irradiation_step(params, cv, ci, eta, R1, R2)
    jax.block_until_ready((cv_new, ci_new, eta_new))

    assert cv_new.shape == (H, W) and ci_new.shape == (H, W) and eta_new.shape == (H, W)
    assert bool(jnp.all(jnp.isfinite(cv_new)))
    assert bool(jnp.all((cv_new >= 0.0) & (cv_new <= 1.0)))
    assert bool(jnp.all((ci_new >= 0.0) & (ci_new <= 1.0)))
    assert bool(jnp.all((eta_new >= 0.0) & (eta_new <= 1.0)))
    # TODO(synk): exact torch RNG streams (rand_like in source_term) are not
    # reproducible in JAX; randomness is passed in as R1/R2 inputs instead.
    # TODO(synk): multi-timestep fusion (lax.fori_loop + in-kernel PRNG) would
    # amortize HBM traffic but changes the single-timestep module interface.
    print("KERNEL_OK")
</pallas_src>

<mosaic_0001>
module attributes {stable_mosaic.version = 11 : i64} {
  func.func @irradiation_kernel(%arg0: memref<14xf32, #tpu.memory_space<smem>>, %arg1: memref<64x128xf32, #tpu.memory_space<vmem>>, %arg2: memref<64x128xf32, #tpu.memory_space<vmem>>, %arg3: memref<64x128xf32, #tpu.memory_space<vmem>>, %arg4: memref<64x128xf32, #tpu.memory_space<vmem>>, %arg5: memref<64x128xf32, #tpu.memory_space<vmem>>, %arg6: memref<64x128xf32, #tpu.memory_space<vmem>>, %arg7: memref<64x128xf32, #tpu.memory_space<vmem>>, %arg8: memref<64x128xf32, #tpu.memory_space<vmem>>) attributes {dimension_semantics = [], scalar_prefetch = 0 : i64, scratch_operands = 0 : i64, tpu.core_type = #tpu.core_type<tc>} {
    %c0 = arith.constant 0 : index
    %0 = memref.load %arg0[%c0] : memref<14xf32, #tpu.memory_space<smem>>
    %c1 = arith.constant 1 : index
    %1 = memref.load %arg0[%c1] : memref<14xf32, #tpu.memory_space<smem>>
    %c2 = arith.constant 2 : index
    %2 = memref.load %arg0[%c2] : memref<14xf32, #tpu.memory_space<smem>>
    %c3 = arith.constant 3 : index
    %3 = memref.load %arg0[%c3] : memref<14xf32, #tpu.memory_space<smem>>
    %c4 = arith.constant 4 : index
    %4 = memref.load %arg0[%c4] : memref<14xf32, #tpu.memory_space<smem>>
    %c5 = arith.constant 5 : index
    %5 = memref.load %arg0[%c5] : memref<14xf32, #tpu.memory_space<smem>>
    %c6 = arith.constant 6 : index
    %6 = memref.load %arg0[%c6] : memref<14xf32, #tpu.memory_space<smem>>
    %c7 = arith.constant 7 : index
    %7 = memref.load %arg0[%c7] : memref<14xf32, #tpu.memory_space<smem>>
    %c8 = arith.constant 8 : index
    %8 = memref.load %arg0[%c8] : memref<14xf32, #tpu.memory_space<smem>>
    %c9 = arith.constant 9 : index
    %9 = memref.load %arg0[%c9] : memref<14xf32, #tpu.memory_space<smem>>
    %c10 = arith.constant 10 : index
    %10 = memref.load %arg0[%c10] : memref<14xf32, #tpu.memory_space<smem>>
    %c11 = arith.constant 11 : index
    %11 = memref.load %arg0[%c11] : memref<14xf32, #tpu.memory_space<smem>>
    %c12 = arith.constant 12 : index
    %12 = memref.load %arg0[%c12] : memref<14xf32, #tpu.memory_space<smem>>
    %c13 = arith.constant 13 : index
    %13 = memref.load %arg0[%c13] : memref<14xf32, #tpu.memory_space<smem>>
    %cst = arith.constant 1.000000e+00 : f32
    %14 = arith.divf %cst, %2 : f32
    %15 = arith.mulf %11, %14 : f32
    %16 = arith.mulf %12, %14 : f32
    %c0_0 = arith.constant 0 : index
    %c0_1 = arith.constant 0 : index
    %17 = vector.load %arg1[%c0_0, %c0_1] : memref<64x128xf32, #tpu.memory_space<vmem>>, vector<64x128xf32>
    %c0_2 = arith.constant 0 : index
    %c0_3 = arith.constant 0 : index
    %18 = vector.load %arg2[%c0_2, %c0_3] : memref<64x128xf32, #tpu.memory_space<vmem>>, vector<64x128xf32>
    %c0_4 = arith.constant 0 : index
    %c0_5 = arith.constant 0 : index
    %19 = vector.load %arg3[%c0_4, %c0_5] : memref<64x128xf32, #tpu.memory_space<vmem>>, vector<64x128xf32>
    %cst_6 = arith.constant 1.000000e+00 : f32
    %20 = vector.broadcast %cst_6 : f32 to vector<64x128xf32>
    %21 = arith.subf %19, %20 : vector<64x128xf32>
    %22 = arith.mulf %19, %19 : vector<64x128xf32>
    %23 = arith.mulf %21, %21 : vector<64x128xf32>
    %cst_7 = arith.constant 1.000000e+00 : f32
    %24 = vector.broadcast %cst_7 : f32 to vector<64x128xf32>
    %25 = arith.subf %17, %24 : vector<64x128xf32>
    %cst_8 = arith.constant 1.000000e+00 : f32
    %26 = vector.broadcast %cst_8 : f32 to vector<64x128xf32>
    %27 = arith.subf %26, %17 : vector<64x128xf32>
    %28 = arith.subf %27, %18 : vector<64x128xf32>
    %cst_9 = arith.constant 9.99999997E-7 : f32
    %29 = vector.broadcast %cst_9 : f32 to vector<64x128xf32>
    %30 = arith.maximumf %17, %29 : vector<64x128xf32>
    %31 = math.log %30 : vector<64x128xf32>
    %cst_10 = arith.constant 9.99999997E-7 : f32
    %32 = vector.broadcast %cst_10 : f32 to vector<64x128xf32>
    %33 = arith.maximumf %18, %32 : vector<64x128xf32>
    %34 = math.log %33 : vector<64x128xf32>
    %cst_11 = arith.constant 9.99999997E-7 : f32
    %35 = vector.broadcast %cst_11 : f32 to vector<64x128xf32>
    %36 = arith.maximumf %28, %35 : vector<64x128xf32>
    %37 = math.log %36 : vector<64x128xf32>
    %cst_12 = arith.constant 9.99999997E-7 : f32
    %38 = vector.broadcast %cst_12 : f32 to vector<64x128xf32>
    %39 = arith.cmpf olt, %28, %38 : vector<64x128xf32>
    %40 = vector.broadcast %0 : f32 to vector<64x128xf32>
    %41 = arith.mulf %40, %17 : vector<64x128xf32>
    %42 = vector.broadcast %1 : f32 to vector<64x128xf32>
    %43 = arith.mulf %42, %18 : vector<64x128xf32>
    %44 = arith.addf %41, %43 : vector<64x128xf32>
    %45 = arith.mulf %17, %31 : vector<64x128xf32>
    %46 = arith.mulf %18, %34 : vector<64x128xf32>
    %47 = arith.addf %45, %46 : vector<64x128xf32>
    %48 = arith.mulf %28, %37 : vector<64x128xf32>
    %49 = arith.addf %47, %48 : vector<64x128xf32>
    %50 = vector.broadcast %2 : f32 to vector<64x128xf32>
    %51 = arith.mulf %50, %49 : vector<64x128xf32>
    %52 = arith.addf %44, %51 : vector<64x128xf32>
    %cst_13 = arith.constant 0.000000e+00 : f32
    %53 = vector.broadcast %cst_13 : f32 to vector<64x128xf32>
    %54 = arith.select %39, %53, %52 : vector<64x128xi1>, vector<64x128xf32>
    %55 = arith.subf %31, %37 : vector<64x128xf32>
    %56 = vector.broadcast %2 : f32 to vector<64x128xf32>
    %57 = arith.mulf %56, %55 : vector<64x128xf32>
    %58 = vector.broadcast %0 : f32 to vector<64x128xf32>
    %59 = arith.addf %58, %57 : vector<64x128xf32>
    %cst_14 = arith.constant 0.000000e+00 : f32
    %60 = vector.broadcast %cst_14 : f32 to vector<64x128xf32>
    %61 = arith.select %39, %60, %59 : vector<64x128xi1>, vector<64x128xf32>
    %62 = arith.subf %34, %37 : vector<64x128xf32>
    %63 = vector.broadcast %2 : f32 to vector<64x128xf32>
    %64 = arith.mulf %63, %62 : vector<64x128xf32>
    %65 = vector.broadcast %1 : f32 to vector<64x128xf32>
    %66 = arith.addf %65, %64 : vector<64x128xf32>
    %cst_15 = arith.constant 0.000000e+00 : f32
    %67 = vector.broadcast %cst_15 : f32 to vector<64x128xf32>
    %68 = arith.select %39, %67, %66 : vector<64x128xi1>, vector<64x128xf32>
    %69 = arith.mulf %25, %25 : vector<64x128xf32>
    %70 = arith.mulf %18, %18 : vector<64x128xf32>
    %71 = arith.addf %69, %70 : vector<64x128xf32>
    %72 = vector.broadcast %7 : f32 to vector<64x128xf32>
    %73 = arith.mulf %22, %72 : vector<64x128xf32>
    %74 = vector.broadcast %6 : f32 to vector<64x128xf32>
    %75 = arith.addf %74, %73 : vector<64x128xf32>
    %76 = arith.mulf %75, %17 : vector<64x128xf32>
    %77 = arith.mulf %76, %18 : vector<64x128xf32>
    %cst_16 = arith.constant 8.000000e-01 : f32
    %78 = vector.broadcast %cst_16 : f32 to vector<64x128xf32>
    %79 = arith.cmpf oge, %19, %78 : vector<64x128xf32>
    %c0_17 = arith.constant 0 : index
    %c0_18 = arith.constant 0 : index
    %80 = vector.load %arg4[%c0_17, %c0_18] : memref<64x128xf32, #tpu.memory_space<vmem>>, vector<64x128xf32>
    %81 = vector.broadcast %8 : f32 to vector<64x128xf32>
    %82 = arith.cmpf ogt, %80, %81 : vector<64x128xf32>
    %83 = arith.ori %79, %82 : vector<64x128xi1>
    %c0_19 = arith.constant 0 : index
    %c0_20 = arith.constant 0 : index
    %84 = vector.load %arg5[%c0_19, %c0_20] : memref<64x128xf32, #tpu.memory_space<vmem>>, vector<64x128xf32>
    %85 = vector.broadcast %10 : f32 to vector<64x128xf32>
    %86 = arith.mulf %84, %85 : vector<64x128xf32>
    %cst_21 = arith.constant 0.000000e+00 : f32
    %87 = vector.broadcast %cst_21 : f32 to vector<64x128xf32>
    %88 = arith.select %83, %87, %86 : vector<64x128xi1>, vector<64x128xf32>
    %89 = vector.broadcast %9 : f32 to vector<64x128xf32>
    %90 = arith.mulf %89, %88 : vector<64x128xf32>
    %cst_22 = arith.constant 1.000000e+00 : f32
    %91 = arith.subf %cst_22, %9 : f32
    %92 = vector.broadcast %91 : f32 to vector<64x128xf32>
    %93 = arith.mulf %92, %88 : vector<64x128xf32>
    %94 = arith.subf %90, %93 : vector<64x128xf32>
    %95 = arith.mulf %23, %61 : vector<64x128xf32>
    %cst_23 = arith.constant 2.000000e+00 : f32
    %96 = vector.broadcast %cst_23 : f32 to vector<64x128xf32>
    %97 = arith.mulf %96, %25 : vector<64x128xf32>
    %98 = arith.mulf %22, %97 : vector<64x128xf32>
    %99 = arith.addf %95, %98 : vector<64x128xf32>
    %c1_i32 = arith.constant 1 : i32
    %100 = tpu.dynamic_rotate %17 by %c1_i32 dim 1 : vector<64x128xf32>, i32 -> vector<64x128xf32>
    %c127_i32 = arith.constant 127 : i32
    %101 = tpu.dynamic_rotate %17 by %c127_i32 dim 1 : vector<64x128xf32>, i32 -> vector<64x128xf32>
    %c1_i32_24 = arith.constant 1 : i32
    %102 = tpu.dynamic_rotate %17 by %c1_i32_24 dim 0 : vector<64x128xf32>, i32 -> vector<64x128xf32>
    %c63_i32 = arith.constant 63 : i32
    %103 = tpu.dynamic_rotate %17 by %c63_i32 dim 0 : vector<64x128xf32>, i32 -> vector<64x128xf32>
    %104 = arith.addf %100, %101 : vector<64x128xf32>
    %105 = arith.addf %104, %102 : vector<64x128xf32>
    %106 = arith.addf %105, %103 : vector<64x128xf32>
    %cst_25 = arith.constant 4.000000e+00 : f32
    %107 = vector.broadcast %cst_25 : f32 to vector<64x128xf32>
    %108 = arith.mulf %107, %17 : vector<64x128xf32>
    %109 = arith.subf %106, %108 : vector<64x128xf32>
    %110 = vector.broadcast %3 : f32 to vector<64x128xf32>
    %111 = arith.mulf %110, %109 : vector<64x128xf32>
    %112 = arith.subf %99, %111 : vector<64x128xf32>
    %113 = vector.broadcast %15 : f32 to vector<64x128xf32>
    %114 = arith.mulf %113, %17 : vector<64x128xf32>
    %c1_i32_26 = arith.constant 1 : i32
    %115 = tpu.dynamic_rotate %112 by %c1_i32_26 dim 1 : vector<64x128xf32>, i32 -> vector<64x128xf32>
    %c127_i32_27 = arith.constant 127 : i32
    %116 = tpu.dynamic_rotate %112 by %c127_i32_27 dim 1 : vector<64x128xf32>, i32 -> vector<64x128xf32>
    %c1_i32_28 = arith.constant 1 : i32
    %117 = tpu.dynamic_rotate %112 by %c1_i32_28 dim 0 : vector<64x128xf32>, i32 -> vector<64x128xf32>
    %c63_i32_29 = arith.constant 63 : i32
    %118 = tpu.dynamic_rotate %112 by %c63_i32_29 dim 0 : vector<64x128xf32>, i32 -> vector<64x128xf32>
    %119 = arith.addf %115, %116 : vector<64x128xf32>
    %120 = arith.addf %119, %117 : vector<64x128xf32>
    %121 = arith.addf %120, %118 : vector<64x128xf32>
    %cst_30 = arith.constant 4.000000e+00 : f32
    %122 = vector.broadcast %cst_30 : f32 to vector<64x128xf32>
    %123 = arith.mulf %122, %112 : vector<64x128xf32>
    %124 = arith.subf %121, %123 : vector<64x128xf32>
    %125 = arith.mulf %114, %124 : vector<64x128xf32>
    %126 = arith.addf %125, %90 : vector<64x128xf32>
    %127 = arith.subf %126, %77 : vector<64x128xf32>
    %cst_31 = arith.constant 0.00999999977 : f32
    %128 = vector.broadcast %cst_31 : f32 to vector<64x128xf32>
    %129 = arith.mulf %128, %127 : vector<64x128xf32>
    %130 = arith.addf %17, %129 : vector<64x128xf32>
    %cst_32 = arith.constant 0.000000e+00 : f32
    %cst_33 = arith.constant 1.000000e+00 : f32
    %131 = vector.broadcast %cst_32 : f32 to vector<64x128xf32>
    %132 = arith.maximumf %131, %130 : vector<64x128xf32>
    %133 = vector.broadcast %cst_33 : f32 to vector<64x128xf32>
    %134 = arith.minimumf %133, %132 : vector<64x128xf32>
    %c0_34 = arith.constant 0 : index
    %c0_35 = arith.constant 0 : index
    %135 = vector.load %arg6[%c0_34, %c0_35] : memref<64x128xf32, #tpu.memory_space<vmem>>, vector<64x128xf32>
    tpu.vector_store %arg6[%c0_34, %c0_35], %134 {strides = array<i32>} : memref<64x128xf32, #tpu.memory_space<vmem>>, vector<64x128xf32>,
    %136 = arith.mulf %23, %68 : vector<64x128xf32>
    %cst_36 = arith.constant 2.000000e+00 : f32
    %137 = vector.broadcast %cst_36 : f32 to vector<64x128xf32>
    %138 = arith.mulf %137, %18 : vector<64x128xf32>
    %139 = arith.mulf %22, %138 : vector<64x128xf32>
    %140 = arith.addf %136, %139 : vector<64x128xf32>
    %c1_i32_37 = arith.constant 1 : i32
    %141 = tpu.dynamic_rotate %18 by %c1_i32_37 dim 1 : vector<64x128xf32>, i32 -> vector<64x128xf32>
    %c127_i32_38 = arith.constant 127 : i32
    %142 = tpu.dynamic_rotate %18 by %c127_i32_38 dim 1 : vector<64x128xf32>, i32 -> vector<64x128xf32>
    %c1_i32_39 = arith.constant 1 : i32
    %143 = tpu.dynamic_rotate %18 by %c1_i32_39 dim 0 : vector<64x128xf32>, i32 -> vector<64x128xf32>
    %c63_i32_40 = arith.constant 63 : i32
    %144 = tpu.dynamic_rotate %18 by %c63_i32_40 dim 0 : vector<64x128xf32>, i32 -> vector<64x128xf32>
    %145 = arith.addf %141, %142 : vector<64x128xf32>
    %146 = arith.addf %145, %143 : vector<64x128xf32>
    %147 = arith.addf %146, %144 : vector<64x128xf32>
    %cst_41 = arith.constant 4.000000e+00 : f32
    %148 = vector.broadcast %cst_41 : f32 to vector<64x128xf32>
    %149 = arith.mulf %148, %18 : vector<64x128xf32>
    %150 = arith.subf %147, %149 : vector<64x128xf32>
    %151 = vector.broadcast %4 : f32 to vector<64x128xf32>
    %152 = arith.mulf %151, %150 : vector<64x128xf32>
    %153 = arith.subf %140, %152 : vector<64x128xf32>
    %154 = vector.broadcast %16 : f32 to vector<64x128xf32>
    %155 = arith.mulf %154, %18 : vector<64x128xf32>
    %c1_i32_42 = arith.constant 1 : i32
    %156 = tpu.dynamic_rotate %153 by %c1_i32_42 dim 1 : vector<64x128xf32>, i32 -> vector<64x128xf32>
    %c127_i32_43 = arith.constant 127 : i32
    %157 = tpu.dynamic_rotate %153 by %c127_i32_43 dim 1 : vector<64x128xf32>, i32 -> vector<64x128xf32>
    %c1_i32_44 = arith.constant 1 : i32
    %158 = tpu.dynamic_rotate %153 by %c1_i32_44 dim 0 : vector<64x128xf32>, i32 -> vector<64x128xf32>
    %c63_i32_45 = arith.constant 63 : i32
    %159 = tpu.dynamic_rotate %153 by %c63_i32_45 dim 0 : vector<64x128xf32>, i32 -> vector<64x128xf32>
    %160 = arith.addf %156, %157 : vector<64x128xf32>
    %161 = arith.addf %160, %158 : vector<64x128xf32>
    %162 = arith.addf %161, %159 : vector<64x128xf32>
    %cst_46 = arith.constant 4.000000e+00 : f32
    %163 = vector.broadcast %cst_46 : f32 to vector<64x128xf32>
    %164 = arith.mulf %163, %153 : vector<64x128xf32>
    %165 = arith.subf %162, %164 : vector<64x128xf32>
    %166 = arith.mulf %155, %165 : vector<64x128xf32>
    %167 = arith.addf %166, %93 : vector<64x128xf32>
    %168 = arith.subf %167, %77 : vector<64x128xf32>
    %cst_47 = arith.constant 0.00999999977 : f32
    %169 = vector.broadcast %cst_47 : f32 to vector<64x128xf32>
    %170 = arith.mulf %169, %168 : vector<64x128xf32>
    %171 = arith.addf %18, %170 : vector<64x128xf32>
    %cst_48 = arith.constant 0.000000e+00 : f32
    %cst_49 = arith.constant 1.000000e+00 : f32
    %172 = vector.broadcast %cst_48 : f32 to vector<64x128xf32>
    %173 = arith.maximumf %172, %171 : vector<64x128xf32>
    %174 = vector.broadcast %cst_49 : f32 to vector<64x128xf32>
    %175 = arith.minimumf %174, %173 : vector<64x128xf32>
    %c0_50 = arith.constant 0 : index
    %c0_51 = arith.constant 0 : index
    %176 = vector.load %arg7[%c0_50, %c0_51] : memref<64x128xf32, #tpu.memory_space<vmem>>, vector<64x128xf32>
    tpu.vector_store %arg7[%c0_50, %c0_51], %175 {strides = array<i32>} : memref<64x128xf32, #tpu.memory_space<vmem>>, vector<64x128xf32>,
    %cst_52 = arith.constant 2.000000e+00 : f32
    %177 = vector.broadcast %cst_52 : f32 to vector<64x128xf32>
    %178 = arith.mulf %177, %21 : vector<64x128xf32>
    %179 = arith.mulf %54, %178 : vector<64x128xf32>
    %cst_53 = arith.constant 2.000000e+00 : f32
    %180 = vector.broadcast %cst_53 : f32 to vector<64x128xf32>
    %181 = arith.mulf %180, %19 : vector<64x128xf32>
    %182 = arith.mulf %71, %181 : vector<64x128xf32>
    %183 = arith.addf %179, %182 : vector<64x128xf32>
    %c1_i32_54 = arith.constant 1 : i32
    %184 = tpu.dynamic_rotate %19 by %c1_i32_54 dim 1 : vector<64x128xf32>, i32 -> vector<64x128xf32>
    %c127_i32_55 = arith.constant 127 : i32
    %185 = tpu.dynamic_rotate %19 by %c127_i32_55 dim 1 : vector<64x128xf32>, i32 -> vector<64x128xf32>
    %c1_i32_56 = arith.constant 1 : i32
    %186 = tpu.dynamic_rotate %19 by %c1_i32_56 dim 0 : vector<64x128xf32>, i32 -> vector<64x128xf32>
    %c63_i32_57 = arith.constant 63 : i32
    %187 = tpu.dynamic_rotate %19 by %c63_i32_57 dim 0 : vector<64x128xf32>, i32 -> vector<64x128xf32>
    %188 = arith.addf %184, %185 : vector<64x128xf32>
    %189 = arith.addf %188, %186 : vector<64x128xf32>
    %190 = arith.addf %189, %187 : vector<64x128xf32>
    %cst_58 = arith.constant 4.000000e+00 : f32
    %191 = vector.broadcast %cst_58 : f32 to vector<64x128xf32>
    %192 = arith.mulf %191, %19 : vector<64x128xf32>
    %193 = arith.subf %190, %192 : vector<64x128xf32>
    %194 = vector.broadcast %5 : f32 to vector<64x128xf32>
    %195 = arith.mulf %194, %193 : vector<64x128xf32>
    %196 = arith.subf %183, %195 : vector<64x128xf32>
    %cst_59 = arith.constant 1.000000e+00 : f32
    %197 = vector.broadcast %cst_59 : f32 to vector<64x128xf32>
    %198 = arith.mulf %197, %196 : vector<64x128xf32>
    %cst_60 = arith.constant 0.000000e+00 : f32
    %199 = arith.subf %cst_60, %13 : f32
    %200 = vector.broadcast %199 : f32 to vector<64x128xf32>
    %201 = arith.mulf %200, %198 : vector<64x128xf32>
    %202 = arith.addf %201, %94 : vector<64x128xf32>
    %cst_61 = arith.constant 0.00999999977 : f32
    %203 = vector.broadcast %cst_61 : f32 to vector<64x128xf32>
    %204 = arith.mulf %203, %202 : vector<64x128xf32>
    %205 = arith.addf %19, %204 : vector<64x128xf32>
    %cst_62 = arith.constant 0.000000e+00 : f32
    %cst_63 = arith.constant 1.000000e+00 : f32
    %206 = vector.broadcast %cst_62 : f32 to vector<64x128xf32>
    %207 = arith.maximumf %206, %205 : vector<64x128xf32>
    %208 = vector.broadcast %cst_63 : f32 to vector<64x128xf32>
    %209 = arith.minimumf %208, %207 : vector<64x128xf32>
    %c0_64 = arith.constant 0 : index
    %c0_65 = arith.constant 0 : index
    %210 = vector.load %arg8[%c0_64, %c0_65] : memref<64x128xf32, #tpu.memory_space<vmem>>, vector<64x128xf32>
    tpu.vector_store %arg8[%c0_64, %c0_65], %209 {strides = array<i32>} : memref<64x128xf32, #tpu.memory_space<vmem>>, vector<64x128xf32>,
    return
  }
}

</mosaic_0001>

<bundles_post_ra>
// kernel: tpu_custom_call.1
= control target key start
LH: loop header
LB: loop body
LE: loop exit
PB: predicated region body
PF: predicated region fallthrough
CT: control target
= control target key end

     0   :  { %14 = vsyncpa [#allocation5], 0  ;;  %s4225_s0 = inlined_call_operand.vmem [shape: f32[14], index: 0, kind: input, shape index: {}]   ;;  %s4226_s1 = inlined_call_operand.hbm [shape: f32[64,128], index: 1, kind: input, shape index: {}, may-alias: {1,6}]   ;;  %s4227_s2 = inlined_call_operand.hbm [shape: f32[64,128], index: 2, kind: input, shape index: {}, may-alias: {2,7}]   ;;  %s4228_s3 = inlined_call_operand.hbm [shape: f32[64,128], index: 3, kind: input, shape index: {}, may-alias: {3,8}]   ;;  %s4229_s4 = inlined_call_operand.vmem [shape: f32[64,128], index: 4, kind: input, shape index: {}]   ;;  %s4230_s5 = inlined_call_operand.vmem [shape: f32[64,128], index: 5, kind: input, shape index: {}]   ;;  %s4231_s6 = inlined_call_operand.hbm [shape: f32[64,128], index: 6, kind: output, shape index: {0}, may-alias: {1,6}]   ;;  %s4232_s7 = inlined_call_operand.hbm [shape: f32[64,128], index: 7, kind: output, shape index: {1}, may-alias: {2,7}]   ;;  %s4233_s8 = inlined_call_operand.hbm [shape: f32[64,128], index: 8, kind: output, shape index: {2}, may-alias: {3,8}]  }
   0x1   :  { %15 = vsyncpa [#allocation3], 0 }
   0x2   :  { %16 = vsyncpa [#allocation8], 0 }
   0x3   :  { %17 = vsyncpa [#allocation4], 0 }
   0x4   :  { %18 = vsyncpa [#allocation12], 0  ;;  %s25_s29 = sshll.u32 %s4225_s0, 4  ;;  %s1764_s30 = smov [#allocation7]   ;;  %s26_s29 = int_to_ptr.vmem [resolvable:$true] %s25_s29 }
   0x5   :  { %s46_s9 = sshll.u32 %s1764_s30, 4  ;;  %s1610_s12 = scalar_lea.hbm %s4227_s2, 1024  ;;  %s47_s9 = int_to_ptr.vmem [resolvable:$true] %s46_s9 }
   0x6   :  { %p1611_p0 = scmp.ne.s32.totalorder %s4227_s2, %s1610_s12  ;;  %p1614_p1 = scmp.lt.u32.totalorder %s1610_s12, %s4227_s2 }
   0x8   :  { %p1616_p2 = pnand %p1614_p1, %p1611_p0 }
   0xa   :  { %1619 = shalt.err (!%p1616_p2)
}
   0xb   :  { %s1620_s17 = scalar_lea.vmem %s47_s9, 1024  ;;  %p1625_p4 = scmp.lt.s32.totalorder %s47_s9, %s47_s9 }
   0xc   :  { %p1621_p3 = scmp.ne.s32.totalorder %s47_s9, %s1620_s17  ;;  %p1626_p5 = scmp.lt.s32.totalorder %s1620_s17, %s1620_s17 }
   0xe   :  { %p1627_p6 = por %p1626_p5, %p1625_p4 }
  0x10   :  { %p1628_p7 = pnand %p1627_p6, %p1621_p3 }
  0x12   :  { %1631 = shalt.err (!%p1628_p7)
}
  0x13   :  { %s1765_s0 = smov 128   ;;  %s1766_s18 = smov 8  }
  0x14   :  { %52 = dma.hbm_to_vmem [thread:$0]  %s4227_s2, 1024, %s47_s9, [#allocation8], %s1765_s0, %s1765_s0, %s1766_s18  }
  0x15   :  { %s1632_s21 = scalar_lea.vmem %s26_s29, 16  ;;  %p1637_p9 = scmp.lt.s32.totalorder %s26_s29, %s26_s29 }
  0x16   :  { %p1633_p8 = scmp.ne.s32.totalorder %s26_s29, %s1632_s21  ;;  %p1638_p10 = scmp.lt.s32.totalorder %s1632_s21, %s1632_s21 }
  0x18   :  { %p1639_p11 = por %p1638_p10, %p1637_p9 }
  0x1a   :  { %p1640_p12 = pnand %p1639_p11, %p1633_p8 }
  0x1c   :  { %1643 = shalt.err (!%p1640_p12)
}
  0x1d   :  { %s1767_s22 = smov [#allocation2]   ;;  %s1768_s23 = smov [#allocation6]  }
  0x1e   :  { %28 = dma.vmem_to_smem %s26_s29, 16, %s1767_s22, [#allocation5]  }
  0x1f   :  { %s34_s24 = sshll.u32 %s1768_s23, 4  ;;  %s1769_s25 = smov [#allocation9]   ;;  %s35_s24 = int_to_ptr.vmem [resolvable:$true] %s34_s24 }
  0x20   :  { %s58_s26 = sshll.u32 %s1769_s25, 4  ;;  %s1644_s2 = scalar_lea.hbm %s4226_s1, 1024  ;;  %s1838_s26 = int_to_ptr.vmem [resolvable:$true] %s58_s26 }
  0x21   :  { %p1645_p13 = scmp.ne.s32.totalorder %s4226_s1, %s1644_s2  ;;  %p1648_p0 = scmp.lt.u32.totalorder %s1644_s2, %s4226_s1 }
  0x23   :  { %p1650_p1 = pnand %p1648_p0, %p1645_p13 }
  0x25   :  { %1653 = shalt.err (!%p1650_p1)
}
  0x26   :  { %s1654_s29 = scalar_lea.vmem %s35_s24, 1024  ;;  %p1659_p3 = scmp.lt.s32.totalorder %s35_s24, %s35_s24 }
  0x27   :  { %p1655_p2 = scmp.ne.s32.totalorder %s35_s24, %s1654_s29  ;;  %p1660_p4 = scmp.lt.s32.totalorder %s1654_s29, %s1654_s29 }
  0x29   :  { %p1661_p5 = por %p1660_p4, %p1659_p3 }
  0x2b   :  { %p1662_p6 = pnand %p1661_p5, %p1655_p2 }
  0x2d   :  { %1665 = shalt.err (!%p1662_p6)
}
  0x2e   :  { %40 = dma.hbm_to_vmem [thread:$0]  %s4226_s1, 1024, %s35_s24, [#allocation3], %s1765_s0, %s1765_s0, %s1766_s18  }
  0x2f   :  { %s1666_s16 = scalar_lea.hbm %s4228_s3, 1024 }
  0x30   :  { %p1667_p7 = scmp.ne.s32.totalorder %s4228_s3, %s1666_s16  ;;  %p1670_p8 = scmp.lt.u32.totalorder %s1666_s16, %s4228_s3 }
  0x32   :  { %p1672_p9 = pnand %p1670_p8, %p1667_p7 }
  0x34   :  { %1675 = shalt.err (!%p1672_p9)
}
  0x35   :  { %s1676_s22 = scalar_lea.vmem %s1838_s26, 1024  ;;  %p1681_p11 = scmp.lt.s32.totalorder %s1838_s26, %s1838_s26 }
  0x36   :  { %p1677_p10 = scmp.ne.s32.totalorder %s1838_s26, %s1676_s22  ;;  %p1682_p12 = scmp.lt.s32.totalorder %s1676_s22, %s1676_s22 }
  0x38   :  { %p1683_p13 = por %p1682_p12, %p1681_p11 }
  0x3a   :  { %p1684_p0 = pnand %p1683_p13, %p1677_p10 }
  0x3c   :  { %1687 = shalt.err (!%p1684_p0)
}
  0x3d   :  { %64 = dma.hbm_to_vmem [thread:$0]  %s4228_s3, 1024, %s1838_s26, [#allocation8], %s1765_s0, %s1765_s0, %s1766_s18  }
  0x3e   :  { %1754 = dma.done.wait [#allocation5], 16  }
  0x3f   :  { %1755 = vsyncadd [#allocation5], 4294967280 }
  0x40   :  { %1756 = dma.done.wait [#allocation3], 1024  }
  0x41   :  { %1757 = vsyncadd [#allocation3], 4294966272 }
  0x42   :  { %1758 = dma.done.wait [#allocation8], 2048  }
  0x43   :  { %1759 = vsyncadd [#allocation8], 4294965248 }
  0x44   :  { %81 = sfence }
  0x45   :  { %v1875_v0 = vld [vmem:[#allocation6 + $0x10] sm:$0xff]  ;;  %v1877_v1 = vld [vmem:[#allocation6] sm:$0xff]  ;;  %s1770_s24 = smov 1   ;;  %v1883_v2 = vld [vmem:[#allocation6 + $0x18] sm:$0xff]  ;;  %s1771_s3 = smov 127   ;;  %v623_v28 = vlaneseq }
  0x46   :  { %587 = vrot.lane.b32.xlu1 %v1875_v0, %s1770_s24  ;;  %583 = vrot.lane.b32.xlu0 %v1877_v1, %s1770_s24  ;;  %v1885_v3 = vld [vmem:[#allocation6 + $0x8] sm:$0xff]  ;;  %v1893_v5 = vld [vmem:[#allocation7] sm:$0xff]  ;;  %v1899_v6 = vld [vmem:[#allocation7 + $0x18] sm:$0xff]  ;;  %v157_v13 = vsub.f32 1.0, %v1877_v1  ;;  %v160_v14 = vsub.f32 1.0, %v1883_v2  ;;  %v159_v20 = vsub.f32 1.0, %v1875_v0 }
  0x47   :  { %v1891_v4 = vld [vmem:[#allocation7 + $0x8] sm:$0xff]  ;;  %4368 = vst [vmem:[#allocation20_spill] sm:$0xff] %v1899_v6  ;;  %v1901_v7 = vld [vmem:[#allocation7 + $0x10] sm:$0xff]  ;;  %v1909_v9 = vld [vmem:[#allocation7 + $0x20] sm:$0xff]  ;;  %v158_v12 = vsub.f32 1.0, %v1885_v3  ;;  %v1976_v34 = vshrl.u32 %v623_v28, 7 }
  0x48   :  { %4367 = vst [vmem:[#allocation19_spill] sm:$0xff] %v1891_v4  ;;  %4369 = vst [vmem:[#allocation21_spill] sm:$0xff] %v1901_v7  ;;  %v1907_v8 = vld [vmem:[#allocation7 + $0x28] sm:$0xff]  ;;  %v1915_v10 = vld [vmem:[#allocation7 + $0x38] sm:$0xff]  ;;  %v198_v16 = vmax.f32 %v1891_v4, 1e-06  ;;  %v1939_v17 = vsub.f32 %v157_v13, %v1893_v5  ;;  %v1943_v19 = vsub.f32 %v160_v14, %v1899_v6  ;;  %v1955_v25 = vsub.f32 %v159_v20, %v1901_v7 }
  0x49   :  { %v1917_v11 = vld [vmem:[#allocation7 + $0x30] sm:$0xff]  ;;  %v1935_v15 = vsub.f32 %v158_v12, %v1891_v4  ;;  %v197_v18 = vmax.f32 %v1893_v5, 1e-06  ;;  %v200_v21 = vmax.f32 %v1899_v6, 1e-06  ;;  %v1961_v26 = vld [vmem:[#allocation6 + $0x28] sm:$0xff] }
  0x4a   :  { %589 = vrot.lane.b32.xlu1 %v1883_v2, %s1770_s24  ;;  %585 = vrot.lane.b32.xlu0 %v1885_v3, %s1770_s24  ;;  %4371 = vst [vmem:[#allocation23_spill] sm:$0xff] %v1939_v17  ;;  %4372 = vst [vmem:[#allocation24_spill] sm:$0xff] %v1943_v19  ;;  %1526 = vlog2.f32 %v198_v16  ;;  %v221_v23 = vmax.f32 %v1939_v17, 1e-06  ;;  %v224_v24 = vmax.f32 %v1943_v19, 1e-06 }
  0x4b   :  { %4370 = vst [vmem:[#allocation22_spill] sm:$0xff] %v1935_v15  ;;  %v222_v22 = vmax.f32 %v1935_v15, 1e-06  ;;  %1528 = vlog2.f32 %v197_v18  ;;  %4373 = vst [vmem:[#allocation25_spill] sm:$0xff] %v1955_v25  ;;  %v1963_v27 = vld [vmem:[#allocation6 + $0x20] sm:$0xff]  ;;  %v162_v31 = vsub.f32 1.0, %v1961_v26 }
  0x4c   :  { %1530 = vlog2.f32 %v200_v21  ;;  %v199_v29 = vmax.f32 %v1901_v7, 1e-06  ;;  %v223_v30 = vmax.f32 %v1955_v25, 1e-06  ;;  %v1972_v32 = vld [vmem:[#allocation6 + $0x38] sm:$0xff]  ;;  %v1974_v33 = vld [vmem:[#allocation6 + $0x30] sm:$0xff] }
  0x4d   :  { %1532 = vlog2.f32 %v222_v22  ;;  %v1978_v35 = vld [vmem:[#allocation9 + $0x8] sm:$0xff]  ;;  %v894_v39 = vmul.f32 2.0, %v1891_v4  ;;  %v1993_v40 = vsub.f32 %v162_v31, %v1907_v8  ;;  %v949_v42 = vrot.slane %v1893_v5, 7  ;;  %s1997_s25 = sld [smem:[#allocation2 + $0x1]]  ;;  %s1999_s26 = sld [smem:[#allocation2 + $0x2]]  ;;  %v2018_v54 = vld [vmem:[#allocation9] sm:$0xff] }
  0x4e   :  { %919 = vrot.lane.b32.xlu1 %v1891_v4, %s1770_s24  ;;  %917 = vrot.lane.b32.xlu0 %v1893_v5, %s1770_s24  ;;  %1534 = vlog2.f32 %v221_v23  ;;  %4374 = vst [vmem:[#allocation26_spill] sm:$0xff] %v1978_v35  ;;  %v1985_v37 = vadd.f32 -1.0, %v1978_v35  ;;  %v1989_v38 = vmul.f32 %v1978_v35, %v1978_v35  ;;  %v4238_v43 = vrot.slane %v1891_v4, 7  ;;  %4378 = vst [vmem:[#allocation30_spill] sm:$0xff] %v2018_v54  ;;  %s2029_s27 = sld [smem:[#allocation2 + $0x4]]  ;;  %s2368_s28 = sld [smem:[#allocation2]] }
  0x4f   :  { %1536 = vlog2.f32 %v224_v24  ;;  %vm625_vm0 = vcmp.lt.s32.totalorder %v1976_v34, 1  ;;  %v966_v45 = vrot.slane %v1891_v4, 1  ;;  %v4237_v46 = vrot.slane %v1901_v7, 1  ;;  %s2428_s2 = sld [smem:[#allocation2 + $0x3]]  ;;  %s2780_s30 = sld [smem:[#allocation2 + $0xd]] }
  0x50   :  { %1538 = vlog2.f32 %v199_v29  ;;  %4375 = vst [vmem:[#allocation27_spill] sm:$0xff] %v1985_v37  ;;  %4376 = vst [vmem:[#allocation28_spill] sm:$0xff] %v1989_v38  ;;  %vm642_vm1 = vcmp.lt.s32.totalorder %v1976_v34, 7  ;;  %v202_v48 = vmax.f32 %v1907_v8, 1e-06  ;;  %v2012_v50 = vmul.f32 %v1985_v37, %v1985_v37  ;;  %v2078_v29 = vld [vmem:[#allocation9 + $0x18] sm:$0xff] }
  0x51   :  { %1540 = vlog2.f32 %v223_v30  ;;  %v2015_v51 = vmul.f32 %v894_v39, %v1989_v38  ;;  %v226_v52 = vmax.f32 %v1993_v40, 1e-06  ;;  %v2024_v55 = vsel %vm625_vm0, %v949_v42, %v4238_v43  ;;  %4389 = vst [vmem:[#allocation41_spill] sm:$0xff] %v2078_v29  ;;  %s2801_s9 = sld [smem:[#allocation2 + $0x5]]  ;;  %s3241_s11 = sld [smem:[#allocation2 + $0x8]] }
  0x52   :  { %923 = vrot.lane.b32.xlu1 %v1899_v6, %s1770_s24  ;;  %921 = vrot.lane.b32.xlu0 %v1901_v7, %s1770_s24  ;;  %4377 = vst [vmem:[#allocation29_spill] sm:$0xff] %v2012_v50  ;;  %4379 = vst [vmem:[#allocation31_spill] sm:$0xff] %v2024_v55  ;;  %v2027_v56 = vmul.f32 4.0, %v1891_v4  ;;  %v4235_v57 = vrot.slane %v1915_v10, 7  ;;  %v4234_v58 = vrot.slane %v1893_v5, 1  ;;  %v2039_v60 = vsel %vm642_vm1, %v966_v45, %v4237_v46  ;;  %s3271_s29 = sld [smem:[#allocation2 + $0xa]] }
  0x53   :  { %4382 = vst [vmem:[#allocation34_spill] sm:$0xff] %v2039_v60  ;;  %v2042_v61 = vadd.f32 -1.0, %v2018_v54  ;;  %v951_v62 = vrot.slane %v1901_v7, 7  ;;  %v4236_v13 = vrot.slane %v1899_v6, 7  ;;  %1542 = vlog2.f32 %v202_v48  ;;  %s3302_s12 = sld [smem:[#allocation2 + $0x9]]  ;;  %s3863_s1 = sld [smem:[#allocation2 + $0xb]] }
  0x54   :  { %v1527_v36 = vpop.eup %1526  ;;  %4380 = vst [vmem:[#allocation32_spill] sm:$0xff] %v2027_v56  ;;  %1544 = vlog2.f32 %v226_v52  ;;  %v2061_v22 = vstv %s1999_s26  ;;  %v2064_v23 = vstv %s1997_s25  ;;  %v2070_v24 = vsel %vm625_vm0, %v4235_v57, %v949_v42  ;;  %s3867_s23 = sld [smem:[#allocation2 + $0xc]] }
  0x55   :  { %v1529_v41 = vpop.eup %1528  ;;  %v2033_v59 = vmul.f32 0.6931472, %v1527_v36  ;;  %4383 = vst [vmem:[#allocation35_spill] sm:$0xff] %v2042_v61  ;;  %4387 = vst [vmem:[#allocation39_spill] sm:$0xff] %v2070_v24  ;;  %v2076_v28 = vsel %vm642_vm1, %v4234_v58, %v966_v45  ;;  %v2082_v30 = vmul.f32 %v2018_v54, %v2018_v54  ;;  %v2086_v31 = vmul.f32 %v2042_v61, %v2042_v61  ;;  %s1376_s10 = ssub.f32 0.0, %s2780_s30  ;;  %s1773_s30 = smov [#allocation13]  }
  0x56   :  { %927 = vrot.lane.b32.xlu1 %v1907_v8, %s1770_s24  ;;  %925 = vrot.lane.b32.xlu0 %v1909_v9, %s1770_s24  ;;  %v1531_v44 = vpop.eup %1530  ;;  %v2047_v12 = vmul.f32 0.6931472, %v1529_v41  ;;  %4388 = vst [vmem:[#allocation40_spill] sm:$0xff] %v2076_v28  ;;  %v893_v36 = vmul.f32 2.0, %v1893_v5  ;;  %v161_v39 = vsub.f32 1.0, %v1963_v27  ;;  %v2093_v42 = vmul.f32 4.0, %v1893_v5 }
  0x57   :  { %v1533_v47 = vpop.eup %1532  ;;  %4381 = vst [vmem:[#allocation33_spill] sm:$0xff] %v2033_v59  ;;  %v2056_v18 = vmul.f32 0.6931472, %v1531_v44  ;;  %4390 = vst [vmem:[#allocation42_spill] sm:$0xff] %v2082_v30  ;;  %v2096_v44 = vadd.f32 -1.0, %v2078_v29  ;;  %v2102_v45 = vsel %vm625_vm0, %v951_v62, %v4236_v13  ;;  %v2120_v58 = vstv %s2029_s27 }
  0x58   :  { %v1535_v49 = vpop.eup %1534  ;;  %v2045_v63 = vmul.f32 0.6931472, %v1533_v47  ;;  %4384 = vst [vmem:[#allocation36_spill] sm:$0xff] %v2047_v12  ;;  %4391 = vst [vmem:[#allocation43_spill] sm:$0xff] %v2086_v31  ;;  %v2108_v47 = vld [vmem:[#allocation9 + $0x10] sm:$0xff]  ;;  %v968_v57 = vrot.slane %v1899_v6, 1  ;;  %v2130_v43 = vmul.f32 %v2078_v29, %v2078_v29  ;;  %v2139_v56 = vmul.f32 %v893_v36, %v2082_v30 }
  0x59   :  { %v1537_v53 = vpop.eup %1536  ;;  %v2054_v16 = vmul.f32 0.6931472, %v1535_v49  ;;  %4385 = vst [vmem:[#allocation37_spill] sm:$0xff] %v2056_v18  ;;  %4392 = vst [vmem:[#allocation44_spill] sm:$0xff] %v2093_v42  ;;  %vm246_vm2 = vcmp.lt.f32.partialorder %v1935_v15, 1e-06  ;;  %v2143_v13 = vmul.f32 %v2096_v44, %v2096_v44 }
  0x5a   :  { %931 = vrot.lane.b32.xlu1 %v1915_v10, %s1770_s24  ;;  %929 = vrot.lane.b32.xlu0 %v1917_v11, %s1770_s24  ;;  %v1539_v14 = vpop.eup %1538  ;;  %v2058_v20 = vmul.f32 0.6931472, %v1537_v53  ;;  %v377_v41 = vsub.f32 %v2033_v59, %v2045_v63  ;;  %4393 = vst [vmem:[#allocation45_spill] sm:$0xff] %v2096_v44  ;;  %4394 = vst [vmem:[#allocation46_spill] sm:$0xff] %v2102_v45  ;;  %vm245_vm3 = vcmp.lt.f32.partialorder %v1939_v17, 1e-06 }
  0x5b   :  { %v1541_v21 = vpop.eup %1540  ;;  %4395 = vst [vmem:[#allocation47_spill] sm:$0xff] %v2108_v47  ;;  %v376_v48 = vsub.f32 %v2047_v12, %v2054_v16  ;;  %v2114_v52 = vmul.f32 0.6931472, %v1539_v14  ;;  %4397 = vst [vmem:[#allocation49_spill] sm:$0xff] %v2120_v58  ;;  %v2126_v46 = vadd.f32 -1.0, %v2108_v47  ;;  %v896_v14 = vmul.f32 2.0, %v1899_v6 }
  0x5c   :  { %4386 = vst [vmem:[#allocation38_spill] sm:$0xff] %v2058_v20  ;;  %v379_v49 = vsub.f32 %v2056_v18, %v2058_v20  ;;  %v2116_v53 = vmul.f32 0.6931472, %v1541_v21  ;;  %4399 = vst [vmem:[#allocation51_spill] sm:$0xff] %v2130_v43  ;;  %v2134_v21 = vsub.f32 %v161_v39, %v1909_v9  ;;  %v164_v58 = vsub.f32 1.0, %v1972_v32  ;;  %v2268_v17 = vld [vmem:[#allocation9 + $0x38] sm:$0xff] }
  0x5d   :  { %4396 = vst [vmem:[#allocation48_spill] sm:$0xff] %v2114_v52  ;;  %4398 = vst [vmem:[#allocation50_spill] sm:$0xff] %v2126_v46  ;;  %v385_v42 = vmul.f32 %v377_v41, %v2061_v22  ;;  %v4401_v45 = vrot.slane %v1891_v4, 7  ;;  %v384_v39 = vmul.f32 %v376_v48, %v2061_v22  ;;  %vm248_vm4 = vcmp.lt.f32.partialorder %v1943_v19, 1e-06  ;;  %v1543_v60 = vpop.eup %1542  ;;  %s533_s20 = ssub.f32 1.0, %s3302_s12 }
  0x5e   :  { %935 = vrot.lane.b32.xlu1 %v1891_v4, %s1771_s3  ;;  %933 = vrot.lane.b32.xlu0 %v1893_v5, %s1771_s3  ;;  %4400 = vst [vmem:[#allocation52_spill] sm:$0xff] %v2143_v13  ;;  %v387_v36 = vmul.f32 %v379_v49, %v2061_v22  ;;  %v378_v41 = vsub.f32 %v2114_v52, %v2116_v53  ;;  %v4403_v24 = vrot.slane %v1909_v9, 1  ;;  %v1545_v49 = vpop.eup %1544  ;;  %v895_v37 = vmul.f32 2.0, %v1901_v7 }
  0x5f   :  { %v2149_v28 = vsel %vm625_vm0, %v4401_v45, %v951_v62  ;;  %v2167_v45 = vmul.f32 4.0, %v1899_v6  ;;  %v2171_v48 = vmul.f32 %v2108_v47, %v2108_v47  ;;  %v2175_v55 = vmul.f32 %v896_v14, %v2130_v43  ;;  %4420 = vst [vmem:[#allocation69_spill] sm:$0xff] %v2268_v17 }
  0x60   :  { %4402 = vst [vmem:[#allocation53_spill] sm:$0xff] %v2149_v28  ;;  %v2164_v62 = vsel %vm642_vm1, %v968_v57, %v4403_v24  ;;  %v201_v28 = vmax.f32 %v1909_v9, 1e-06  ;;  %v2179_v44 = vmul.f32 %v2126_v46, %v2126_v46  ;;  %v225_v24 = vmax.f32 %v2134_v21, 1e-06 }
  0x61   :  { %4404 = vst [vmem:[#allocation54_spill] sm:$0xff] %v2164_v62  ;;  %4405 = vst [vmem:[#allocation55_spill] sm:$0xff] %v2167_v45  ;;  %v2183_v62 = vsub.f32 %v164_v58, %v1915_v10  ;;  %v393_v45 = vadd.f32 %v385_v42, %v2064_v23  ;;  %v4408_v18 = vrot.slane %v1901_v7, 1  ;;  %v163_v14 = vsub.f32 1.0, %v1974_v33  ;;  %v2198_v58 = vld [vmem:[#allocation9 + $0x28] sm:$0xff] }
  0x62   :  { %939 = vrot.lane.b32.xlu1 %v1899_v6, %s1771_s3  ;;  %937 = vrot.lane.b32.xlu0 %v1901_v7, %s1771_s3  ;;  %4406 = vst [vmem:[#allocation56_spill] sm:$0xff] %v2171_v48  ;;  %4410 = vst [vmem:[#allocation59_spill] sm:$0xff] %v2198_v58  ;;  %v392_v42 = vadd.f32 %v384_v39, %v2064_v23  ;;  %v395_v46 = vadd.f32 %v387_v36, %v2064_v23  ;;  %vm247_vm5 = vcmp.lt.f32.partialorder %v1955_v25, 1e-06 }
  0x63   :  { %4407 = vst [vmem:[#allocation57_spill] sm:$0xff] %v2183_v62  ;;  %v2191_v61 = vsel %vm642_vm1, %v4408_v18, %v968_v57  ;;  %v386_v52 = vmul.f32 %v378_v41, %v2061_v22  ;;  %v2204_v57 = vmul.f32 0.6931472, %v1543_v60  ;;  %v2206_v18 = vmul.f32 0.6931472, %v1545_v49 }
  0x64   :  { %4409 = vst [vmem:[#allocation58_spill] sm:$0xff] %v2191_v61  ;;  %1546 = vlog2.f32 %v201_v28  ;;  %v204_v61 = vmax.f32 %v1915_v10, 1e-06  ;;  %v2210_v59 = vmul.f32 4.0, %v1901_v7  ;;  %v2213_v4 = vadd.f32 -1.0, %v2198_v58  ;;  %v2237_v7 = vld [vmem:[#allocation9 + $0x20] sm:$0xff] }
  0x65   :  { %4411 = vst [vmem:[#allocation60_spill] sm:$0xff] %v2204_v57  ;;  %4412 = vst [vmem:[#allocation61_spill] sm:$0xff] %v2206_v18  ;;  %1548 = vlog2.f32 %v225_v24  ;;  %v228_v39 = vmax.f32 %v2183_v62, 1e-06  ;;  %v2217_v36 = vmul.f32 %v895_v37, %v2171_v48  ;;  %v2221_v60 = vmul.f32 %v2198_v58, %v2198_v58 }
  0x66   :  { %943 = vrot.lane.b32.xlu1 %v1907_v8, %s1771_s3  ;;  %941 = vrot.lane.b32.xlu0 %v1909_v9, %s1771_s3  ;;  %4413 = vst [vmem:[#allocation62_spill] sm:$0xff] %v2210_v59  ;;  %4414 = vst [vmem:[#allocation63_spill] sm:$0xff] %v2213_v4  ;;  %v898_v28 = vmul.f32 2.0, %v1907_v8  ;;  %v2225_v41 = vsub.f32 %v163_v14, %v1917_v11  ;;  %v401_v49 = vsel %vm246_vm2, 0.0, %v393_v45  ;;  %v400_v37 = vsel %vm245_vm3, 0.0, %v392_v42 }
  0x67   :  { %4415 = vst [vmem:[#allocation64_spill] sm:$0xff] %v2221_v60  ;;  %v953_v24 = vrot.slane %v1909_v9, 7  ;;  %4417 = vst [vmem:[#allocation66_spill] sm:$0xff] %v2237_v7  ;;  %v403_v14 = vsel %vm248_vm4, 0.0, %v395_v46  ;;  %v394_v12 = vadd.f32 %v386_v52, %v2064_v23  ;;  %v381_v48 = vsub.f32 %v2204_v57, %v2206_v18 }
  0x68   :  { %4416 = vst [vmem:[#allocation65_spill] sm:$0xff] %v2225_v41  ;;  %1550 = vlog2.f32 %v204_v61  ;;  %v970_v45 = vrot.slane %v1907_v8, 1  ;;  %v203_v42 = vmax.f32 %v1917_v11, 1e-06  ;;  %v886_v59 = vmul.f32 %v401_v49, %v2012_v50 }
  0x69   :  { %1552 = vlog2.f32 %v228_v39  ;;  %v885_v15 = vmul.f32 %v400_v37, %v2086_v31  ;;  %v2251_v46 = vmul.f32 %v2213_v4, %v2213_v4  ;;  %v227_v52 = vmax.f32 %v2225_v41, 1e-06  ;;  %v2266_v37 = vld [vmem:[#allocation9 + $0x30] sm:$0xff] }
  0x6a   :  { %947 = vrot.lane.b32.xlu1 %v1915_v10, %s1771_s3  ;;  %945 = vrot.lane.b32.xlu0 %v1917_v11, %s1771_s3  ;;  %v888_v61 = vmul.f32 %v403_v14, %v2143_v13  ;;  %vm250_vm6 = vcmp.lt.f32.partialorder %v1993_v40, 1e-06  ;;  %v2261_v39 = vmul.f32 %v898_v28, %v2221_v60  ;;  %v2264_v49 = vadd.f32 -1.0, %v2237_v7  ;;  %4419 = vst [vmem:[#allocation68_spill] sm:$0xff] %v2266_v37 }
  0x6b   :  { %v402_v4 = vsel %vm247_vm5, 0.0, %v394_v12  ;;  %v389_v57 = vmul.f32 %v381_v48, %v2061_v22  ;;  %v2275_v14 = vmul.f32 %v2237_v7, %v2237_v7  ;;  %v897_v13 = vmul.f32 2.0, %v1909_v9 }
  0x6c   :  { %4418 = vst [vmem:[#allocation67_spill] sm:$0xff] %v2264_v49  ;;  %v4422_v28 = vrot.slane %v1907_v8, 7  ;;  %v4424_v19 = vrot.slane %v1917_v11, 1  ;;  %1554 = vlog2.f32 %v203_v42  ;;  %v174_v12 = vmax.f32 %v1885_v3, 1e-06 }
  0x6d   :  { %4421 = vst [vmem:[#allocation70_spill] sm:$0xff] %v2275_v14  ;;  %v2292_v60 = vadd.f32 %v2015_v51, %v886_v59  ;;  %v2295_v50 = vadd.f32 %v2139_v56, %v885_v15  ;;  %v2298_v18 = vadd.f32 -1.0, %v2268_v17  ;;  %1556 = vlog2.f32 %v227_v52 }
  0x6e   :  { %593 = vrot.lane.b32.xlu1 %v1961_v26, %s1770_s24  ;;  %591 = vrot.lane.b32.xlu0 %v1963_v27, %s1770_s24  ;;  %v2282_v31 = vsel %vm625_vm0, %v953_v24, %v4422_v28  ;;  %v2288_v25 = vsel %vm642_vm1, %v970_v45, %v4424_v19  ;;  %v1547_v48 = vpop.eup %1546  ;;  %v2305_v19 = vadd.f32 %v2175_v55, %v888_v61  ;;  %v2309_v59 = vmul.f32 4.0, %v1907_v8 }
  0x6f   :  { %4423 = vst [vmem:[#allocation71_spill] sm:$0xff] %v2282_v31  ;;  %4425 = vst [vmem:[#allocation72_spill] sm:$0xff] %v2288_v25  ;;  %v1549_v28 = vpop.eup %1548  ;;  %v887_v51 = vmul.f32 %v402_v4, %v2179_v44  ;;  %v2313_v15 = vmul.f32 %v2264_v49, %v2264_v49  ;;  %v397_v56 = vadd.f32 %v389_v57, %v2064_v23  ;;  %v4431_v52 = vrot.slane %v1899_v6, 7 }
  0x70   :  { %4426 = vst [vmem:[#allocation73_spill] sm:$0xff] %v2292_v60  ;;  %4427 = vst [vmem:[#allocation74_spill] sm:$0xff] %v2295_v50  ;;  %v2317_v42 = vmul.f32 %v897_v13, %v2275_v14  ;;  %v4433_v4 = vrot.slane %v1909_v9, 1  ;;  %v2336_v57 = vmul.f32 %v2268_v17, %v2268_v17  ;;  %1558 = vlog2.f32 %v174_v12 }
  0x71   :  { %4428 = vst [vmem:[#allocation75_spill] sm:$0xff] %v2298_v18  ;;  %4429 = vst [vmem:[#allocation76_spill] sm:$0xff] %v2305_v19  ;;  %v2323_v55 = vsel %vm625_vm0, %v4431_v52, %v953_v24  ;;  %v2332_v19 = vmul.f32 4.0, %v1909_v9  ;;  %v173_v13 = vmax.f32 %v1877_v1, 1e-06  ;;  %v2345_v52 = vmul.f32 %v2298_v18, %v2298_v18 }
  0x72   :  { %597 = vrot.lane.b32.xlu1 %v1972_v32, %s1770_s24  ;;  %595 = vrot.lane.b32.xlu0 %v1974_v33, %s1770_s24  ;;  %4430 = vst [vmem:[#allocation77_spill] sm:$0xff] %v2309_v59  ;;  %4432 = vst [vmem:[#allocation78_spill] sm:$0xff] %v2323_v55  ;;  %v2329_v61 = vsel %vm642_vm1, %v4433_v4, %v970_v45  ;;  %v1551_v59 = vpop.eup %1550  ;;  %v2339_v25 = vmul.f32 0.6931472, %v1547_v48  ;;  %v2341_v24 = vmul.f32 0.6931472, %v1549_v28 }
  0x73   :  { %4434 = vst [vmem:[#allocation79_spill] sm:$0xff] %v2329_v61  ;;  %4435 = vst [vmem:[#allocation80_spill] sm:$0xff] %v2332_v19  ;;  %v176_v45 = vmax.f32 %v1883_v2, 1e-06  ;;  %v1553_v9 = vpop.eup %1552  ;;  %v2349_v4 = vadd.f32 %v2217_v36, %v887_v51  ;;  %v900_v12 = vmul.f32 2.0, %v1915_v10  ;;  %v955_v48 = vrot.slane %v1917_v11, 7 }
  0x74   :  { %4436 = vst [vmem:[#allocation81_spill] sm:$0xff] %v2336_v57  ;;  %4437 = vst [vmem:[#allocation82_spill] sm:$0xff] %v2339_v25  ;;  %v972_v28 = vrot.slane %v1915_v10, 1  ;;  %v405_v18 = vsel %vm250_vm6, 0.0, %v397_v56  ;;  %v2361_v19 = vadd.f32 -1.0, %v2266_v37  ;;  %v2365_v36 = vmul.f32 %v2266_v37, %v2266_v37 }
  0x75   :  { %4438 = vst [vmem:[#allocation83_spill] sm:$0xff] %v2341_v24  ;;  %4439 = vst [vmem:[#allocation84_spill] sm:$0xff] %v2349_v4  ;;  %v899_v51 = vmul.f32 2.0, %v1917_v11  ;;  %v2370_v4 = vmul.f32 0.6931472, %v1551_v59  ;;  %v2373_v61 = vadd.f32 -1.0, %v1885_v3  ;;  %1560 = vlog2.f32 %v173_v13 }
  0x76   :  { %601 = vrot.lane.b32.xlu1 %v1885_v3, %s1771_s3  ;;  %599 = vrot.lane.b32.xlu0 %v1877_v1, %s1771_s3  ;;  %4440 = vst [vmem:[#allocation85_spill] sm:$0xff] %v2361_v19  ;;  %4441 = vst [vmem:[#allocation86_spill] sm:$0xff] %v2365_v36  ;;  %v175_v50 = vmax.f32 %v1875_v0, 1e-06  ;;  %v380_v56 = vsub.f32 %v2339_v25, %v2341_v24  ;;  %v2378_v55 = vmul.f32 0.6931472, %v1553_v9  ;;  %1562 = vlog2.f32 %v176_v45  ;;  %v1555_v60 = vpop.eup %1554 }
  0x77   :  { %4442 = vst [vmem:[#allocation87_spill] sm:$0xff] %v2370_v4  ;;  %4443 = vst [vmem:[#allocation88_spill] sm:$0xff] %v2373_v61  ;;  %v178_v31 = vmax.f32 %v1961_v26, 1e-06  ;;  %vm249_vm7 = vcmp.lt.f32.partialorder %v2134_v21, 1e-06  ;;  %v2387_v59 = vmul.f32 %v900_v12, %v2336_v57  ;;  %v1557_v25 = vpop.eup %1556  ;;  %v2407_v12 = vmul.f32 %v2361_v19, %v2361_v19 }
  0x78   :  { %4444 = vst [vmem:[#allocation89_spill] sm:$0xff] %v2378_v55  ;;  %v4445_v13 = vrot.slane %v1915_v10, 7  ;;  %v2396_v45 = vmul.f32 4.0, %v1915_v10  ;;  %v177_v49 = vmax.f32 %v1963_v27, 1e-06  ;;  %v4451_v6 = vrot.slane %v1907_v8, 7 }
  0x79   :  { %4450 = vst [vmem:[#allocation93_spill] sm:$0xff] %v2407_v12  ;;  %v2416_v10 = vmul.f32 4.0, %v1917_v11  ;;  %1564 = vlog2.f32 %v175_v50  ;;  %v383_v8 = vsub.f32 %v2370_v4, %v2378_v55  ;;  %vm252_vm8 = vcmp.lt.f32.partialorder %v2183_v62, 1e-06 }
  0x7a   :  { %605 = vrot.lane.b32.xlu1 %v1883_v2, %s1771_s3  ;;  %603 = vrot.lane.b32.xlu0 %v1875_v0, %s1771_s3  ;;  %v2393_v9 = vsel %vm625_vm0, %v955_v48, %v4445_v13  ;;  %4447 = vst [vmem:[#allocation91_spill] sm:$0xff] %v2396_v45  ;;  %v2413_v13 = vsel %vm625_vm0, %v4451_v6, %v955_v48  ;;  %1566 = vlog2.f32 %v178_v31  ;;  %v1559_v48 = vpop.eup %1558  ;;  %v180_v50 = vmax.f32 %v1972_v32, 1e-06 }
  0x7b   :  { %4446 = vst [vmem:[#allocation90_spill] sm:$0xff] %v2393_v9  ;;  %4452 = vst [vmem:[#allocation94_spill] sm:$0xff] %v2413_v13  ;;  %v890_v45 = vmul.f32 %v405_v18, %v2251_v46  ;;  %v2420_v9 = vmul.f32 %v899_v51, %v2365_v36  ;;  %v388_v6 = vmul.f32 %v380_v56, %v2061_v22  ;;  %v560_v18 = vmul.f32 2.0, %v2373_v61 }
  0x7c   :  { %4453 = vst [vmem:[#allocation95_spill] sm:$0xff] %v2416_v10  ;;  %v2437_v51 = vmul.f32 0.6931472, %v1557_v25  ;;  %1568 = vlog2.f32 %v177_v49  ;;  %v615_v31 = vrot.slane %v1877_v1, 7  ;;  %v616_v56 = vrot.slane %v1885_v3, 7 }
  0x7d   :  { %v2449_v25 = vadd.f32 %v2261_v39, %v890_v45  ;;  %v2456_v10 = vadd.f32 -1.0, %v1877_v1  ;;  %v396_v49 = vadd.f32 %v388_v6, %v2064_v23  ;;  %v2463_v13 = vadd.f32 -1.0, %v1883_v2 }
  0x7e   :  { %609 = vrot.lane.b32.xlu1 %v1961_v26, %s1771_s3  ;;  %607 = vrot.lane.b32.xlu0 %v1963_v27, %s1771_s3  ;;  %4457 = vst [vmem:[#allocation98_spill] sm:$0xff] %v2437_v51  ;;  %v2472_v45 = vmul.f32 %v560_v18, %v1989_v38  ;;  %1570 = vlog2.f32 %v180_v50  ;;  %v179_v6 = vmax.f32 %v1974_v33, 1e-06  ;;  %vm251_vm9 = vcmp.lt.f32.partialorder %v2225_v41, 1e-06 }
  0x7f   :  { %4458 = vst [vmem:[#allocation99_spill] sm:$0xff] %v2449_v25  ;;  %4459 = vst [vmem:[#allocation100_spill] sm:$0xff] %v2456_v10  ;;  %v4462_v4 = vrot.slane %v1875_v0, 1  ;;  %v2491_v50 = vstv %s2428_s2  ;;  %v559_v38 = vmul.f32 2.0, %v2456_v10 }
  0x80   :  { %4460 = vst [vmem:[#allocation101_spill] sm:$0xff] %v2463_v13  ;;  %4465 = vst [vmem:[#allocation105_spill] sm:$0xff] %v2491_v50  ;;  %v562_v50 = vmul.f32 2.0, %v2463_v13  ;;  %1572 = vlog2.f32 %v179_v6  ;;  %v2523_v13 = vadd.f32 -1.0, %v1875_v0  ;;  %v637_v6 = vrot.slane %v1883_v2, 1 }
  0x81   :  { %1574 = vrcp.f32 %v2061_v22 }
  0x82   :  { %613 = vrot.lane.b32.xlu1 %v1972_v32, %s1771_s3  ;;  %611 = vrot.lane.b32.xlu0 %v1974_v33, %s1771_s3  ;;  %4472 = vst [vmem:[#allocation110_spill] sm:$0xff] %v2523_v13 }
  0x86   :  { %1255 = vrot.lane.b32.xlu1 %v2018_v54, %s1770_s24  ;;  %1257 = vrot.lane.b32.xlu0 %v1978_v35, %s1770_s24 }
  0x8a   :  { %1259 = vrot.lane.b32.xlu1 %v2108_v47, %s1770_s24  ;;  %1261 = vrot.lane.b32.xlu0 %v2078_v29, %s1770_s24 }
  0x8e   :  { %1263 = vrot.lane.b32.xlu1 %v2237_v7, %s1770_s24  ;;  %1265 = vrot.lane.b32.xlu0 %v2198_v58, %s1770_s24 }
  0x92   :  { %1267 = vrot.lane.b32.xlu1 %v2266_v37, %s1770_s24  ;;  %1269 = vrot.lane.b32.xlu0 %v2268_v17, %s1770_s24 }
  0x96   :  { %1271 = vrot.lane.b32.xlu1 %v2018_v54, %s1771_s3  ;;  %1273 = vrot.lane.b32.xlu0 %v1978_v35, %s1771_s3 }
  0x9a   :  { %1275 = vrot.lane.b32.xlu1 %v2108_v47, %s1771_s3  ;;  %1277 = vrot.lane.b32.xlu0 %v2078_v29, %s1771_s3  ;;  %v4448_v47 = vrot.slane %v1893_v5, 1 }
  0x9c   :  { %v2403_v29 = vsel %vm642_vm1, %v972_v28, %v4448_v47  ;;  %v4454_v47 = vrot.slane %v1917_v11, 1  ;;  %v2435_v11 = vmul.f32 0.6931472, %v1555_v60  ;;  %v635_v60 = vrot.slane %v1885_v3, 1 }
  0x9d   :  { %4449 = vst [vmem:[#allocation92_spill] sm:$0xff] %v2403_v29  ;;  %v1561_v29 = vpop.eup %1560 }
  0x9e   :  { %v2426_v19 = vsel %vm642_vm1, %v4454_v47, %v972_v28  ;;  %4456 = vst [vmem:[#allocation97_spill] sm:$0xff] %v2435_v11  ;;  %1279 = vrot.lane.b32.xlu1 %v2237_v7, %s1771_s3  ;;  %1281 = vrot.lane.b32.xlu0 %v2198_v58, %s1771_s3  ;;  %v2452_v47 = vstv %s2368_s28  ;;  %v391_v28 = vmul.f32 %v383_v8, %v2061_v22  ;;  %v1563_v8 = vpop.eup %1562  ;;  %v2501_v58 = vmul.f32 4.0, %v1877_v1  ;;  %s1772_s28 = smov [#allocation11]  }
  0x9f   :  { %4455 = vst [vmem:[#allocation96_spill] sm:$0xff] %v2426_v19  ;;  %v2460_v19 = vmul.f32 0.6931472, %v1559_v48  ;;  %v382_v39 = vsub.f32 %v2435_v11, %v2437_v51  ;;  %v2478_v48 = vsel %vm625_vm0, %v615_v31, %v616_v56  ;;  %v2484_v25 = vsel %vm642_vm1, %v635_v60, %v4462_v4  ;;  %s1451_s2 = sshll.u32 %s1772_s28, 4  ;;  %s4134_s2 = int_to_ptr.vmem [resolvable:$true] %s1451_s2 }
  0xa0   :  { %4461 = vst [vmem:[#allocation102_spill] sm:$0xff] %v2478_v48  ;;  %4463 = vst [vmem:[#allocation103_spill] sm:$0xff] %v2484_v25  ;;  %v2487_v11 = vmul.f32 4.0, %v1885_v3  ;;  %v404_v4 = vsel %vm249_vm7, 0.0, %v396_v49  ;;  %v1565_v25 = vpop.eup %1564  ;;  %v2510_v61 = vmul.f32 0.6931472, %v1561_v29  ;;  %p1693_p2 = scmp.lt.s32.totalorder %s4134_s2, %s4134_s2 }
  0xa1   :  { %4468 = vst [vmem:[#allocation107_spill] sm:$0xff] %v2501_v58  ;;  %v345_v18 = vsub.f32 %v2460_v19, %v2045_v63  ;;  %v390_v7 = vmul.f32 %v382_v39, %v2061_v22  ;;  %v4470_v58 = vrot.slane %v1877_v1, 1  ;;  %v889_v29 = vmul.f32 %v404_v4, %v2313_v15 }
  0xa2   :  { %1283 = vrot.lane.b32.xlu1 %v2266_v37, %s1771_s3  ;;  %1285 = vrot.lane.b32.xlu0 %v2268_v17, %s1771_s3  ;;  %4464 = vst [vmem:[#allocation104_spill] sm:$0xff] %v2487_v11  ;;  %v4466_v37 = vrot.slane %v1972_v32, 7  ;;  %v399_v11 = vadd.f32 %v391_v28, %v2064_v23  ;;  %v617_v28 = vrot.slane %v1875_v0, 7  ;;  %v2545_v10 = vmul.f32 0.6931472, %v1565_v25  ;;  %v4491_v17 = vld [vmem:[#allocation29_spill] sm:$0xff] }
  0xa3   :  { %v2518_v49 = vsel %vm642_vm1, %v4470_v58, %v635_v60  ;;  %v353_v60 = vmul.f32 %v345_v18, %v2061_v22  ;;  %v398_v4 = vadd.f32 %v390_v7, %v2064_v23  ;;  %v2559_v35 = vadd.f32 %v2317_v42, %v889_v29 }
  0xa4   :  { %v2498_v48 = vsel %vm625_vm0, %v4466_v37, %v615_v31  ;;  %v2512_v37 = vmul.f32 0.6931472, %v1563_v8  ;;  %v1567_v31 = vpop.eup %1566  ;;  %4471 = vst [vmem:[#allocation109_spill] sm:$0xff] %v2518_v49  ;;  %v2527_v8 = vmul.f32 %v559_v38, %v2082_v30  ;;  %v407_v58 = vsel %vm252_vm8, 0.0, %v399_v11 }
  0xa5   :  { %4467 = vst [vmem:[#allocation106_spill] sm:$0xff] %v2498_v48  ;;  %v1569_v39 = vpop.eup %1568  ;;  %v2535_v48 = vmul.f32 %v562_v50, %v2130_v43  ;;  %v2538_v49 = vmul.f32 4.0, %v1883_v2  ;;  %v344_v38 = vsub.f32 %v2510_v61, %v2054_v16  ;;  %v4474_v11 = vrot.slane %v1883_v2, 7  ;;  %4478 = vst [vmem:[#allocation115_spill] sm:$0xff] %v2559_v35 }
  0xa6   :  { %4469 = vst [vmem:[#allocation108_spill] sm:$0xff] %v2512_v37  ;;  %v347_v30 = vsub.f32 %v2512_v37, %v2058_v20  ;;  %v561_v50 = vmul.f32 2.0, %v2523_v13  ;;  %v2554_v43 = vmul.f32 0.6931472, %v1567_v31  ;;  %v1571_v7 = vpop.eup %1570  ;;  %v4479_v20 = vrot.slane %v1963_v27, 1 }
  0xa7   :  { %4473 = vst [vmem:[#allocation111_spill] sm:$0xff] %v2538_v49  ;;  %v2551_v18 = vsel %vm625_vm0, %v617_v28, %v4474_v11  ;;  %v2556_v49 = vmul.f32 0.6931472, %v1569_v39  ;;  %v2569_v11 = vsel %vm625_vm0, %v616_v56, %v617_v28  ;;  %v892_v31 = vmul.f32 %v407_v58, %v2345_v52 }
  0xa8   :  { %4475 = vst [vmem:[#allocation112_spill] sm:$0xff] %v2551_v18  ;;  %4476 = vst [vmem:[#allocation113_spill] sm:$0xff] %v2554_v43  ;;  %v2565_v25 = vsel %vm642_vm1, %v637_v6, %v4479_v20  ;;  %v2572_v18 = vadd.f32 -1.0, %v1961_v26  ;;  %v361_v39 = vadd.f32 %v353_v60, %v2452_v47  ;;  %v4483_v42 = vrot.slane %v1875_v0, 1  ;;  %v4486_v60 = vld [vmem:[#allocation56_spill] sm:$0xff] }
  0xa9   :  { %4477 = vst [vmem:[#allocation114_spill] sm:$0xff] %v2556_v49  ;;  %4480 = vst [vmem:[#allocation116_spill] sm:$0xff] %v2565_v25  ;;  %v2583_v20 = vmul.f32 4.0, %v1875_v0  ;;  %v406_v56 = vsel %vm251_vm9, 0.0, %v398_v4  ;;  %v352_v28 = vmul.f32 %v344_v38, %v2061_v22  ;;  %v355_v35 = vmul.f32 %v347_v30, %v2061_v22 }
  0xaa   :  { %4481 = vst [vmem:[#allocation117_spill] sm:$0xff] %v2569_v11  ;;  %4482 = vst [vmem:[#allocation118_spill] sm:$0xff] %v2572_v18  ;;  %v2580_v29 = vsel %vm642_vm1, %v4483_v42, %v637_v6  ;;  %v346_v58 = vsub.f32 %v2545_v10, %v2116_v53  ;;  %v2592_v25 = vmul.f32 %v561_v50, %v4486_v60  ;;  %v4487_v11 = vld [vmem:[#allocation61_spill] sm:$0xff]  ;;  %v564_v4 = vmul.f32 2.0, %v2572_v18  ;;  %v4489_v60 = vld [vmem:[#allocation22_spill] sm:$0xff] }
  0xab   :  { %4484 = vst [vmem:[#allocation119_spill] sm:$0xff] %v2580_v29  ;;  %4485 = vst [vmem:[#allocation120_spill] sm:$0xff] %v2583_v20  ;;  %v349_v6 = vsub.f32 %v2554_v43, %v4487_v11  ;;  %v348_v42 = vsub.f32 %v2556_v49, %v2341_v24  ;;  %v2598_v20 = vmul.f32 0.6931472, %v1571_v7  ;;  %v1573_v29 = vpop.eup %1572  ;;  %v619_v38 = vrot.slane %v1963_v27, 7 }
  0xac   :  { %v639_v13 = vrot.slane %v1961_v26, 1  ;;  %v891_v50 = vmul.f32 %v406_v56, %v2407_v12  ;;  %v369_v37 = vsel %vm246_vm2, 0.0, %v361_v39  ;;  %v2609_v43 = vadd.f32 -1.0, %v1963_v27  ;;  %v4492_v12 = vld [vmem:[#allocation64_spill] sm:$0xff] }
  0xad   :  { %4488 = vst [vmem:[#allocation121_spill] sm:$0xff] %v2598_v20  ;;  %v2612_v7 = vadd.f32 %v2387_v59, %v892_v31  ;;  %v360_v18 = vadd.f32 %v352_v28, %v2452_v47  ;;  %v363_v24 = vadd.f32 %v355_v35, %v2452_v47  ;;  %v354_v30 = vmul.f32 %v346_v58, %v2061_v22 }
  0xae   :  { %v357_v49 = vmul.f32 %v349_v6, %v2061_v22  ;;  %v356_v56 = vmul.f32 %v348_v42, %v2061_v22  ;;  %v351_v39 = vsub.f32 %v2598_v20, %v2378_v55  ;;  %v2621_v11 = vmul.f32 0.6931472, %v1573_v29  ;;  %v4500_v42 = vld [vmem:[#allocation23_spill] sm:$0xff] }
  0xaf   :  { %4490 = vst [vmem:[#allocation22_spill] sm:$0xff] %v2612_v7  ;;  %v552_v54 = vmul.f32 %v369_v37, %v4491_v17  ;;  %v2625_v59 = vmul.f32 %v564_v4, %v4492_v12  ;;  %v4493_v31 = vrot.slane %v1961_v26, 7  ;;  %v2634_v28 = vmul.f32 4.0, %v1961_v26 }
  0xb0   :  { %v2637_v58 = vadd.f32 %v2420_v9, %v891_v50  ;;  %v4497_v29 = vrot.slane %v1974_v33, 1  ;;  %v563_v37 = vmul.f32 2.0, %v2609_v43  ;;  %v2647_v6 = vadd.f32 -1.0, %v1972_v32 }
  0xb1   :  { %v2631_v35 = vsel %vm625_vm0, %v619_v38, %v4493_v31  ;;  %4495 = vst [vmem:[#allocation122_spill] sm:$0xff] %v2634_v28  ;;  %v368_v4 = vsel %vm245_vm3, 0.0, %v360_v18  ;;  %v4501_v31 = vld [vmem:[#allocation24_spill] sm:$0xff]  ;;  %v371_v12 = vsel %vm248_vm4, 0.0, %v363_v24  ;;  %v362_v9 = vadd.f32 %v354_v30, %v2452_v47 }
  0xb2   :  { %4494 = vst [vmem:[#allocation29_spill] sm:$0xff] %v2631_v35  ;;  %4496 = vst [vmem:[#allocation123_spill] sm:$0xff] %v2637_v58  ;;  %v2643_v17 = vsel %vm642_vm1, %v639_v13, %v4497_v29  ;;  %v4502_v50 = vrot.slane %v1883_v2, 7  ;;  %v365_v29 = vadd.f32 %v357_v49, %v2452_v47  ;;  %v364_v55 = vadd.f32 %v356_v56, %v2452_v47  ;;  %v4508_v49 = vld [vmem:[#allocation36_spill] sm:$0xff] }
  0xb3   :  { %4498 = vst [vmem:[#allocation124_spill] sm:$0xff] %v2643_v17  ;;  %4499 = vst [vmem:[#allocation125_spill] sm:$0xff] %v2647_v6  ;;  %v359_v20 = vmul.f32 %v351_v39, %v2061_v22  ;;  %v350_v18 = vsub.f32 %v2621_v11, %v2437_v51  ;;  %v2670_v30 = vadd.f32 %v2472_v45, %v552_v54  ;;  %v4506_v17 = vrot.slane %v1963_v27, 1  ;;  %v4511_v45 = vld [vmem:[#allocation25_spill] sm:$0xff] }
  0xb4   :  { %v2658_v58 = vsel %vm625_vm0, %v4502_v50, %v619_v38  ;;  %v287_v56 = vmul.f32 %v4508_v49, %v1893_v5  ;;  %v279_v39 = vmul.f32 %v2510_v61, %v1877_v1  ;;  %v4509_v50 = vld [vmem:[#allocation43_spill] sm:$0xff]  ;;  %v571_v7 = vmul.f32 %v563_v37, %v2275_v14 }
  0xb5   :  { %4503 = vst [vmem:[#allocation23_spill] sm:$0xff] %v2658_v58  ;;  %4505 = vst [vmem:[#allocation126_spill] sm:$0xff] %v2670_v30  ;;  %v2676_v38 = vsel %vm642_vm1, %v4506_v17, %v639_v13  ;;  %v551_v51 = vmul.f32 %v368_v4, %v4509_v50  ;;  %v4510_v58 = vld [vmem:[#allocation52_spill] sm:$0xff]  ;;  %v566_v54 = vmul.f32 2.0, %v2647_v6  ;;  %v370_v30 = vsel %vm247_vm5, 0.0, %v362_v9 }
  0xb6   :  { %4507 = vst [vmem:[#allocation127_spill] sm:$0xff] %v2676_v38  ;;  %v554_v35 = vmul.f32 %v371_v12, %v4510_v58  ;;  %v2689_v13 = vmul.f32 4.0, %v1963_v27  ;;  %v621_v17 = vrot.slane %v1974_v33, 7  ;;  %v2693_v49 = vadd.f32 -1.0, %v1974_v33 }
  0xb7   :  { %v373_v61 = vsel %vm250_vm6, 0.0, %v365_v29  ;;  %v372_v12 = vsel %vm249_vm7, 0.0, %v364_v55  ;;  %v367_v58 = vadd.f32 %v359_v20, %v2452_v47  ;;  %v358_v37 = vmul.f32 %v350_v18, %v2061_v22  ;;  %v4515_v29 = vld [vmem:[#allocation33_spill] sm:$0xff] }
  0xb8   :  { %v2665_v28 = vpop.permute.xlu1 %587  ;;  %v2667_v24 = vpop.permute.xlu0 %583  ;;  %4512 = vst [vmem:[#allocation36_spill] sm:$0xff] %v2689_v13  ;;  %4513 = vst [vmem:[#allocation43_spill] sm:$0xff] %v2693_v49  ;;  %v295_v50 = vadd.f32 %v287_v56, %v279_v39  ;;  %v303_v14 = vmul.f32 %v2054_v16, %v4500_v42  ;;  %v280_v6 = vmul.f32 %v2460_v19, %v1885_v3  ;;  %v4514_v13 = vld [vmem:[#allocation19_spill] sm:$0xff]  ;;  %v4516_v39 = vrot.slane %v1972_v32, 7 }
  0xb9   :  { %4504 = vst [vmem:[#allocation24_spill] sm:$0xff] %v2665_v28  ;;  %v288_v38 = vmul.f32 %v4515_v29, %v4514_v13  ;;  %v2712_v55 = vadd.f32 %v2527_v8, %v551_v51  ;;  %v2715_v20 = vadd.f32 %v2535_v48, %v554_v35  ;;  %v574_v18 = vmul.f32 %v566_v54, %v2336_v57  ;;  %v4521_v57 = vld [vmem:[#allocation21_spill] sm:$0xff] }
  0xba   :  { %v641_v28 = vrot.slane %v1972_v32, 1  ;;  %v553_v56 = vmul.f32 %v370_v30, %v2179_v44  ;;  %v556_v16 = vmul.f32 %v373_v61, %v2251_v46  ;;  %v2725_v19 = vsel %vm625_vm0, %v621_v17, %v4516_v39 }
  0xbb   :  { %4517 = vst [vmem:[#allocation52_spill] sm:$0xff] %v2725_v19  ;;  %v565_v51 = vmul.f32 2.0, %v2693_v49  ;;  %v555_v8 = vmul.f32 %v372_v12, %v2313_v15  ;;  %v375_v48 = vsel %vm252_vm8, 0.0, %v367_v58  ;;  %v366_v35 = vadd.f32 %v358_v37, %v2452_v47  ;;  %v4522_v19 = vld [vmem:[#allocation48_spill] sm:$0xff] }
  0xbc   :  { %v2701_v4 = vpop.permute.xlu1 %589  ;;  %v2703_v9 = vpop.permute.xlu0 %585  ;;  %v254_v44 = vmul.f32 %v2452_v47, %v1877_v1  ;;  %v263_v54 = vmul.f32 %v2064_v23, %v1893_v5  ;;  %v311_v61 = vadd.f32 %v303_v14, %v295_v50  ;;  %v296_v29 = vadd.f32 %v288_v38, %v280_v6 }
  0xbd   :  { %v304_v15 = vmul.f32 %v2045_v63, %v4489_v60  ;;  %v2743_v12 = vmul.f32 4.0, %v1972_v32  ;;  %v4519_v58 = vrot.slane %v1877_v1, 1  ;;  %v281_v39 = vmul.f32 %v2545_v10, %v1875_v0  ;;  %v4553_v60 = vld [vmem:[#allocation114_spill] sm:$0xff] }
  0xbe   :  { %v289_v62 = vmul.f32 %v4522_v19, %v4521_v57  ;;  %v558_v14 = vmul.f32 %v375_v48, %v2345_v52  ;;  %v4523_v6 = vrot.slane %v1961_v26, 7  ;;  %v4524_v1 = vrot.slane %v1974_v33, 1 }
  0xbf   :  { %4518 = vst [vmem:[#allocation25_spill] sm:$0xff] %v2743_v12  ;;  %v2749_v37 = vsel %vm642_vm1, %v641_v28, %v4519_v58  ;;  %v2769_v38 = vmul.f32 4.0, %v1974_v33  ;;  %v2772_v10 = vadd.f32 %v2592_v25, %v553_v56  ;;  %v2775_v52 = vadd.f32 %v2625_v59, %v556_v16  ;;  %v4528_v58 = vld [vmem:[#allocation93_spill] sm:$0xff]  ;;  %v4537_v12 = vld [vmem:[#allocation20_spill] sm:$0xff] }
  0xc0   :  { %v2734_v30 = vpop.permute.xlu1 %919  ;;  %v2736_v46 = vpop.permute.xlu0 %917  ;;  %4520 = vst [vmem:[#allocation19_spill] sm:$0xff] %v2749_v37  ;;  %v2760_v32 = vsel %vm625_vm0, %v4523_v6, %v621_v17  ;;  %v2766_v63 = vsel %vm642_vm1, %v4524_v1, %v641_v28  ;;  %v573_v26 = vmul.f32 %v565_v51, %v2365_v36  ;;  %v374_v17 = vsel %vm251_vm9, 0.0, %v366_v35  ;;  %v4533_v1 = vld [vmem:[#allocation88_spill] sm:$0xff]  ;;  %v4538_v37 = vld [vmem:[#allocation37_spill] sm:$0xff] }
  0xc1   :  { %4525 = vst [vmem:[#allocation33_spill] sm:$0xff] %v2775_v52  ;;  %v2786_v19 = vadd.f32 %v571_v7, %v555_v8  ;;  %v271_v33 = vadd.f32 %v263_v54, %v254_v44  ;;  %v320_v25 = vmul.f32 %v311_v61, %v2061_v22  ;;  %v312_v56 = vadd.f32 %v304_v15, %v296_v29  ;;  %v4529_v8 = vld [vmem:[#allocation30_spill] sm:$0xff]  ;;  %v4530_v54 = vld [vmem:[#allocation69_spill] sm:$0xff]  ;;  %v4532_v15 = vld [vmem:[#allocation100_spill] sm:$0xff] }
  0xc2   :  { %v255_v59 = vmul.f32 %v2452_v47, %v1885_v3  ;;  %v264_v16 = vmul.f32 %v2064_v23, %v4514_v13  ;;  %v297_v51 = vadd.f32 %v289_v62, %v281_v39  ;;  %v305_v48 = vmul.f32 %v2116_v53, %v4511_v45  ;;  %v4531_v29 = vld [vmem:[#allocation26_spill] sm:$0xff] }
  0xc3   :  { %4526 = vst [vmem:[#allocation21_spill] sm:$0xff] %v2786_v19  ;;  %v2795_v35 = vadd.f32 %v574_v18, %v558_v14  ;;  %v557_v6 = vmul.f32 %v374_v17, %v4528_v58  ;;  %v416_v7 = vmul.f32 %v1893_v5, %v1893_v5  ;;  %v1287_v44 = vrot.slane %v4529_v8, 7 }
  0xc4   :  { %v2782_v50 = vpop.permute.xlu1 %923  ;;  %v2784_v28 = vpop.permute.xlu0 %921  ;;  %v408_v53 = vmul.f32 %v4532_v15, %v4532_v15  ;;  %v328_v14 = vadd.f32 %v320_v25, %v271_v33  ;;  %v409_v5 = vmul.f32 %v4533_v1, %v4533_v1  ;;  %v417_v17 = vmul.f32 %v4514_v13, %v4514_v13  ;;  %v4535_v33 = vld [vmem:[#allocation35_spill] sm:$0xff] }
  0xc5   :  { %4527 = vst [vmem:[#allocation48_spill] sm:$0xff] %v2795_v35  ;;  %v321_v58 = vmul.f32 %v312_v56, %v2061_v22  ;;  %v272_v61 = vadd.f32 %v264_v16, %v255_v59  ;;  %v313_v3 = vadd.f32 %v305_v48, %v297_v51  ;;  %v256_v62 = vmul.f32 %v2452_v47, %v1875_v0  ;;  %v4536_v35 = vld [vmem:[#allocation108_spill] sm:$0xff] }
  0xc6   :  { %v265_v15 = vmul.f32 %v2064_v23, %v4521_v57  ;;  %v2821_v36 = vadd.f32 %v573_v26, %v557_v6  ;;  %v1215_v25 = vmul.f32 2.0, %v4535_v33  ;;  %v282_v1 = vmul.f32 %v4536_v35, %v1883_v2 }
  0xc7   :  { %v290_v13 = vmul.f32 %v4538_v37, %v4537_v12  ;;  %v1231_v56 = vmul.f32 2.0, %v4529_v8  ;;  %v4539_v59 = vrot.slane %v4530_v54, 7  ;;  %v2836_v26 = vmul.f32 4.0, %v4529_v8 }
  0xc8   :  { %v2808_v18 = vpop.permute.xlu1 %927  ;;  %v2810_v39 = vpop.permute.xlu0 %925  ;;  %4534 = vst [vmem:[#allocation93_spill] sm:$0xff] %v2821_v36  ;;  %v424_v16 = vadd.f32 %v416_v7, %v408_v53  ;;  %v4542_v12 = vrot.slane %v4531_v29, 1  ;;  %v4543_v37 = vrot.slane %v4529_v8, 1  ;;  %v425_v35 = vadd.f32 %v417_v17, %v409_v5 }
  0xc9   :  { %v2833_v0 = vsel %vm625_vm0, %v4539_v59, %v1287_v44  ;;  %4541 = vst [vmem:[#allocation100_spill] sm:$0xff] %v2836_v26  ;;  %v1232_v6 = vmul.f32 2.0, %v4531_v29  ;;  %v1288_v33 = vrot.slane %v4531_v29, 7  ;;  %v336_v7 = vsel %vm245_vm3, 0.0, %v328_v14 }
  0xca   :  { %4540 = vst [vmem:[#allocation26_spill] sm:$0xff] %v2833_v0  ;;  %v2849_v48 = vsel %vm642_vm1, %v4543_v37, %v4542_v12  ;;  %v329_v53 = vadd.f32 %v321_v58, %v272_v61  ;;  %v273_v59 = vadd.f32 %v265_v15, %v256_v62  ;;  %v322_v26 = vmul.f32 %v313_v3, %v2061_v22  ;;  %v4546_v0 = vld [vmem:[#allocation27_spill] sm:$0xff]  ;;  %v4547_v12 = vld [vmem:[#allocation38_spill] sm:$0xff] }
  0xcb   :  { %4544 = vst [vmem:[#allocation88_spill] sm:$0xff] %v2849_v48  ;;  %v2857_v54 = vstv %s2801_s9  ;;  %v1216_v8 = vmul.f32 2.0, %v4546_v0  ;;  %v298_v49 = vadd.f32 %v290_v13, %v282_v1  ;;  %v306_v37 = vmul.f32 %v4547_v12, %v4501_v31  ;;  %v4549_v48 = vld [vmem:[#allocation110_spill] sm:$0xff]  ;;  %v4551_v15 = vld [vmem:[#allocation47_spill] sm:$0xff]  ;;  %s1463_s9 = sshll.u32 %s1773_s30, 4  ;;  %s4140_s9 = int_to_ptr.vmem [resolvable:$true] %s1463_s9 }
  0xcc   :  { %v2839_v51 = vpop.permute.xlu1 %931  ;;  %v2841_v2 = vpop.permute.xlu0 %929  ;;  %4545 = vst [vmem:[#allocation35_spill] sm:$0xff] %v2857_v54  ;;  %v1239_v5 = vmul.f32 %v1231_v56, %v424_v16  ;;  %v2862_v17 = vstv %s1376_s10  ;;  %v410_v36 = vmul.f32 %v4549_v48, %v4549_v48  ;;  %v418_v42 = vmul.f32 %v4521_v57, %v4521_v57  ;;  %v4552_v16 = vld [vmem:[#allocation101_spill] sm:$0xff]  ;;  %v1576_v12 = vld [vmem:[#allocation7 + $0x18] sm:$0xff]  ;;  %v1578_v54 = vld [vmem:[#allocation7 + $0x20] sm:$0xff]  ;;  %s1688_s10 = scalar_lea.vmem %s4134_s2, 1024 }
  0xcd   :  { %4548 = vst [vmem:[#allocation108_spill] sm:$0xff] %v2862_v17  ;;  %v1223_v3 = vmul.f32 %v1215_v25, %v336_v7  ;;  %v1240_v14 = vmul.f32 %v1232_v6, %v425_v35  ;;  %v2870_v58 = vsel %vm625_vm0, %v1287_v44, %v1288_v33  ;;  %v1305_v1 = vrot.slane %v4551_v15, 1  ;;  %v1577_v25 = vld [vmem:[#allocation6 + $0x18] sm:$0xff]  ;;  %p1689_p1 = scmp.ne.s32.totalorder %s4134_s2, %s1688_s10  ;;  %p1694_p3 = scmp.lt.s32.totalorder %s1688_s10, %s1688_s10 }
  0xce   :  { %4550 = vst [vmem:[#allocation20_spill] sm:$0xff] %v2870_v58  ;;  %v337_v13 = vsel %vm246_vm2, 0.0, %v329_v53  ;;  %v1233_v56 = vmul.f32 2.0, %v4551_v15  ;;  %v330_v0 = vadd.f32 %v322_v26, %v273_v59  ;;  %v411_v48 = vmul.f32 %v4552_v16, %v4552_v16  ;;  %v4554_v58 = vld [vmem:[#allocation82_spill] sm:$0xff] }
  0xcf   :  { %v314_v57 = vadd.f32 %v306_v37, %v298_v49  ;;  %v419_v17 = vmul.f32 %v1576_v12, %v1576_v12  ;;  %v257_v35 = vmul.f32 %v1577_v25, %v2452_v47  ;;  %v266_v44 = vmul.f32 %v1576_v12, %v2064_v23  ;;  %v4559_v12 = vld [vmem:[#allocation41_spill] sm:$0xff]  ;;  %v4584_v31 = vld [vmem:[#allocation118_spill] sm:$0xff]  ;;  %p1695_p4 = por %p1694_p3, %p1693_p2 }
  0xd0   :  { %v936_v61 = vpop.permute.xlu1 %935  ;;  %v934_v62 = vpop.permute.xlu0 %933  ;;  %v426_v6 = vadd.f32 %v418_v42, %v410_v36  ;;  %v1289_v7 = vrot.slane %v4551_v15, 7  ;;  %v283_v53 = vmul.f32 %v4553_v60, %v1963_v27  ;;  %v291_v26 = vmul.f32 %v1578_v54, %v4554_v58  ;;  %v4558_v36 = vld [vmem:[#allocation50_spill] sm:$0xff] }
  0xd1   :  { %v4555_v49 = vrot.slane %v4531_v29, 1  ;;  %v2891_v16 = vmul.f32 4.0, %v4531_v29  ;;  %v1217_v42 = vmul.f32 2.0, %v4558_v36  ;;  %v1306_v25 = vrot.slane %v4559_v12, 1  ;;  %p1696_p5 = pnand %p1695_p4, %p1689_p1 }
  0xd2   :  { %v2895_v19 = vadd.f32 %v1239_v5, %v1223_v3  ;;  %v1224_v27 = vmul.f32 %v1216_v8, %v337_v13  ;;  %v2898_v58 = vmul.f32 4.0, %v4551_v15  ;;  %v338_v60 = vsel %vm247_vm5, 0.0, %v330_v0  ;;  %v4563_v8 = vld [vmem:[#allocation83_spill] sm:$0xff] }
  0xd3   :  { %v2888_v37 = vsel %vm642_vm1, %v4555_v49, %v1305_v1  ;;  %4557 = vst [vmem:[#allocation27_spill] sm:$0xff] %v2891_v16  ;;  %v427_v52 = vadd.f32 %v419_v17, %v411_v48  ;;  %v1234_v49 = vmul.f32 2.0, %v4559_v12  ;;  %v323_v29 = vmul.f32 %v314_v57, %v2061_v22  ;;  %v4564_v48 = vld [vmem:[#allocation66_spill] sm:$0xff] }
  0xd4   :  { %v940_v59 = vpop.permute.xlu1 %939  ;;  %v938_v41 = vpop.permute.xlu0 %937  ;;  %4556 = vst [vmem:[#allocation37_spill] sm:$0xff] %v2888_v37  ;;  %4560 = vst [vmem:[#allocation38_spill] sm:$0xff] %v2895_v19  ;;  %v274_v37 = vadd.f32 %v266_v44, %v257_v35  ;;  %v1241_v16 = vmul.f32 %v1233_v56, %v426_v6  ;;  %v2906_v36 = vsel %vm625_vm0, %v1288_v33, %v1289_v7  ;;  %v1290_v0 = vrot.slane %v4559_v12, 7  ;;  %v4566_v35 = vld [vmem:[#allocation45_spill] sm:$0xff] }
  0xd5   :  { %4561 = vst [vmem:[#allocation110_spill] sm:$0xff] %v2898_v58  ;;  %4562 = vst [vmem:[#allocation47_spill] sm:$0xff] %v2906_v36  ;;  %v299_v5 = vadd.f32 %v291_v26, %v283_v53  ;;  %v307_v3 = vmul.f32 %v4563_v8, %v2134_v21  ;;  %v982_v15 = vadd.f32 %v936_v61, %v2734_v30  ;;  %v1307_v57 = vrot.slane %v4564_v48, 1  ;;  %v4568_v8 = vld [vmem:[#allocation31_spill] sm:$0xff] }
  0xd6   :  { %v1225_v17 = vmul.f32 %v1217_v42, %v338_v60  ;;  %v2917_v56 = vadd.f32 %v1240_v14, %v1224_v27  ;;  %v2921_v33 = vsel %vm642_vm1, %v1305_v1, %v1306_v25  ;;  %v1218_v44 = vmul.f32 2.0, %v4566_v35  ;;  %v1579_v14 = vld [vmem:[#allocation6 + $0x20] sm:$0xff] }
  0xd7   :  { %4565 = vst [vmem:[#allocation101_spill] sm:$0xff] %v2921_v33  ;;  %v2925_v6 = vmul.f32 4.0, %v4559_v12  ;;  %v981_v30 = vadd.f32 %v934_v62, %v2736_v46  ;;  %v1242_v61 = vmul.f32 %v1234_v49, %v427_v52  ;;  %v331_v53 = vadd.f32 %v323_v29, %v274_v37  ;;  %v4571_v37 = vld [vmem:[#allocation113_spill] sm:$0xff]  ;;  %v1581_v29 = vld [vmem:[#allocation7 + $0x28] sm:$0xff]  ;;  %v4575_v33 = vld [vmem:[#allocation34_spill] sm:$0xff] }
  0xd8   :  { %v2911_v13 = vpop.permute.xlu1 %943  ;;  %v2913_v45 = vpop.permute.xlu0 %941  ;;  %v412_v26 = vmul.f32 %v2609_v43, %v2609_v43  ;;  %v315_v42 = vadd.f32 %v307_v3, %v299_v5  ;;  %v420_v60 = vmul.f32 %v1578_v54, %v1578_v54  ;;  %v258_v27 = vmul.f32 %v1579_v14, %v2452_v47  ;;  %v4572_v5 = vld [vmem:[#allocation60_spill] sm:$0xff]  ;;  %v4574_v14 = vld [vmem:[#allocation90_spill] sm:$0xff] }
  0xd9   :  { %4567 = vst [vmem:[#allocation114_spill] sm:$0xff] %v2925_v6  ;;  %v267_v1 = vmul.f32 %v1578_v54, %v2064_v23  ;;  %v990_v19 = vadd.f32 %v982_v15, %v4568_v8  ;;  %v2935_v12 = vadd.f32 %v1241_v16, %v1225_v17  ;;  %v2939_v46 = vsel %vm625_vm0, %v1289_v7, %v1290_v0  ;;  %v1580_v54 = vld [vmem:[#allocation6 + $0x28] sm:$0xff]  ;;  %v4573_v16 = vld [vmem:[#allocation39_spill] sm:$0xff] }
  0xda   :  { %v2943_v43 = vsel %vm642_vm1, %v1306_v25, %v1307_v57  ;;  %v1235_v62 = vmul.f32 2.0, %v4564_v48  ;;  %v284_v49 = vmul.f32 %v1580_v54, %v4571_v37  ;;  %v292_v3 = vmul.f32 %v1581_v29, %v4572_v5 }
  0xdb   :  { %4569 = vst [vmem:[#allocation82_spill] sm:$0xff] %v2935_v12  ;;  %4570 = vst [vmem:[#allocation50_spill] sm:$0xff] %v2943_v43  ;;  %v989_v15 = vadd.f32 %v981_v30, %v4573_v16  ;;  %v984_v17 = vadd.f32 %v940_v59, %v2782_v50  ;;  %v983_v7 = vadd.f32 %v938_v41, %v2784_v28  ;;  %v339_v25 = vsel %vm248_vm4, 0.0, %v331_v53  ;;  %v4576_v30 = vld [vmem:[#allocation67_spill] sm:$0xff] }
  0xdc   :  { %v948_v35 = vpop.permute.xlu1 %947  ;;  %v2933_v58 = vpop.permute.xlu0 %945  ;;  %v324_v12 = vmul.f32 %v315_v42, %v2061_v22  ;;  %v998_v37 = vadd.f32 %v990_v19, %v4575_v33  ;;  %v2962_v16 = vmul.f32 2.0, %v4576_v30  ;;  %v1291_v41 = vrot.slane %v4564_v48, 7  ;;  %v4577_v50 = vld [vmem:[#allocation59_spill] sm:$0xff]  ;;  %v4580_v19 = vld [vmem:[#allocation40_spill] sm:$0xff] }
  0xdd   :  { %v988_v52 = vadd.f32 %v948_v35, %v2839_v51  ;;  %v428_v51 = vadd.f32 %v420_v60, %v412_v26  ;;  %v275_v35 = vadd.f32 %v267_v1, %v258_v27  ;;  %v1226_v28 = vmul.f32 %v1218_v44, %v339_v25  ;;  %v4579_v26 = vld [vmem:[#allocation61_spill] sm:$0xff]  ;;  %v4581_v60 = vld [vmem:[#allocation46_spill] sm:$0xff]  ;;  %v4585_v25 = vld [vmem:[#allocation32_spill] sm:$0xff] }
  0xde   :  { %v2967_v59 = vmul.f32 4.0, %v4564_v48  ;;  %v300_v53 = vadd.f32 %v292_v3, %v284_v49  ;;  %v308_v42 = vmul.f32 %v4579_v26, %v1993_v40  ;;  %v997_v33 = vadd.f32 %v989_v15, %v4580_v19  ;;  %v4582_v1 = vld [vmem:[#allocation53_spill] sm:$0xff]  ;;  %v4591_v19 = vld [vmem:[#allocation54_spill] sm:$0xff] }
  0xdf   :  { %v996_v8 = vadd.f32 %v988_v52, %v4574_v14  ;;  %v992_v27 = vadd.f32 %v984_v17, %v4581_v60  ;;  %v991_v52 = vadd.f32 %v983_v7, %v4582_v1  ;;  %v4583_v14 = vld [vmem:[#allocation92_spill] sm:$0xff]  ;;  %v2975_v36 = vmul.f32 %v1235_v62, %v428_v51  ;;  %v4589_v51 = vld [vmem:[#allocation63_spill] sm:$0xff]  ;;  %v4592_v1 = vld [vmem:[#allocation58_spill] sm:$0xff] }
  0xe0   :  { %v2957_v6 = vpop.permute.xlu1 %593  ;;  %v2959_v5 = vpop.permute.xlu0 %591  ;;  %4578 = vst [vmem:[#allocation41_spill] sm:$0xff] %v2967_v59  ;;  %v332_v43 = vadd.f32 %v324_v12, %v275_v35  ;;  %v413_v44 = vmul.f32 %v4584_v31, %v4584_v31  ;;  %v421_v48 = vmul.f32 %v1581_v29, %v1581_v29  ;;  %v1014_v49 = vsub.f32 %v998_v37, %v4585_v25  ;;  %v4590_v31 = vld [vmem:[#allocation44_spill] sm:$0xff]  ;;  %v4593_v25 = vld [vmem:[#allocation91_spill] sm:$0xff] }
  0xe1   :  { %v1004_v30 = vadd.f32 %v996_v8, %v4583_v14  ;;  %v2986_v15 = vsel %vm625_vm0, %v1290_v0, %v1291_v41  ;;  %v4586_v17 = vrot.slane %v4577_v50, 1  ;;  %v4325_v12 = vrot.slane %v4577_v50, 7 }
  0xe2   :  { %v2995_v7 = vadd.f32 %v1242_v61, %v1226_v28  ;;  %v316_v8 = vadd.f32 %v308_v42, %v300_v53  ;;  %v2998_v35 = vmul.f32 2.0, %v4589_v51  ;;  %v3001_v37 = vmul.f32 2.0, %v4577_v50  ;;  %v4594_v42 = vld [vmem:[#allocation49_spill] sm:$0xff] }
  0xe3   :  { %v2992_v62 = vsel %vm642_vm1, %v1307_v57, %v4586_v17  ;;  %v1013_v0 = vsub.f32 %v997_v33, %v4590_v31  ;;  %v1000_v60 = vadd.f32 %v992_v27, %v4591_v19  ;;  %v999_v14 = vadd.f32 %v991_v52, %v4592_v1  ;;  %v4598_v19 = vld [vmem:[#allocation102_spill] sm:$0xff] }
  0xe4   :  { %v2980_v3 = vpop.permute.xlu1 %597  ;;  %v2982_v26 = vpop.permute.xlu0 %595  ;;  %4587 = vst [vmem:[#allocation83_spill] sm:$0xff] %v2992_v62  ;;  %4588 = vst [vmem:[#allocation66_spill] sm:$0xff] %v2995_v7  ;;  %v1020_v57 = vsub.f32 %v1004_v30, %v4593_v25  ;;  %v3009_v17 = vsel %vm249_vm7, 0.0, %v332_v43  ;;  %v3011_v61 = vadd.f32 %v421_v48, %v413_v44  ;;  %v259_v28 = vmul.f32 %v1580_v54, %v2452_v47  ;;  %v4599_v1 = vld [vmem:[#allocation106_spill] sm:$0xff]  ;;  %v4612_v7 = vld [vmem:[#allocation107_spill] sm:$0xff] }
  0xe5   :  { %v268_v53 = vmul.f32 %v1581_v29, %v2064_v23  ;;  %v1023_v51 = vmul.f32 %v4594_v42, %v1014_v49  ;;  %v986_v33 = vadd.f32 %v2911_v13, %v2808_v18  ;;  %v985_v27 = vadd.f32 %v2913_v45, %v2810_v39  ;;  %v4595_v29 = vld [vmem:[#allocation68_spill] sm:$0xff]  ;;  %v4596_v39 = vld [vmem:[#allocation55_spill] sm:$0xff]  ;;  %v4597_v45 = vld [vmem:[#allocation62_spill] sm:$0xff] }
  0xe6   :  { %v3024_v21 = vsel %vm625_vm0, %v1291_v41, %v4325_v12  ;;  %v3030_v48 = vmul.f32 %v316_v8, %v2061_v22  ;;  %v1022_v18 = vmul.f32 %v4594_v42, %v1013_v0  ;;  %v1016_v13 = vsub.f32 %v1000_v60, %v4596_v39  ;;  %v4601_v8 = vld [vmem:[#allocation73_spill] sm:$0xff]  ;;  %v4602_v0 = vld [vmem:[#allocation71_spill] sm:$0xff]  ;;  %v4603_v39 = vld [vmem:[#allocation78_spill] sm:$0xff] }
  0xe7   :  { %v1015_v49 = vsub.f32 %v999_v14, %v4597_v45  ;;  %v1029_v31 = vmul.f32 %v4594_v42, %v1020_v57  ;;  %v994_v60 = vadd.f32 %v986_v33, %v4602_v0  ;;  %v993_v14 = vadd.f32 %v985_v27, %v4603_v39  ;;  %v3049_v12 = vld [vmem:[#allocation7 + $0x30] sm:$0xff]  ;;  %v4609_v44 = vld [vmem:[#allocation74_spill] sm:$0xff] }
  0xe8   :  { %v602_v52 = vpop.permute.xlu1 %601  ;;  %v600_v30 = vpop.permute.xlu0 %599  ;;  %4604 = vst [vmem:[#allocation31_spill] sm:$0xff] %v3049_v12  ;;  %v3060_v33 = vsub.f32 %v4609_v44, %v1022_v18  ;;  %v1025_v27 = vmul.f32 %v4594_v42, %v1016_v13  ;;  %v4610_v39 = vld [vmem:[#allocation22_spill] sm:$0xff]  ;;  %v987_v18 = vadd.f32 %v2933_v58, %v2841_v2 }
  0xe9   :  { %v652_v43 = vadd.f32 %v602_v52, %v2703_v9  ;;  %v651_v54 = vadd.f32 %v600_v30, %v2667_v24  ;;  %v276_v9 = vadd.f32 %v268_v53, %v259_v28  ;;  %v3038_v52 = vld [vmem:[#allocation6 + $0x30] sm:$0xff]  ;;  %v3045_v30 = vsub.f32 %v4601_v8, %v1023_v51  ;;  %v4606_v53 = vld [vmem:[#allocation103_spill] sm:$0xff]  ;;  %v4608_v51 = vld [vmem:[#allocation24_spill] sm:$0xff] }
  0xea   :  { %4600 = vst [vmem:[#allocation45_spill] sm:$0xff] %v3038_v52  ;;  %v3042_v24 = vmul.f32 %v3038_v52, %v2621_v11  ;;  %v1024_v0 = vmul.f32 %v4594_v42, %v1015_v49  ;;  %v3065_v59 = vsub.f32 %v4610_v39, %v1029_v31  ;;  %v4617_v31 = vld [vmem:[#allocation105_spill] sm:$0xff]  ;;  %v4620_v58 = vld [vmem:[#allocation126_spill] sm:$0xff] }
  0xeb   :  { %v660_v41 = vadd.f32 %v652_v43, %v4598_v19  ;;  %v659_v25 = vadd.f32 %v651_v54, %v4599_v1  ;;  %v4605_v43 = vld [vmem:[#allocation97_spill] sm:$0xff] }
  0xec   :  { %v606_v45 = vpop.permute.xlu1 %605  ;;  %v604_v57 = vpop.permute.xlu0 %603  ;;  %v3053_v28 = vmul.f32 %v3049_v12, %v4605_v43  ;;  %v4607_v19 = vld [vmem:[#allocation109_spill] sm:$0xff]  ;;  %v4611_v43 = vld [vmem:[#allocation104_spill] sm:$0xff]  ;;  %v4327_v2 = vrot.slane %v3065_v59, 7 }
  0xed   :  { %v668_v54 = vadd.f32 %v660_v41, %v4606_v53  ;;  %v667_v11 = vadd.f32 %v659_v25, %v4607_v19  ;;  %v654_v1 = vadd.f32 %v606_v45, %v2701_v4  ;;  %v653_v8 = vadd.f32 %v604_v57, %v4608_v51  ;;  %v4613_v53 = vld [vmem:[#allocation112_spill] sm:$0xff]  ;;  %v4614_v19 = vld [vmem:[#allocation117_spill] sm:$0xff]  ;;  %v4616_v51 = vld [vmem:[#allocation79_spill] sm:$0xff] }
  0xee   :  { %v4615_v45 = vld [vmem:[#allocation72_spill] sm:$0xff]  ;;  %v1001_v44 = vadd.f32 %v993_v14, %v4616_v51  ;;  %v4328_v14 = vrot.slane %v3060_v33, 7  ;;  %v4623_v51 = vld [vmem:[#allocation94_spill] sm:$0xff] }
  0xef   :  { %v684_v62 = vsub.f32 %v668_v54, %v4611_v43  ;;  %v683_v41 = vsub.f32 %v667_v11, %v4612_v7  ;;  %v662_v25 = vadd.f32 %v654_v1, %v4613_v53  ;;  %v661_v4 = vadd.f32 %v653_v8, %v4614_v19  ;;  %v4618_v7 = vld [vmem:[#allocation116_spill] sm:$0xff]  ;;  %v4619_v1 = vld [vmem:[#allocation119_spill] sm:$0xff] }
  0xf0   :  { %v1002_v57 = vadd.f32 %v994_v60, %v4615_v45  ;;  %v610_v13 = vpop.permute.xlu1 %609  ;;  %v608_v49 = vpop.permute.xlu0 %607  ;;  %v4622_v45 = vld [vmem:[#allocation120_spill] sm:$0xff] }
  0xf1   :  { %v693_v39 = vmul.f32 %v4617_v31, %v684_v62  ;;  %v692_v54 = vmul.f32 %v4617_v31, %v683_v41  ;;  %v670_v11 = vadd.f32 %v662_v25, %v4618_v7  ;;  %v669_v43 = vadd.f32 %v661_v4, %v4619_v1  ;;  %v4621_v62 = vld [vmem:[#allocation111_spill] sm:$0xff]  ;;  %v4624_v7 = vld [vmem:[#allocation29_spill] sm:$0xff] }
  0xf2   :  { %v656_v8 = vadd.f32 %v610_v13, %v2957_v6  ;;  %v655_v60 = vadd.f32 %v608_v49, %v2959_v5  ;;  %v995_v4 = vadd.f32 %v987_v18, %v4623_v51  ;;  %v4625_v13 = vld [vmem:[#allocation23_spill] sm:$0xff] }
  0xf3   :  { %v3085_v53 = vsub.f32 %v4620_v58, %v693_v39  ;;  %v3088_v19 = vsub.f32 %v2712_v55, %v692_v54  ;;  %v686_v41 = vsub.f32 %v670_v11, %v4621_v62  ;;  %v685_v25 = vsub.f32 %v669_v43, %v4622_v45  ;;  %v4627_v39 = vld [vmem:[#allocation77_spill] sm:$0xff]  ;;  %v4629_v58 = vld [vmem:[#allocation124_spill] sm:$0xff]  ;;  %v4630_v45 = vld [vmem:[#allocation127_spill] sm:$0xff] }
  0xf4   :  { %v664_v6 = vadd.f32 %v656_v8, %v4624_v7  ;;  %v663_v5 = vadd.f32 %v655_v60, %v4625_v13  ;;  %v3095_v49 = vpop.permute.xlu1 %613  ;;  %v612_v1 = vpop.permute.xlu0 %611  ;;  %v3103_v55 = vsel %vm625_vm0, %v4327_v2, %v4328_v14  ;;  %v1018_v54 = vsub.f32 %v1002_v57, %v4627_v39  ;;  %v4628_v8 = vld [vmem:[#allocation80_spill] sm:$0xff]  ;;  %v4656_v2 = vld [vmem:[#allocation43_spill] sm:$0xff] }
  0xf5   :  { %4626 = vst [vmem:[#allocation113_spill] sm:$0xff] %v3103_v55  ;;  %v695_v11 = vmul.f32 %v4617_v31, %v686_v41  ;;  %v694_v18 = vmul.f32 %v4617_v31, %v685_v25  ;;  %v657_v43 = vadd.f32 %v612_v1, %v2982_v26  ;;  %719 = vrot.lane.b32.xlu1 %v3085_v53, %s1770_s24  ;;  %v4326_v57 = vrot.slane %v3060_v33, 1 }
  0xf6   :  { %v1017_v60 = vsub.f32 %v1001_v44, %v4628_v8  ;;  %v672_v62 = vadd.f32 %v664_v6, %v4629_v58  ;;  %v671_v51 = vadd.f32 %v663_v5, %v4630_v45  ;;  %717 = vrot.lane.b32.xlu0 %v3088_v19, %s1770_s24  ;;  %v333_v7 = vadd.f32 %v3030_v48, %v276_v9  ;;  %v4632_v44 = vld [vmem:[#allocation96_spill] sm:$0xff]  ;;  %v4633_v6 = vld [vmem:[#allocation122_spill] sm:$0xff]  ;;  %v1575_v9 = vpop.eup %1574 }
  0xf7   :  { %v3118_v41 = vsub.f32 %v2715_v20, %v695_v11  ;;  %v3121_v25 = vsub.f32 %v2772_v10, %v694_v18  ;;  %v665_v26 = vadd.f32 %v657_v43, %v2760_v32  ;;  %v1003_v13 = vadd.f32 %v995_v4, %v4632_v44  ;;  %v4634_v5 = vld [vmem:[#allocation36_spill] sm:$0xff]  ;;  %1513 = vpush %v1575_v9  ;;  %v4639_v44 = vld [vmem:[#allocation33_spill] sm:$0xff] }
  0xf8   :  { %v688_v1 = vsub.f32 %v672_v62, %v4633_v6  ;;  %v687_v39 = vsub.f32 %v671_v51, %v4634_v5  ;;  %v3128_v8 = vpop.permute.xlu1 %1255  ;;  %v3130_v58 = vpop.permute.xlu0 %1257  ;;  %v1096_v20 = vrot.slane %v3045_v30, 1  ;;  %v4635_v11 = vld [vmem:[#allocation76_spill] sm:$0xff]  ;;  %v1027_v32 = vmul.f32 %v4594_v42, %v1018_v54  ;;  %v4638_v51 = vld [vmem:[#allocation95_spill] sm:$0xff] }
  0xf9   :  { %4631 = vst [vmem:[#allocation60_spill] sm:$0xff] %v3118_v41  ;;  %v3134_v45 = vsub.f32 %v4635_v11, %v1025_v27  ;;  %v4636_v10 = vld [vmem:[#allocation84_spill] sm:$0xff]  ;;  %v673_v48 = vadd.f32 %v665_v26, %v2766_v63  ;;  %723 = vrot.lane.b32.xlu1 %v3118_v41, %s1770_s24  ;;  %v1026_v4 = vmul.f32 %v4594_v42, %v1017_v60 }
  0xfa   :  { %v3137_v18 = vsub.f32 %v4636_v10, %v1024_v0  ;;  %v697_v43 = vmul.f32 %v4617_v31, %v688_v1  ;;  %v696_v62 = vmul.f32 %v4617_v31, %v687_v39  ;;  %721 = vrot.lane.b32.xlu0 %v3121_v25, %s1770_s24  ;;  %v3152_v27 = vsel %vm642_vm1, %v4326_v57, %v1096_v20  ;;  %v4641_v1 = vld [vmem:[#allocation21_spill] sm:$0xff] }
  0xfb   :  { %4637 = vst [vmem:[#allocation39_spill] sm:$0xff] %v3152_v27  ;;  %v689_v63 = vsub.f32 %v673_v48, %v2769_v38  ;;  %v1227_v0 = vmul.f32 %v2962_v16, %v3009_v17  ;;  %v1244_v54 = vmul.f32 %v3001_v37, %v3011_v61  ;;  %v301_v60 = vadd.f32 %v3053_v28, %v3042_v24  ;;  %v4643_v16 = vld [vmem:[#allocation65_spill] sm:$0xff]  ;;  %v4644_v17 = vld [vmem:[#allocation98_spill] sm:$0xff]  ;;  %v4647_v48 = vld [vmem:[#allocation115_spill] sm:$0xff] }
  0xfc   :  { %v1019_v26 = vsub.f32 %v1003_v13, %v4638_v51  ;;  %v3163_v6 = vsub.f32 %v4639_v44, %v697_v43  ;;  %v3166_v5 = vsub.f32 %v4641_v1, %v696_v62  ;;  %v3168_v39 = vpop.permute.xlu1 %1259  ;;  %v3170_v38 = vpop.permute.xlu0 %1261  ;;  %v309_v11 = vmul.f32 %v4644_v17, %v4643_v16  ;;  %v4645_v13 = vld [vmem:[#allocation99_spill] sm:$0xff]  ;;  %v4700_v16 = vld [vmem:[#allocation30_spill] sm:$0xff] }
  0xfd   :  { %v698_v37 = vmul.f32 %v4617_v31, %v689_v63  ;;  %v341_v61 = vsel %vm250_vm6, 0.0, %v333_v7  ;;  %v1080_v24 = vrot.slane %v3045_v30, 7  ;;  %v1081_v28 = vrot.slane %v3137_v18, 7  ;;  %v4648_v7 = vld [vmem:[#allocation93_spill] sm:$0xff]  ;;  %v3194_v63 = vld [vmem:[#allocation6 + $0x38] sm:$0xff]  ;;  %v4653_v44 = vld [vmem:[#allocation87_spill] sm:$0xff] }
  0xfe   :  { %4640 = vst [vmem:[#allocation90_spill] sm:$0xff] %v3163_v6  ;;  %4642 = vst [vmem:[#allocation34_spill] sm:$0xff] %v3166_v5  ;;  %v3180_v10 = vsub.f32 %v4645_v13, %v1027_v32  ;;  %v3183_v9 = vsub.f32 %v4647_v48, %v1026_v4  ;;  %727 = vrot.lane.b32.xlu1 %v3163_v6, %s1770_s24  ;;  %725 = vrot.lane.b32.xlu0 %v3166_v5, %s1770_s24  ;;  %v1097_v43 = vrot.slane %v3137_v18, 1  ;;  %v4651_v32 = vld [vmem:[#allocation121_spill] sm:$0xff]  ;;  %v3198_v4 = vld [vmem:[#allocation7 + $0x38] sm:$0xff] }
  0xff   :  { %v1098_v40 = vrot.slane %v3134_v45, 1  ;;  %v3192_v62 = vsub.f32 %v4648_v7, %v698_v37  ;;  %4650 = vst [vmem:[#allocation61_spill] sm:$0xff] %v3194_v63  ;;  %v286_v51 = vmul.f32 %v3194_v63, %v4651_v32  ;;  %4652 = vst [vmem:[#allocation40_spill] sm:$0xff] %v3198_v4  ;;  %v294_v1 = vmul.f32 %v3198_v4, %v4653_v44  ;;  %v475_v5 = vld [vmem:[%s4229_s4 + $0x8] sm:$0xff] }
 0x100   :  { %4646 = vst [vmem:[#allocation67_spill] sm:$0xff] %v3180_v10  ;;  %v3204_v17 = vsel %vm625_vm0, %v1080_v24, %v1081_v28  ;;  %v1028_v13 = vmul.f32 %v4594_v42, %v1019_v26  ;;  %v3207_v48 = vpop.permute.xlu1 %1263  ;;  %v3209_v37 = vpop.permute.xlu0 %1265  ;;  %v1228_v7 = vmul.f32 %v2998_v35, %v341_v61  ;;  %v317_v57 = vadd.f32 %v309_v11, %v301_v60  ;;  %v4660_v26 = vld [vmem:[#allocation57_spill] sm:$0xff] }
 0x101   :  { %4649 = vst [vmem:[#allocation59_spill] sm:$0xff] %v3192_v62  ;;  %4654 = vst [vmem:[#allocation46_spill] sm:$0xff] %v3204_v17  ;;  %v3214_v32 = vsel %vm642_vm1, %v1097_v43, %v1098_v40  ;;  %v414_v44 = vmul.f32 %v4656_v2, %v4656_v2  ;;  %v422_v14 = vmul.f32 %v3049_v12, %v3049_v12  ;;  %v4657_v17 = vrot.slane %v3060_v33, 7  ;;  %v4661_v11 = vld [vmem:[#allocation89_spill] sm:$0xff] }
 0x102   :  { %4655 = vst [vmem:[#allocation53_spill] sm:$0xff] %v3214_v32  ;;  %v3228_v35 = vsel %vm642_vm1, %v1096_v20, %v1097_v43  ;;  %1047 = vrot.lane.b32.xlu1 %v3060_v33, %s1770_s24  ;;  %729 = vrot.lane.b32.xlu0 %v3192_v62, %s1770_s24  ;;  %v260_v2 = vmul.f32 %v3038_v52, %v2452_v47  ;;  %v1083_v20 = vrot.slane %v3183_v9, 7  ;;  %v1099_v43 = vrot.slane %v3183_v9, 1  ;;  %v4662_v32 = vld [vmem:[#allocation123_spill] sm:$0xff]  ;;  %v3264_v52 = vld [vmem:[#allocation9 + $0x28] sm:$0xff] }
 0x103   :  { %v3224_v42 = vsel %vm625_vm0, %v4657_v17, %v1080_v24  ;;  %4659 = vst [vmem:[#allocation118_spill] sm:$0xff] %v3228_v35  ;;  %v269_v60 = vmul.f32 %v3049_v12, %v2064_v23  ;;  %v310_v61 = vmul.f32 %v4661_v11, %v4660_v26  ;;  %v1082_v24 = vrot.slane %v3134_v45, 7  ;;  %v503_v26 = vld [vmem:[%s4230_s5 + $0x20] sm:$0xff] }
 0x104   :  { %4658 = vst [vmem:[#allocation92_spill] sm:$0xff] %v3224_v42  ;;  %v302_v17 = vadd.f32 %v294_v1, %v286_v51  ;;  %v1100_v35 = vrot.slane %v3180_v10, 1  ;;  %v3247_v42 = vsub.f32 %v4662_v32, %v1028_v13  ;;  %v3249_v27 = vpop.permute.xlu1 %1267  ;;  %v3251_v55 = vpop.permute.xlu0 %1269  ;;  %v3254_v11 = vadd.f32 %v2975_v36, %v1227_v0 }
 0x105   :  { %4664 = vst [vmem:[#allocation63_spill] sm:$0xff] %v3249_v27  ;;  %4665 = vst [vmem:[#allocation44_spill] sm:$0xff] %v3251_v55  ;;  %v4667_v51 = vrot.slane %v4595_v29, 1  ;;  %v4668_v1 = vrot.slane %v4577_v50, 1  ;;  %v3267_v13 = vmul.f32 4.0, %v3264_v52  ;;  %v3269_v32 = vadd.f32 %v1244_v54, %v1228_v7 }
 0x106   :  { %4663 = vst [vmem:[#allocation32_spill] sm:$0xff] %v3247_v42  ;;  %4666 = vst [vmem:[#allocation54_spill] sm:$0xff] %v3254_v11  ;;  %v430_v62 = vadd.f32 %v422_v14, %v414_v44  ;;  %v3275_v36 = vsel %vm625_vm0, %v1082_v24, %v1083_v20  ;;  %v3279_v0 = vsel %vm642_vm1, %v1099_v43, %v1100_v35  ;;  %1051 = vrot.lane.b32.xlu1 %v3137_v18, %s1770_s24  ;;  %v4673_v14 = vld [vmem:[#allocation85_spill] sm:$0xff] }
 0x107   :  { %v3262_v12 = vsel %vm642_vm1, %v4668_v1, %v4667_v51  ;;  %4669 = vst [vmem:[#allocation58_spill] sm:$0xff] %v3267_v13  ;;  %4670 = vst [vmem:[#allocation91_spill] sm:$0xff] %v3269_v32  ;;  %v658_v51 = vadd.f32 %v3095_v49, %v2980_v3  ;;  %1049 = vrot.lane.b32.xlu0 %v3045_v30, %s1770_s24  ;;  %v3288_v54 = vmul.f32 2.0, %v4673_v14  ;;  %v3298_v1 = vld [vmem:[#allocation9 + $0x30] sm:$0xff]  ;;  %v1084_v14 = vrot.slane %v3180_v10, 7 }
 0x108   :  { %4671 = vst [vmem:[#allocation49_spill] sm:$0xff] %v3275_v36  ;;  %4672 = vst [vmem:[#allocation68_spill] sm:$0xff] %v3279_v0  ;;  %v3292_v7 = vsel %vm625_vm0, %v1081_v28, %v1082_v24  ;;  %v3296_v44 = vsel %vm642_vm1, %v1098_v40, %v1099_v43  ;;  %v1237_v3 = vmul.f32 2.0, %v3298_v1  ;;  %v277_v49 = vadd.f32 %v269_v60, %v260_v2  ;;  %v1274_v11 = vpop.permute.xlu0 %1273  ;;  %v4676_v60 = vld [vmem:[#allocation52_spill] sm:$0xff] }
 0x109   :  { %4674 = vst [vmem:[#allocation55_spill] sm:$0xff] %v3292_v7  ;;  %4675 = vst [vmem:[#allocation62_spill] sm:$0xff] %v3296_v44  ;;  %v326_v0 = vmul.f32 %v317_v57, %v2061_v22  ;;  %v318_v36 = vadd.f32 %v310_v61, %v302_v17  ;;  %v1085_v28 = vrot.slane %v3247_v42, 7  ;;  %v1101_v24 = vrot.slane %v3247_v42, 1  ;;  %v1272_v17 = vpop.permute.xlu1 %1271  ;;  %v3319_v7 = vld [vmem:[#allocation9 + $0x38] sm:$0xff] }
 0x10a   :  { %v1102_v40 = vrot.slane %v3065_v59, 1  ;;  %v1320_v43 = vadd.f32 %v1274_v11, %v3130_v58  ;;  %v1293_v44 = vrot.slane %v3298_v1, 7  ;;  %v261_v57 = vmul.f32 %v3194_v63, %v2452_v47  ;;  %1055 = vrot.lane.b32.xlu1 %v3183_v9, %s1770_s24  ;;  %v4679_v11 = vld [vmem:[#allocation20_spill] sm:$0xff] }
 0x10b   :  { %v270_v2 = vmul.f32 %v3198_v4, %v2064_v23  ;;  %v666_v61 = vadd.f32 %v658_v51, %v4676_v60  ;;  %1053 = vrot.lane.b32.xlu0 %v3134_v45, %s1770_s24  ;;  %v1310_v58 = vrot.slane %v3319_v7, 1  ;;  %v3324_v47 = vsel %vm625_vm0, %v1084_v14, %v1085_v28  ;;  %v4680_v60 = vld [vmem:[#allocation125_spill] sm:$0xff] }
 0x10c   :  { %4677 = vst [vmem:[#allocation102_spill] sm:$0xff] %v3324_v47  ;;  %v3328_v23 = vsel %vm642_vm1, %v1101_v24, %v1102_v40  ;;  %v1328_v51 = vadd.f32 %v1320_v43, %v4679_v11  ;;  %v415_v63 = vmul.f32 %v4680_v60, %v4680_v60  ;;  %v423_v32 = vmul.f32 %v3198_v4, %v3198_v4  ;;  %v1278_v41 = vpop.permute.xlu0 %1277  ;;  %v4683_v60 = vld [vmem:[#allocation37_spill] sm:$0xff] }
 0x10d   :  { %4678 = vst [vmem:[#allocation106_spill] sm:$0xff] %v3328_v23  ;;  %v3336_v6 = vstv %s3241_s11  ;;  %v334_v47 = vadd.f32 %v326_v0, %v277_v49  ;;  %v327_v13 = vmul.f32 %v318_v36, %v2061_v22  ;;  %v3344_v23 = vsel %vm625_vm0, %v1083_v20, %v1084_v14  ;;  %v500_v22 = vld [vmem:[%s4230_s5 + $0x8] sm:$0xff]  ;;  %v4684_v36 = vld [vmem:[#allocation19_spill] sm:$0xff] }
 0x10e   :  { %4681 = vst [vmem:[#allocation73_spill] sm:$0xff] %v3344_v23  ;;  %v3348_v43 = vsel %vm642_vm1, %v1100_v35, %v1101_v24  ;;  %v1319_v11 = vadd.f32 %v1272_v17, %v3128_v8  ;;  %v1336_v4 = vadd.f32 %v1328_v51, %v4683_v60  ;;  %v278_v27 = vadd.f32 %v270_v2, %v261_v57  ;;  %v3363_v35 = vld [vmem:[#allocation9 + $0x8] sm:$0xff]  ;;  %v4687_v49 = vld [vmem:[#allocation27_spill] sm:$0xff] }
 0x10f   :  { %4682 = vst [vmem:[#allocation71_spill] sm:$0xff] %v3348_v43  ;;  %v3353_v55 = vstv %s3271_s29  ;;  %v674_v0 = vadd.f32 %v666_v61, %v4684_v36  ;;  %1059 = vrot.lane.b32.xlu1 %v3247_v42, %s1770_s24  ;;  %1057 = vrot.lane.b32.xlu0 %v3180_v10, %s1770_s24  ;;  %vm467_vm10 = vcmp.ge.f32.partialorder %v3363_v35, 0.8  ;;  %vm484_vm11 = vcmp.gt.f32.partialorder %v475_v5, %v3336_v6  ;;  %v1276_v36 = vpop.permute.xlu1 %1275  ;;  %v501_v5 = vld [vmem:[%s4230_s5 + $0x10] sm:$0xff] }
 0x110   :  { %v4685_v8 = vrot.slane %v3065_v59, 7  ;;  %v1352_v14 = vsub.f32 %v1336_v4, %v4687_v49  ;;  %v1322_v24 = vadd.f32 %v1278_v41, %v3170_v38  ;;  %v3375_v57 = vmul.f32 %v1237_v3, %v430_v62  ;;  %v476_v41 = vld [vmem:[%s4229_s4 + $0x10] sm:$0xff]  ;;  %v4692_v4 = vld [vmem:[#allocation26_spill] sm:$0xff]  ;;  %vm3411_vm12 = vmor %vm467_vm10, %vm484_vm11 }
 0x111   :  { %v3378_v2 = vmul.f32 4.0, %v3298_v1  ;;  %v4688_v61 = vrot.slane %v4577_v50, 7  ;;  %v4689_v51 = vrot.slane %v4595_v29, 1  ;;  %v509_v38 = vmul.f32 %v3353_v55, %v500_v22  ;;  %v4693_v29 = vld [vmem:[#allocation35_spill] sm:$0xff] }
 0x112   :  { %v3371_v20 = vsel %vm625_vm0, %v1085_v28, %v4685_v8  ;;  %v4690_v62 = vrot.slane %v3060_v33, 1  ;;  %v1327_v3 = vadd.f32 %v1319_v11, %v4692_v4  ;;  %v1361_v60 = vmul.f32 %v4693_v29, %v1352_v14  ;;  %v4694_v8 = vld [vmem:[#allocation75_spill] sm:$0xff] }
 0x113   :  { %4686 = vst [vmem:[#allocation78_spill] sm:$0xff] %v3371_v20  ;;  %v3384_v17 = vsel %vm625_vm0, %v4688_v61, %v1293_v44  ;;  %v3390_v28 = vsel %vm642_vm1, %v4689_v51, %v1310_v58  ;;  %v1222_v49 = vmul.f32 2.0, %v4694_v8  ;;  %v1238_v61 = vmul.f32 2.0, %v3319_v7  ;;  %v4697_v51 = vld [vmem:[#allocation25_spill] sm:$0xff]  ;;  %1063 = vrot.lane.b32.xlu1 %v3060_v33, %s1771_s3  ;;  %1061 = vrot.lane.b32.xlu0 %v3065_v59, %s1770_s24 }
 0x114   :  { %v3401_v50 = vsel %vm642_vm1, %v1102_v40, %v4690_v62  ;;  %v690_v40 = vsub.f32 %v674_v0, %v4697_v51  ;;  %v342_v11 = vsel %vm251_vm9, 0.0, %v334_v47  ;;  %v431_v14 = vadd.f32 %v423_v32, %v415_v63  ;;  %v4698_v8 = vld [vmem:[#allocation69_spill] sm:$0xff]  ;;  %v4702_v47 = vld [vmem:[#allocation88_spill] sm:$0xff] }
 0x115   :  { %4691 = vst [vmem:[#allocation97_spill] sm:$0xff] %v3401_v50  ;;  %v335_v62 = vadd.f32 %v327_v13, %v278_v27  ;;  %v1330_v4 = vadd.f32 %v1322_v24, %v2939_v46  ;;  %v4699_v50 = vrot.slane %v4698_v8, 7  ;;  %v3432_v51 = vld [vmem:[#allocation9 + $0x10] sm:$0xff]  ;;  %vm485_vm14 = vcmp.gt.f32.partialorder %v476_v41, %v3336_v6  ;;  %v502_v41 = vld [vmem:[%s4230_s5 + $0x18] sm:$0xff]  ;;  %v4709_v8 = vld [vmem:[#allocation100_spill] sm:$0xff] }
 0x116   :  { %vm468_vm13 = vcmp.ge.f32.partialorder %v3432_v51, 0.8  ;;  %v1321_v27 = vadd.f32 %v1276_v36, %v3168_v39  ;;  %v4701_v63 = vrot.slane %v4700_v16, 1  ;;  %v3443_v46 = vstv %s533_s20  ;;  %v477_v36 = vld [vmem:[%s4229_s4 + $0x18] sm:$0xff] }
 0x117   :  { %v3430_v0 = vsel %vm625_vm0, %v1293_v44, %v4699_v50  ;;  %v517_v32 = vsel %vm3411_vm12, 0.0, %v509_v38  ;;  %v478_v44 = vld [vmem:[%s4229_s4 + $0x20] sm:$0xff]  ;;  %v1335_v24 = vadd.f32 %v1327_v3, %v4702_v47  ;;  %v1369_v39 = vsub.f32 %v2917_v56, %v1361_v60  ;;  %1067 = vrot.lane.b32.xlu1 %v3137_v18, %s1771_s3  ;;  %1065 = vrot.lane.b32.xlu0 %v3045_v30, %s1771_s3  ;;  %v1282_v38 = vpop.permute.xlu0 %1281  ;;  %vm3472_vm15 = vmor %vm468_vm13, %vm485_vm14  ;;  %v4705_v60 = vld [vmem:[#allocation50_spill] sm:$0xff] }
 0x118   :  { %v3441_v13 = vsel %vm642_vm1, %v1310_v58, %v4701_v63  ;;  %v3453_v50 = vmul.f32 %v3288_v54, %v342_v11  ;;  %v510_v58 = vmul.f32 %v3353_v55, %v501_v5  ;;  %v699_v22 = vmul.f32 %v4617_v31, %v690_v40  ;;  %v3494_v5 = vld [vmem:[#allocation9 + $0x18] sm:$0xff]  ;;  %v4710_v63 = vld [vmem:[#allocation108_spill] sm:$0xff] }
 0x119   :  { %v3464_v3 = vmul.f32 %v1238_v61, %v431_v14  ;;  %v343_v56 = vsel %vm252_vm8, 0.0, %v335_v62  ;;  %v3477_v31 = vstv %s3302_s12  ;;  %v1338_v40 = vadd.f32 %v1330_v4, %v4705_v60  ;;  %v3483_v61 = vld [vmem:[#allocation9 + $0x20] sm:$0xff]  ;;  %v4714_v54 = vld [vmem:[#allocation114_spill] sm:$0xff] }
 0x11a   :  { %v3481_v11 = vmul.f32 %v3443_v46, %v517_v32  ;;  %vm470_vm2 = vcmp.ge.f32.partialorder %v3483_v61, 0.8  ;;  %vm487_vm3 = vcmp.gt.f32.partialorder %v478_v44, %v3336_v6  ;;  %v4707_v14 = vld [vmem:[#allocation47_spill] sm:$0xff]  ;;  %vm469_vm4 = vcmp.ge.f32.partialorder %v3494_v5, 0.8 }
 0x11b   :  { %v1329_v62 = vadd.f32 %v1321_v27, %v4707_v14  ;;  %vm486_vm5 = vcmp.gt.f32.partialorder %v477_v36, %v3336_v6  ;;  %v3499_v4 = vmul.f32 %v3477_v31, %v517_v32  ;;  %v1351_v16 = vsub.f32 %v1335_v24, %v4709_v8  ;;  %1071 = vrot.lane.b32.xlu1 %v3183_v9, %s1771_s3  ;;  %v1280_v27 = vpop.permute.xlu1 %1279  ;;  %vm3521_vm6 = vmor %vm470_vm2, %vm487_vm3  ;;  %v479_v36 = vld [vmem:[%s4229_s4 + $0x28] sm:$0xff] }
 0x11c   :  { %4706 = vst [vmem:[#allocation103_spill] sm:$0xff] %v3481_v11  ;;  %v1379_v47 = vmul.f32 %v4710_v63, %v1369_v39  ;;  %v1324_v60 = vadd.f32 %v1282_v38, %v3209_v37  ;;  %v3506_v20 = vsel %vm3472_vm15, 0.0, %v510_v58  ;;  %1069 = vrot.lane.b32.xlu0 %v3134_v45, %s1771_s3  ;;  %v3513_v32 = vmul.f32 4.0, %v3319_v7  ;;  %v4713_v58 = vld [vmem:[#allocation48_spill] sm:$0xff]  ;;  %vm3535_vm7 = vmor %vm469_vm4, %vm486_vm5 }
 0x11d   :  { %4708 = vst [vmem:[#allocation109_spill] sm:$0xff] %v3499_v4  ;;  %v3515_v14 = vmul.f32 %v1222_v49, %v343_v56  ;;  %v512_v24 = vmul.f32 %v3353_v55, %v503_v26  ;;  %v511_v39 = vmul.f32 %v3353_v55, %v502_v41  ;;  %v3528_v38 = vsub.f32 %v4713_v58, %v699_v22  ;;  %v4717_v26 = vld [vmem:[#allocation101_spill] sm:$0xff] }
 0x11e   :  { %v1354_v8 = vsub.f32 %v1338_v40, %v4714_v54  ;;  %v544_v44 = vsub.f32 %v3499_v4, %v3481_v11  ;;  %v749_v56 = vrot.slane %v3088_v19, 7  ;;  %v1337_v41 = vadd.f32 %v1329_v62, %v4717_v26  ;;  %v474_v62 = vld [vmem:[%s4229_s4] sm:$0xff] }
 0x11f   :  { %v3545_v22 = vmul.f32 %v3443_v46, %v3506_v20  ;;  %v4348_v40 = vrot.slane %v3121_v25, 1  ;;  %v4347_v58 = vrot.slane %v3085_v53, 7  ;;  %v1360_v54 = vmul.f32 %v4693_v29, %v1351_v16  ;;  %1075 = vrot.lane.b32.xlu1 %v3247_v42, %s1771_s3  ;;  %v3569_v16 = vld [vmem:[#allocation9] sm:$0xff]  ;;  %v1284_v49 = vpop.permute.xlu1 %1283 }
 0x120   :  { %v1323_v4 = vadd.f32 %v1280_v27, %v3207_v48  ;;  %v1332_v43 = vadd.f32 %v1324_v60, %v3024_v21  ;;  %v1387_v23 = vadd.f32 %v1379_v47, %v544_v44  ;;  %1073 = vrot.lane.b32.xlu0 %v3180_v10, %s1771_s3  ;;  %v3564_v26 = vsel %vm3521_vm6, 0.0, %v512_v24  ;;  %v499_v47 = vld [vmem:[%s4230_s5] sm:$0xff]  ;;  %v1286_v27 = vpop.permute.xlu0 %1285  ;;  %v4719_v24 = vld [vmem:[#allocation110_spill] sm:$0xff]  ;;  %v504_v44 = vld [vmem:[%s4230_s5 + $0x28] sm:$0xff] }
 0x121   :  { %v519_v48 = vsel %vm3535_vm7, 0.0, %v511_v39  ;;  %v766_v21 = vrot.slane %v3085_v53, 1  ;;  %vm466_vm8 = vcmp.ge.f32.partialorder %v3569_v16, 0.8  ;;  %v1363_v60 = vmul.f32 %v4693_v29, %v1354_v8  ;;  %v4721_v10 = vld [vmem:[#allocation38_spill] sm:$0xff] }
 0x122   :  { %vm471_vm9 = vcmp.ge.f32.partialorder %v3264_v52, 0.8  ;;  %vm488_vm10 = vcmp.gt.f32.partialorder %v479_v36, %v3336_v6  ;;  %v3582_v37 = vsel %vm625_vm0, %v749_v56, %v4347_v58  ;;  %v1353_v39 = vsub.f32 %v1337_v41, %v4719_v24 }
 0x123   :  { %4718 = vst [vmem:[#allocation24_spill] sm:$0xff] %v3582_v37  ;;  %v3592_v8 = vsel %vm642_vm1, %v766_v21, %v4348_v40  ;;  %v1395_v11 = vmul.f32 0.01, %v1387_v23  ;;  %vm483_vm11 = vcmp.gt.f32.partialorder %v474_v62, %v3336_v6  ;;  %v1368_v42 = vsub.f32 %v4721_v10, %v1360_v54  ;;  %731 = vrot.lane.b32.xlu1 %v3528_v38, %s1770_s24  ;;  %v4722_v23 = vld [vmem:[#allocation44_spill] sm:$0xff]  ;;  %vm496_vm13 = vmor %vm471_vm9, %vm488_vm10 }
 0x124   :  { %4720 = vst [vmem:[#allocation74_spill] sm:$0xff] %v3592_v8  ;;  %v1331_v58 = vadd.f32 %v1323_v4, %v2986_v15  ;;  %v1340_v41 = vadd.f32 %v1332_v43, %v3262_v12  ;;  %vm491_vm12 = vmor %vm466_vm8, %vm483_vm11  ;;  %v508_v24 = vmul.f32 %v3353_v55, %v499_v47  ;;  %1077 = vrot.lane.b32.xlu0 %v3065_v59, %s1771_s3  ;;  %v4350_v10 = vrot.slane %v3528_v38, 7  ;;  %v4723_v12 = vld [vmem:[#allocation66_spill] sm:$0xff]  ;;  %v4724_v4 = vld [vmem:[#allocation63_spill] sm:$0xff] }
 0x125   :  { %v1326_v40 = vadd.f32 %v1286_v27, %v4722_v23  ;;  %v1403_v62 = vadd.f32 %v3363_v35, %v1395_v11  ;;  %v4349_v15 = vrot.slane %v3088_v19, 1  ;;  %v1371_v43 = vsub.f32 %v4723_v12, %v1363_v60  ;;  %v3619_v27 = vld [vmem:[%s4229_s4 + $0x30] sm:$0xff]  ;;  %v4727_v23 = vld [vmem:[#allocation83_spill] sm:$0xff] }
 0x126   :  { %v1325_v54 = vadd.f32 %v1284_v49, %v4724_v4  ;;  %v3612_v47 = vmul.f32 %v3443_v46, %v519_v48  ;;  %v513_v8 = vmul.f32 %v3353_v55, %v504_v44  ;;  %v1362_v37 = vmul.f32 %v4693_v29, %v1353_v39  ;;  %v4728_v44 = vld [vmem:[#allocation58_spill] sm:$0xff] }
 0x127   :  { %v1411_v35 = vmax.f32 %v1403_v62, 0.0  ;;  %v516_v11 = vsel %vm491_vm12, 0.0, %v508_v24  ;;  %v3625_v60 = vsel %vm625_vm0, %v4350_v10, %v749_v56  ;;  %v1378_v49 = vmul.f32 %v4710_v63, %v1368_v42  ;;  %v481_v39 = vld [vmem:[%s4229_s4 + $0x38] sm:$0xff]  ;;  %735 = vrot.lane.b32.xlu1 %v3085_v53, %s1771_s3 }
 0x128   :  { %4725 = vst [vmem:[#allocation22_spill] sm:$0xff] %v3612_v47  ;;  %4726 = vst [vmem:[#allocation104_spill] sm:$0xff] %v3625_v60  ;;  %v1339_v12 = vadd.f32 %v1331_v58, %v4727_v23  ;;  %v1356_v4 = vsub.f32 %v1340_v41, %v4728_v44  ;;  %v3638_v24 = vmul.f32 %v3477_v31, %v516_v11  ;;  %733 = vrot.lane.b32.xlu0 %v3088_v19, %s1771_s3  ;;  %s3878_s25 = spop %1513 }
 0x129   :  { %v1334_v42 = vadd.f32 %v1326_v40, %v3430_v0  ;;  %v1419_v56 = vmin.f32 %v1411_v35, 1.0  ;;  %v3646_v36 = vmul.f32 %v3443_v46, %v516_v11  ;;  %v3652_v58 = vsel %vm642_vm1, %v4349_v15, %v766_v21  ;;  %v4732_v40 = vld [vmem:[#allocation82_spill] sm:$0xff]  ;;  %s99_s26 = smul.f32 %s3878_s25, %s3863_s1 }
 0x12a   :  { %4729 = vst [vmem:[#allocation107_spill] sm:$0xff] %v3638_v24  ;;  %4730 = vst [vmem:[#allocation112_spill] sm:$0xff] %v3652_v58  ;;  %v1381_v41 = vmul.f32 %v4710_v63, %v1371_v43  ;;  %v1333_v62 = vadd.f32 %v1325_v54, %v3384_v17  ;;  %vm489_vm14 = vcmp.gt.f32.partialorder %v3619_v27, %v3336_v6  ;;  %v751_v0 = vrot.slane %v3121_v25, 7  ;;  %v506_v17 = vld [vmem:[%s4230_s5 + $0x38] sm:$0xff]  ;;  %v4733_v43 = vld [vmem:[#allocation60_spill] sm:$0xff]  ;;  %s100_s27 = smul.f32 %s3878_s25, %s3867_s23 }
 0x12b   :  { %v3659_v23 = vmul.f32 %v3477_v31, %v519_v48  ;;  %v1370_v35 = vsub.f32 %v4732_v40, %v1362_v37  ;;  %v521_v11 = vsel %vm496_vm13, 0.0, %v513_v8  ;;  %vm490_vm15 = vcmp.gt.f32.partialorder %v481_v39, %v3336_v6  ;;  %1427 = vst [vmem:[#allocation13 + $0x8] sm:$0xff] %v1419_v56  ;;  %739 = vrot.lane.b32.xlu1 %v4733_v43, %s1771_s3  ;;  %v4734_v8 = vld [vmem:[#allocation41_spill] sm:$0xff]  ;;  %v4735_v15 = vld [vmem:[#allocation34_spill] sm:$0xff] }
 0x12c   :  { %v543_v21 = vsub.f32 %v3638_v24, %v3646_v36  ;;  %vm473_vm2 = vcmp.ge.f32.partialorder %v3319_v7, 0.8  ;;  %v752_v54 = vrot.slane %v4733_v43, 7  ;;  %v768_v37 = vrot.slane %v4733_v43, 1  ;;  %737 = vrot.lane.b32.xlu0 %v3121_v25, %s1771_s3 }
 0x12d   :  { %4731 = vst [vmem:[#allocation117_spill] sm:$0xff] %v3659_v23  ;;  %v546_v48 = vsub.f32 %v3659_v23, %v3612_v47  ;;  %v1355_v44 = vsub.f32 %v1339_v12, %v4734_v8  ;;  %v1365_v56 = vmul.f32 %v4693_v29, %v1356_v4  ;;  %v1342_v40 = vadd.f32 %v1334_v42, %v3441_v13  ;;  %vm3729_vm4 = vmor %vm473_vm2, %vm490_vm15 }
 0x12e   :  { %v769_v10 = vrot.slane %v4735_v15, 1  ;;  %v1341_v23 = vadd.f32 %v1333_v62, %v3390_v28  ;;  %v1386_v24 = vadd.f32 %v1378_v49, %v543_v21  ;;  %v3687_v58 = vsel %vm625_vm0, %v751_v0, %v752_v54  ;;  %v4743_v21 = vld [vmem:[#allocation90_spill] sm:$0xff] }
 0x12f   :  { %4736 = vst [vmem:[#allocation72_spill] sm:$0xff] %v3687_v58  ;;  %v1389_v60 = vadd.f32 %v1381_v41, %v546_v48  ;;  %v1380_v47 = vmul.f32 %v4710_v63, %v1370_v35  ;;  %v515_v12 = vmul.f32 %v3353_v55, %v506_v17  ;;  %v3699_v28 = vmul.f32 %v3477_v31, %v3506_v20 }
 0x130   :  { %v3695_v13 = vsel %vm642_vm1, %v768_v37, %v769_v10  ;;  %v1394_v49 = vmul.f32 0.01, %v1386_v24  ;;  %v4739_v42 = vrot.slane %v3085_v53, 7  ;;  %v4741_v62 = vrot.slane %v3121_v25, 1  ;;  %743 = vrot.lane.b32.xlu1 %v4743_v21, %s1771_s3  ;;  %741 = vrot.lane.b32.xlu0 %v4735_v15, %s1771_s3 }
 0x131   :  { %4737 = vst [vmem:[#allocation79_spill] sm:$0xff] %v3695_v13  ;;  %4738 = vst [vmem:[#allocation105_spill] sm:$0xff] %v3699_v28  ;;  %v1397_v4 = vmul.f32 0.01, %v1389_v60  ;;  %v1364_v20 = vmul.f32 %v4693_v29, %v1355_v44  ;;  %v4744_v60 = vld [vmem:[#allocation91_spill] sm:$0xff]  ;;  %v1358_v17 = vsub.f32 %v1342_v40, %v3513_v32  ;;  %v1357_v48 = vsub.f32 %v1341_v23, %v3378_v2 }
 0x132   :  { %v3705_v41 = vsel %vm625_vm0, %v4739_v42, %v751_v0  ;;  %v3711_v35 = vsel %vm642_vm1, %v4741_v62, %v768_v37  ;;  %v1373_v24 = vsub.f32 %v4744_v60, %v1365_v56  ;;  %vm472_vm3 = vcmp.ge.f32.partialorder %v3298_v1, 0.8  ;;  %v505_v0 = vld [vmem:[%s4230_s5 + $0x30] sm:$0xff]  ;;  %v4748_v40 = vld [vmem:[#allocation59_spill] sm:$0xff]  ;;  %s1490_s5 = sld [smem:[#allocation2 + $0x7]] }
 0x133   :  { %4740 = vst [vmem:[#allocation116_spill] sm:$0xff] %v3705_v41  ;;  %4742 = vst [vmem:[#allocation119_spill] sm:$0xff] %v3711_v35  ;;  %v1402_v8 = vadd.f32 %v3569_v16, %v1394_v49  ;;  %v1405_v32 = vadd.f32 %v3494_v5, %v1397_v4  ;;  %v545_v44 = vsub.f32 %v3699_v28, %v3545_v22  ;;  %v753_v60 = vrot.slane %v4735_v15, 7  ;;  %v4780_v28 = vld [vmem:[#allocation42_spill] sm:$0xff]  ;;  %v3947_v35 = vld [vmem:[#allocation7 + $0x20] sm:$0xff] }
 0x134   :  { %v3738_v56 = vmul.f32 %v3443_v46, %v521_v11  ;;  %v3741_v2 = vmul.f32 %v3477_v31, %v521_v11  ;;  %v1253_v39 = vadd.f32 %v3375_v57, %v3453_v50  ;;  %v1254_v23 = vadd.f32 %v3464_v3, %v3515_v14  ;;  %747 = vrot.lane.b32.xlu1 %v3528_v38, %s1771_s3  ;;  %v4749_v11 = vld [vmem:[#allocation54_spill] sm:$0xff]  ;;  %vm497_vm5 = vmor %vm472_vm3, %vm489_vm14  ;;  %v4786_v41 = vld [vmem:[#allocation31_spill] sm:$0xff] }
 0x135   :  { %v3749_v16 = vmul.f32 %v3443_v46, %v3564_v26  ;;  %v514_v5 = vmul.f32 %v3353_v55, %v505_v0  ;;  %745 = vrot.lane.b32.xlu0 %v4748_v40, %s1771_s3  ;;  %v1372_v49 = vsub.f32 %v4749_v11, %v1364_v20  ;;  %v1367_v4 = vmul.f32 %v4693_v29, %v1358_v17  ;;  %s1489_s3 = sld [smem:[#allocation2 + $0x6]] }
 0x136   :  { %4747 = vst [vmem:[#allocation126_spill] sm:$0xff] %v3741_v2  ;;  %v523_v57 = vsel %vm3729_vm4, 0.0, %v515_v12  ;;  %v1410_v55 = vmax.f32 %v1402_v8, 0.0  ;;  %v1383_v50 = vmul.f32 %v4710_v63, %v1373_v24  ;;  %v1366_v3 = vmul.f32 %v4693_v29, %v1357_v48 }
 0x137   :  { %v1413_v14 = vmax.f32 %v1405_v32, 0.0  ;;  %v1388_v42 = vadd.f32 %v1380_v47, %v545_v44  ;;  %v548_v20 = vsub.f32 %v3741_v2, %v3738_v56  ;;  %v754_v6 = vrot.slane %v4743_v21, 7  ;;  %v4779_v2 = vld [vmem:[#allocation45_spill] sm:$0xff] }
 0x138   :  { %v1418_v62 = vmin.f32 %v1410_v55, 1.0  ;;  %v522_v27 = vsel %vm497_vm5, 0.0, %v514_v5  ;;  %v3772_v17 = vmul.f32 %v3443_v46, %v523_v57  ;;  %v1375_v37 = vsub.f32 %v1254_v23, %v1367_v4 }
 0x139   :  { %v1421_v12 = vmin.f32 %v1413_v14, 1.0  ;;  %v1396_v0 = vmul.f32 0.01, %v1388_v42  ;;  %v3776_v29 = vsel %vm625_vm0, %v753_v60, %v754_v6  ;;  %v770_v47 = vrot.slane %v4743_v21, 1 }
 0x13a   :  { %4750 = vst [vmem:[#allocation111_spill] sm:$0xff] %v3772_v17  ;;  %1426 = vst [vmem:[#allocation13] sm:$0xff] %v1418_v62  ;;  %v771_v24 = vrot.slane %v4748_v40, 1  ;;  %v1382_v48 = vmul.f32 %v4710_v63, %v1372_v49  ;;  %v1374_v8 = vsub.f32 %v1253_v39, %v1366_v3  ;;  %v1391_v44 = vadd.f32 %v1383_v50, %v548_v20 }
 0x13b   :  { %4751 = vst [vmem:[#allocation120_spill] sm:$0xff] %v3776_v29  ;;  %1429 = vst [vmem:[#allocation13 + $0x18] sm:$0xff] %v1421_v12  ;;  %v1404_v32 = vadd.f32 %v3432_v51, %v1396_v0  ;;  %v3788_v23 = vmul.f32 %v3477_v31, %v3564_v26  ;;  %v3794_v11 = vsel %vm625_vm0, %v752_v54, %v753_v60  ;;  %v755_v54 = vrot.slane %v4748_v40, 7  ;;  %v3952_v29 = vld [vmem:[#allocation7 + $0x18] sm:$0xff] }
 0x13c   :  { %v3784_v5 = vsel %vm642_vm1, %v770_v47, %v771_v24  ;;  %4754 = vst [vmem:[#allocation23_spill] sm:$0xff] %v3794_v11  ;;  %v3800_v51 = vsel %vm642_vm1, %v769_v10, %v770_v47  ;;  %v3803_v39 = vmul.f32 %v3443_v46, %v522_v27  ;;  %v1399_v4 = vmul.f32 0.01, %v1391_v44  ;;  %v4784_v11 = vld [vmem:[#allocation61_spill] sm:$0xff] }
 0x13d   :  { %4752 = vst [vmem:[#allocation94_spill] sm:$0xff] %v3784_v5  ;;  %4753 = vst [vmem:[#allocation29_spill] sm:$0xff] %v3788_v23  ;;  %v1412_v49 = vmax.f32 %v1404_v32, 0.0  ;;  %v1385_v26 = vmul.f32 %v4710_v63, %v1375_v37  ;;  %v547_v55 = vsub.f32 %v3788_v23, %v3749_v16  ;;  %v3809_v50 = vmul.f32 %v3477_v31, %v523_v57 }
 0x13e   :  { %4755 = vst [vmem:[#allocation77_spill] sm:$0xff] %v3800_v51  ;;  %v1384_v3 = vmul.f32 %v4710_v63, %v1374_v8  ;;  %v1407_v10 = vadd.f32 %v3264_v52, %v1399_v4  ;;  %v772_v46 = vrot.slane %v3528_v38, 1  ;;  %v4757_v20 = vrot.slane %v3528_v38, 7  ;;  %v3920_v51 = vld [vmem:[#allocation6 + $0x28] sm:$0xff] }
 0x13f   :  { %4756 = vst [vmem:[#allocation80_spill] sm:$0xff] %v3809_v50  ;;  %v1420_v14 = vmin.f32 %v1412_v49, 1.0  ;;  %v1390_v42 = vadd.f32 %v1382_v48, %v547_v55  ;;  %v550_v62 = vsub.f32 %v3809_v50, %v3772_v17  ;;  %v3824_v57 = vmul.f32 %v3477_v31, %v522_v27  ;;  %4782 = vst [vmem:[#allocation115_spill] sm:$0xff] %v3920_v51  ;;  %v4799_v17 = vld [vmem:[#allocation92_spill] sm:$0xff] }
 0x140   :  { %v3821_v60 = vsel %vm625_vm0, %v755_v54, %v4757_v20  ;;  %v1415_v63 = vmax.f32 %v1407_v10, 0.0  ;;  %v4760_v12 = vrot.slane %v3088_v19, 1  ;;  %v3834_v0 = vsel %vm625_vm0, %v754_v6, %v755_v54 }
 0x141   :  { %4758 = vst [vmem:[#allocation124_spill] sm:$0xff] %v3821_v60  ;;  %4759 = vst [vmem:[#allocation127_spill] sm:$0xff] %v3824_v57  ;;  %v3838_v37 = vsel %vm642_vm1, %v771_v24, %v772_v46  ;;  %v1398_v47 = vmul.f32 0.01, %v1390_v42  ;;  %v1393_v48 = vadd.f32 %v1385_v26, %v550_v62  ;;  %v549_v31 = vsub.f32 %v3824_v57, %v3803_v39 }
 0x142   :  { %1428 = vst [vmem:[#allocation13 + $0x10] sm:$0xff] %v1420_v14  ;;  %v3830_v52 = vsel %vm642_vm1, %v772_v46, %v4760_v12  ;;  %4762 = vst [vmem:[#allocation122_spill] sm:$0xff] %v3834_v0  ;;  %v1423_v27 = vmin.f32 %v1415_v63, 1.0  ;;  %v432_v20 = vstv %s1490_s5  ;;  %v3909_v0 = vld [vmem:[#allocation6 + $0x18] sm:$0xff] }
 0x143   :  { %4761 = vst [vmem:[#allocation96_spill] sm:$0xff] %v3830_v52  ;;  %4763 = vst [vmem:[#allocation36_spill] sm:$0xff] %v3838_v37  ;;  %v1406_v8 = vadd.f32 %v3483_v61, %v1398_v47  ;;  %v1401_v32 = vmul.f32 0.01, %v1393_v48  ;;  %v1392_v44 = vadd.f32 %v1384_v3, %v549_v31  ;;  %v4770_v47 = vld [vmem:[#allocation56_spill] sm:$0xff] }
 0x144   :  { %1431 = vst [vmem:[#allocation13 + $0x28] sm:$0xff] %v1423_v27  ;;  %v435_v48 = vmul.f32 %v432_v20, %v4770_v47  ;;  %v4771_v31 = vld [vmem:[#allocation28_spill] sm:$0xff] }
 0x145   :  { %v1414_v49 = vmax.f32 %v1406_v8, 0.0  ;;  %v1409_v4 = vadd.f32 %v3319_v7, %v1401_v32  ;;  %v1400_v6 = vmul.f32 0.01, %v1392_v44  ;;  %v434_v27 = vmul.f32 %v432_v20, %v4771_v31  ;;  %v4772_v8 = vld [vmem:[#allocation70_spill] sm:$0xff]  ;;  %v4773_v44 = vld [vmem:[#allocation51_spill] sm:$0xff] }
 0x146   :  { %v437_v32 = vmul.f32 %v432_v20, %v4772_v8 }
 0x147   :  { %v1422_v55 = vmin.f32 %v1414_v49, 1.0  ;;  %v1417_v54 = vmax.f32 %v1409_v4, 0.0  ;;  %v1408_v34 = vadd.f32 %v3298_v1, %v1400_v6  ;;  %v436_v49 = vmul.f32 %v432_v20, %v4773_v44  ;;  %v4774_v4 = vld [vmem:[#allocation86_spill] sm:$0xff] }
 0x148   :  { %v439_v6 = vmul.f32 %v432_v20, %v4774_v4 }
 0x149   :  { %1430 = vst [vmem:[#allocation13 + $0x20] sm:$0xff] %v1422_v55  ;;  %v1425_v24 = vmin.f32 %v1417_v54, 1.0  ;;  %v1416_v26 = vmax.f32 %v1408_v34, 0.0  ;;  %v441_v55 = vstv %s1489_s3  ;;  %v4775_v54 = vld [vmem:[#allocation64_spill] sm:$0xff] }
 0x14a   :  { %v438_v34 = vmul.f32 %v432_v20, %v4775_v54  ;;  %v444_v47 = vadd.f32 %v441_v55, %v435_v48  ;;  %v443_v31 = vadd.f32 %v441_v55, %v434_v27  ;;  %v446_v50 = vadd.f32 %v441_v55, %v437_v32  ;;  %v3889_v48 = vld [vmem:[#allocation6 + $0x10] sm:$0xff]  ;;  %v3892_v32 = vld [vmem:[#allocation6 + $0x8] sm:$0xff] }
 0x14b   :  { %1433 = vst [vmem:[#allocation13 + $0x38] sm:$0xff] %v1425_v24  ;;  %v1424_v14 = vmin.f32 %v1416_v26, 1.0  ;;  %v4776_v24 = vld [vmem:[#allocation81_spill] sm:$0xff]  ;;  %v445_v8 = vadd.f32 %v441_v55, %v436_v49  ;;  %v448_v44 = vadd.f32 %v441_v55, %v439_v6  ;;  %4777 = vst [vmem:[#allocation98_spill] sm:$0xff] %v3892_v32  ;;  %v3898_v49 = vmul.f32 4.0, %v3137_v18 }
 0x14c   :  { %v440_v26 = vmul.f32 %v432_v20, %v4776_v24  ;;  %v447_v4 = vadd.f32 %v441_v55, %v438_v34  ;;  %v3885_v24 = vmul.f32 4.0, %v3060_v33  ;;  %v452_v27 = vmul.f32 %v3889_v48, %v444_v47  ;;  %v3903_v34 = vld [vmem:[#allocation6 + $0x20] sm:$0xff] }
 0x14d   :  { %1432 = vst [vmem:[#allocation13 + $0x30] sm:$0xff] %v1424_v14  ;;  %v451_v40 = vmul.f32 %v3892_v32, %v443_v31  ;;  %v3901_v6 = vmul.f32 4.0, %v3045_v30  ;;  %4778 = vst [vmem:[#allocation99_spill] sm:$0xff] %v3903_v34  ;;  %v454_v33 = vmul.f32 %v3903_v34, %v446_v50  ;;  %v453_v47 = vmul.f32 %v3909_v0, %v445_v8  ;;  %v4781_v30 = vld [vmem:[#allocation32_spill] sm:$0xff] }
 0x14e   :  { %v449_v23 = vadd.f32 %v441_v55, %v440_v26  ;;  %v3907_v26 = vmul.f32 4.0, %v3183_v9  ;;  %v3913_v31 = vmul.f32 4.0, %v3134_v45  ;;  %v456_v18 = vmul.f32 %v4779_v2, %v448_v44  ;;  %v4783_v9 = vld [vmem:[#allocation67_spill] sm:$0xff]  ;;  %v3929_v45 = vld [vmem:[#allocation7 + $0x10] sm:$0xff] }
 0x14f   :  { %v3918_v52 = vmul.f32 4.0, %v4781_v30  ;;  %v455_v50 = vmul.f32 %v3920_v51, %v447_v4  ;;  %v3924_v60 = vmul.f32 4.0, %v4783_v9  ;;  %v3932_v2 = vmul.f32 %v3929_v45, %v452_v27 }
 0x150   :  { %v3940_v44 = vmul.f32 4.0, %v3065_v59  ;;  %v3943_v4 = vmul.f32 4.0, %v3085_v53  ;;  %v3945_v30 = vstv %s99_s26  ;;  %v1038_v9 = vstv %s100_s27 }
 0x151   :  { %v3950_v27 = vmul.f32 %v3947_v35, %v454_v33  ;;  %v3958_v59 = vmul.f32 %v4786_v41, %v456_v18  ;;  %v3961_v53 = vmul.f32 4.0, %v3088_v19  ;;  %v4790_v33 = vld [vmem:[#allocation40_spill] sm:$0xff]  ;;  %v3982_v18 = vld [vmem:[#allocation6] sm:$0xff] }
 0x152   :  { %4785 = vst [vmem:[#allocation93_spill] sm:$0xff] %v3943_v4  ;;  %4794 = vst [vmem:[#allocation123_spill] sm:$0xff] %v3982_v18 }
 0x153   :  { %4787 = vst [vmem:[#allocation121_spill] sm:$0xff] %v3961_v53 }
 0x167   :  { %v3845_v10 = vpop.permute.xlu1 %719 }
 0x168   :  { %v3847_v61 = vpop.permute.xlu0 %717 }
 0x169   :  { %4764 = vst [vmem:[#allocation76_spill] sm:$0xff] %v3847_v61  ;;  %v4011_v61 = vmul.f32 %v4790_v33, %v1038_v9 }
 0x16b   :  { %v3849_v3 = vpop.permute.xlu1 %723 }
 0x16c   :  { %4765 = vst [vmem:[#allocation84_spill] sm:$0xff] %v3849_v3  ;;  %v3851_v46 = vpop.permute.xlu0 %721  ;;  %v3975_v3 = vld [vmem:[#allocation7] sm:$0xff] }
 0x16d   :  { %4766 = vst [vmem:[#allocation95_spill] sm:$0xff] %v3851_v46  ;;  %v1039_v41 = vmul.f32 %v3975_v3, %v1038_v9 }
 0x170   :  { %v3853_v7 = vpop.permute.xlu1 %727  ;;  %v3855_v42 = vpop.permute.xlu0 %725 }
 0x171   :  { %4767 = vst [vmem:[#allocation33_spill] sm:$0xff] %v3853_v7  ;;  %4768 = vst [vmem:[#allocation21_spill] sm:$0xff] %v3855_v42  ;;  %v457_v42 = vmul.f32 %v4784_v11, %v449_v23  ;;  %v3964_v7 = vld [vmem:[#allocation7 + $0x28] sm:$0xff] }
 0x172   :  { %4789 = vst [vmem:[#allocation87_spill] sm:$0xff] %v3964_v7  ;;  %v3967_v46 = vmul.f32 %v3964_v7, %v455_v50  ;;  %v3986_v50 = vmul.f32 %v3982_v18, %v3945_v30 }
 0x173   :  { %v3970_v58 = vmul.f32 %v4790_v33, %v457_v42  ;;  %v3989_v42 = vmul.f32 4.0, %v3121_v25  ;;  %v4798_v25 = vld [vmem:[#allocation46_spill] sm:$0xff]  ;;  %v4029_v33 = vmul.f32 %v3889_v48, %v3945_v30 }
 0x174   :  { %v1048_v1 = vpop.permute.xlu1 %1047  ;;  %v3857_v62 = vpop.permute.xlu0 %729  ;;  %4795 = vst [vmem:[#allocation85_spill] sm:$0xff] %v3986_v50 }
 0x175   :  { %4769 = vst [vmem:[#allocation65_spill] sm:$0xff] %v3857_v62  ;;  %v433_v62 = vmul.f32 %v432_v20, %v4780_v28  ;;  %v3934_v28 = vld [vmem:[#allocation7 + $0x8] sm:$0xff]  ;;  %4791 = vst [vmem:[#allocation43_spill] sm:$0xff] %v3970_v58  ;;  %v1042_v58 = vmul.f32 %v3952_v29, %v1038_v9 }
 0x176   :  { %v3937_v20 = vmul.f32 %v3934_v28, %v451_v40  ;;  %v3955_v40 = vmul.f32 %v3952_v29, %v453_v47  ;;  %v3973_v47 = vmul.f32 4.0, %v4733_v43  ;;  %4796 = vst [vmem:[#allocation52_spill] sm:$0xff] %v3989_v42  ;;  %v4797_v43 = vld [vmem:[#allocation39_spill] sm:$0xff] }
 0x177   :  { %v442_v13 = vadd.f32 %v441_v55, %v433_v62  ;;  %v3980_v55 = vmul.f32 %v3892_v32, %v3945_v30  ;;  %v1040_v32 = vmul.f32 %v3934_v28, %v1038_v9 }
 0x178   :  { %v3859_v63 = vpop.permute.xlu1 %1051  ;;  %4792 = vst [vmem:[#allocation57_spill] sm:$0xff] %v3973_v47 }
 0x179   :  { %v3861_v12 = vpop.permute.xlu0 %1049  ;;  %4793 = vst [vmem:[#allocation89_spill] sm:$0xff] %v3980_v55  ;;  %v1043_v55 = vmul.f32 %v3947_v35, %v1038_v9  ;;  %v450_v4 = vmul.f32 %v3982_v18, %v442_v13  ;;  %v4015_v13 = vmul.f32 %v3909_v0, %v3945_v30 }
 0x17c   :  { %v3874_v14 = vpop.permute.xlu1 %1055 }
 0x17d   :  { %v3876_v57 = vpop.permute.xlu0 %1053 }
 0x181   :  { %v3880_v37 = vpop.permute.xlu1 %1059  ;;  %v3882_v54 = vpop.permute.xlu0 %1057 }
 0x185   :  { %v1064_v8 = vpop.permute.xlu1 %1063  ;;  %v3927_v5 = vpop.permute.xlu0 %1061 }
 0x186   :  { %v1111_v23 = vadd.f32 %v1064_v8, %v1048_v1  ;;  %v4788_v1 = vld [vmem:[#allocation113_spill] sm:$0xff] }
 0x188   :  { %v1119_v8 = vadd.f32 %v1111_v23, %v4788_v1  ;;  %v1041_v1 = vmul.f32 %v3929_v45, %v1038_v9 }
 0x189   :  { %v1068_v62 = vpop.permute.xlu1 %1067  ;;  %v1066_v19 = vpop.permute.xlu0 %1065 }
 0x18a   :  { %v1127_v23 = vadd.f32 %v1119_v8, %v4797_v43  ;;  %v1113_v47 = vadd.f32 %v1068_v62, %v3859_v63  ;;  %v1112_v53 = vadd.f32 %v1066_v19, %v3861_v12  ;;  %v4002_v43 = vld [vmem:[#allocation7 + $0x30] sm:$0xff]  ;;  %v4008_v19 = vmul.f32 %v3964_v7, %v1038_v9 }
 0x18b   :  { %v4005_v63 = vmul.f32 %v4002_v43, %v1038_v9  ;;  %v4025_v7 = vmul.f32 %v3975_v3, %v450_v4 }
 0x18c   :  { %v1143_v50 = vsub.f32 %v1127_v23, %v3885_v24  ;;  %v1121_v42 = vadd.f32 %v1113_v47, %v4798_v25  ;;  %v1120_v8 = vadd.f32 %v1112_v53, %v4799_v17  ;;  %v4018_v24 = vmul.f32 4.0, %v4743_v21  ;;  %v4800_v17 = vld [vmem:[#allocation53_spill] sm:$0xff]  ;;  %v4801_v47 = vld [vmem:[#allocation118_spill] sm:$0xff] }
 0x18d   :  { %v1072_v12 = vpop.permute.xlu1 %1071  ;;  %v4033_v21 = vmul.f32 %v3920_v51, %v3945_v30  ;;  %v4048_v51 = vmul.f32 4.0, %v3528_v38  ;;  %v4806_v38 = vld [vmem:[#allocation103_spill] sm:$0xff] }
 0x18e   :  { %v1070_v62 = vpop.permute.xlu0 %1069  ;;  %v1129_v53 = vadd.f32 %v1121_v42, %v4800_v17  ;;  %v1128_v23 = vadd.f32 %v1120_v8, %v4801_v47  ;;  %v1115_v25 = vadd.f32 %v1072_v12, %v3874_v14  ;;  %v1151_v9 = vmul.f32 %v1143_v50, %v1039_v41  ;;  %v4802_v17 = vld [vmem:[#allocation49_spill] sm:$0xff]  ;;  %v4803_v12 = vld [vmem:[#allocation55_spill] sm:$0xff] }
 0x18f   :  { %v1114_v18 = vadd.f32 %v1070_v62, %v3876_v57  ;;  %v4042_v50 = vmul.f32 %v3903_v34, %v3945_v30  ;;  %v4045_v47 = vmul.f32 4.0, %v4735_v15 }
 0x190   :  { %v1145_v42 = vsub.f32 %v1129_v53, %v3898_v49  ;;  %v1144_v8 = vsub.f32 %v1128_v23, %v3901_v6  ;;  %v1123_v14 = vadd.f32 %v1115_v25, %v4802_v17  ;;  %v1159_v41 = vadd.f32 %v1151_v9, %v3646_v36  ;;  %v4804_v53 = vld [vmem:[#allocation68_spill] sm:$0xff]  ;;  %v4805_v25 = vld [vmem:[#allocation62_spill] sm:$0xff] }
 0x191   :  { %v1122_v57 = vadd.f32 %v1114_v18, %v4803_v12  ;;  %v1076_v62 = vpop.permute.xlu1 %1075  ;;  %v4057_v12 = vmul.f32 %v4784_v11, %v3945_v30 }
 0x192   :  { %v1074_v4 = vpop.permute.xlu0 %1073  ;;  %v1153_v49 = vmul.f32 %v1145_v42, %v1041_v1  ;;  %v1152_v6 = vmul.f32 %v1144_v8, %v1040_v32  ;;  %v1131_v23 = vadd.f32 %v1123_v14, %v4804_v53  ;;  %v1117_v17 = vadd.f32 %v1076_v62, %v3880_v37  ;;  %v4807_v42 = vld [vmem:[#allocation102_spill] sm:$0xff]  ;;  %v4808_v14 = vld [vmem:[#allocation73_spill] sm:$0xff]  ;;  %v4810_v53 = vld [vmem:[#allocation71_spill] sm:$0xff] }
 0x193   :  { %v1130_v18 = vadd.f32 %v1122_v57, %v4805_v25  ;;  %v1116_v36 = vadd.f32 %v1074_v4, %v3882_v54  ;;  %v1167_v9 = vsub.f32 %v1159_v41, %v4025_v7  ;;  %v4067_v4 = vld [vmem:[#allocation6 + $0x30] sm:$0xff] }
 0x194   :  { %v1161_v15 = vadd.f32 %v1153_v49, %v3545_v22  ;;  %v1160_v34 = vadd.f32 %v1152_v6, %v4806_v38  ;;  %v1147_v32 = vsub.f32 %v1131_v23, %v3907_v26  ;;  %v1125_v8 = vadd.f32 %v1117_v17, %v4807_v42  ;;  %v4809_v49 = vld [vmem:[#allocation106_spill] sm:$0xff] }
 0x195   :  { %v1146_v1 = vsub.f32 %v1130_v18, %v3913_v31  ;;  %v1124_v37 = vadd.f32 %v1116_v36, %v4808_v14  ;;  %v4065_v57 = vpop.permute.xlu1 %731  ;;  %v1175_v62 = vmul.f32 0.01, %v1167_v9  ;;  %v4071_v11 = vmul.f32 %v4067_v4, %v3945_v30  ;;  %v4811_v30 = vld [vmem:[#allocation22_spill] sm:$0xff] }
 0x196   :  { %v1078_v54 = vpop.permute.xlu0 %1077  ;;  %v1169_v22 = vsub.f32 %v1161_v15, %v3932_v2  ;;  %v1168_v26 = vsub.f32 %v1160_v34, %v3937_v20  ;;  %v1155_v41 = vmul.f32 %v1147_v32, %v1043_v55  ;;  %v1133_v6 = vadd.f32 %v1125_v8, %v4809_v49  ;;  %v4812_v55 = vld [vmem:[#allocation78_spill] sm:$0xff]  ;;  %v4814_v49 = vld [vmem:[#allocation24_spill] sm:$0xff] }
 0x197   :  { %v1154_v31 = vmul.f32 %v1146_v1, %v1042_v58  ;;  %v1132_v23 = vadd.f32 %v1124_v37, %v4810_v53  ;;  %v1118_v25 = vadd.f32 %v1078_v54, %v3927_v5  ;;  %v1183_v18 = vadd.f32 %v3975_v3, %v1175_v62 }
 0x198   :  { %v1177_v17 = vmul.f32 0.01, %v1169_v22  ;;  %v1176_v36 = vmul.f32 0.01, %v1168_v26  ;;  %v1163_v9 = vadd.f32 %v1155_v41, %v3749_v16  ;;  %v1149_v15 = vsub.f32 %v1133_v6, %v3918_v52  ;;  %v4813_v52 = vld [vmem:[#allocation97_spill] sm:$0xff] }
 0x199   :  { %v1162_v38 = vadd.f32 %v1154_v31, %v4811_v30  ;;  %v1148_v34 = vsub.f32 %v1132_v23, %v3924_v60  ;;  %v1126_v58 = vadd.f32 %v1118_v25, %v4812_v55  ;;  %v736_v32 = vpop.permute.xlu1 %735  ;;  %v1191_v1 = vmax.f32 %v1183_v18, 0.0  ;;  %v4817_v55 = vld [vmem:[#allocation111_spill] sm:$0xff] }
 0x19a   :  { %v734_v42 = vpop.permute.xlu0 %733  ;;  %v1185_v8 = vadd.f32 %v3929_v45, %v1177_v17  ;;  %v1184_v5 = vadd.f32 %v3934_v28, %v1176_v36  ;;  %v1171_v3 = vsub.f32 %v1163_v9, %v3950_v27  ;;  %v1157_v16 = vmul.f32 %v1149_v15, %v4005_v63  ;;  %v4815_v36 = vld [vmem:[#allocation74_spill] sm:$0xff] }
 0x19b   :  { %v1170_v14 = vsub.f32 %v1162_v38, %v3955_v40  ;;  %v1156_v37 = vmul.f32 %v1148_v34, %v4008_v19  ;;  %v1134_v54 = vadd.f32 %v1126_v58, %v4813_v52  ;;  %v782_v60 = vadd.f32 %v736_v32, %v3845_v10  ;;  %v4816_v38 = vld [vmem:[#allocation76_spill] sm:$0xff]  ;;  %v4818_v58 = vld [vmem:[#allocation93_spill] sm:$0xff] }
 0x19c   :  { %v1193_v62 = vmax.f32 %v1185_v8, 0.0  ;;  %v1192_v22 = vmax.f32 %v1184_v5, 0.0  ;;  %v1179_v26 = vmul.f32 0.01, %v1171_v3  ;;  %v1165_v45 = vadd.f32 %v1157_v16, %v3803_v39  ;;  %v4820_v16 = vld [vmem:[#allocation84_spill] sm:$0xff] }
 0x19d   :  { %v1178_v41 = vmul.f32 0.01, %v1170_v14  ;;  %v1164_v28 = vadd.f32 %v1156_v37, %v3738_v56  ;;  %v1150_v31 = vsub.f32 %v1134_v54, %v3940_v44  ;;  %v790_v6 = vadd.f32 %v782_v60, %v4814_v49  ;;  %v740_v53 = vpop.permute.xlu1 %739  ;;  %v4819_v14 = vld [vmem:[#allocation104_spill] sm:$0xff]  ;;  %v4821_v54 = vld [vmem:[#allocation87_spill] sm:$0xff] }
 0x19e   :  { %v1201_v63 = vmin.f32 %v1193_v62, 1.0  ;;  %v1200_v23 = vmin.f32 %v1192_v22, 1.0  ;;  %v1187_v19 = vadd.f32 %v3947_v35, %v1179_v26  ;;  %v738_v10 = vpop.permute.xlu0 %737  ;;  %v1173_v18 = vsub.f32 %v1165_v45, %v3958_v59  ;;  %v4822_v60 = vld [vmem:[#allocation43_spill] sm:$0xff]  ;;  %v4823_v62 = vld [vmem:[#allocation89_spill] sm:$0xff]  ;;  %v4824_v26 = vld [vmem:[#allocation112_spill] sm:$0xff] }
 0x19f   :  { %v1186_v25 = vadd.f32 %v3952_v29, %v1178_v41  ;;  %v1172_v17 = vsub.f32 %v1164_v28, %v3967_v46  ;;  %v1158_v39 = vmul.f32 %v1150_v31, %v4011_v61  ;;  %v798_v56 = vadd.f32 %v790_v6, %v4815_v36  ;;  %v4825_v45 = vld [vmem:[#allocation72_spill] sm:$0xff]  ;;  %v4826_v31 = vld [vmem:[#allocation95_spill] sm:$0xff]  ;;  %v4827_v6 = vld [vmem:[#allocation33_spill] sm:$0xff] }
 0x1a0   :  { %1209 = vst [vmem:[#allocation11 + $0x10] sm:$0xff] %v1201_v63  ;;  %1208 = vst [vmem:[#allocation11 + $0x8] sm:$0xff] %v1200_v23  ;;  %v1195_v44 = vmax.f32 %v1187_v19, 0.0  ;;  %v1199_v30 = vmin.f32 %v1191_v1, 1.0  ;;  %v781_v15 = vadd.f32 %v734_v42, %v4816_v38  ;;  %v1181_v34 = vmul.f32 0.01, %v1173_v18 }
 0x1a1   :  { %v1194_v9 = vmax.f32 %v1186_v25, 0.0  ;;  %v1180_v35 = vmul.f32 0.01, %v1172_v17  ;;  %v1166_v29 = vadd.f32 %v1158_v39, %v4817_v55  ;;  %v814_v32 = vsub.f32 %v798_v56, %v4818_v58  ;;  %v4828_v25 = vld [vmem:[#allocation109_spill] sm:$0xff]  ;;  %v4830_v36 = vld [vmem:[#allocation79_spill] sm:$0xff] }
 0x1a2   :  { %v744_v8 = vpop.permute.xlu1 %743  ;;  %v1203_v5 = vmin.f32 %v1195_v44, 1.0  ;;  %v789_v61 = vadd.f32 %v781_v15, %v4819_v14  ;;  %1207 = vst [vmem:[#allocation11] sm:$0xff] %v1199_v30  ;;  %v784_v37 = vadd.f32 %v740_v53, %v4820_v16  ;;  %v1189_v52 = vadd.f32 %v4002_v43, %v1181_v34  ;;  %v742_v23 = vpop.permute.xlu0 %741  ;;  %v4829_v17 = vld [vmem:[#allocation121_spill] sm:$0xff]  ;;  %v4831_v44 = vld [vmem:[#allocation116_spill] sm:$0xff] }
 0x1a3   :  { %v1202_v3 = vmin.f32 %v1194_v9, 1.0  ;;  %v1188_v1 = vadd.f32 %v4821_v54, %v1180_v35  ;;  %v1174_v42 = vsub.f32 %v1166_v29, %v4822_v60  ;;  %v822_v22 = vmul.f32 %v814_v32, %v4823_v62  ;;  %v4832_v30 = vld [vmem:[#allocation120_spill] sm:$0xff]  ;;  %v4833_v58 = vld [vmem:[#allocation85_spill] sm:$0xff] }
 0x1a4   :  { %1211 = vst [vmem:[#allocation11 + $0x20] sm:$0xff] %v1203_v5  ;;  %v797_v41 = vadd.f32 %v789_v61, %v4824_v26  ;;  %v792_v28 = vadd.f32 %v784_v37, %v4825_v45  ;;  %v783_v49 = vadd.f32 %v738_v10, %v4826_v31  ;;  %v786_v63 = vadd.f32 %v744_v8, %v4827_v6  ;;  %v1608_v10 = vld [vmem:[#allocation7 + $0x38] sm:$0xff]  ;;  %v4834_v8 = vld [vmem:[#allocation57_spill] sm:$0xff]  ;;  %v4839_v26 = vld [vmem:[#allocation52_spill] sm:$0xff] }
 0x1a5   :  { %1210 = vst [vmem:[#allocation11 + $0x18] sm:$0xff] %v1202_v3  ;;  %v1197_v53 = vmax.f32 %v1189_v52, 0.0  ;;  %v1196_v19 = vmax.f32 %v1188_v1, 0.0  ;;  %v1182_v43 = vmul.f32 0.01, %v1174_v42  ;;  %v830_v18 = vadd.f32 %v822_v22, %v4828_v25  ;;  %v4835_v3 = vld [vmem:[#allocation119_spill] sm:$0xff] }
 0x1a6   :  { %v813_v39 = vsub.f32 %v797_v41, %v4829_v17  ;;  %v800_v56 = vadd.f32 %v792_v28, %v4830_v36  ;;  %v791_v9 = vadd.f32 %v783_v49, %v4831_v44  ;;  %v794_v38 = vadd.f32 %v786_v63, %v4832_v30  ;;  %v748_v15 = vpop.permute.xlu1 %747  ;;  %v4836_v61 = vld [vmem:[#allocation94_spill] sm:$0xff]  ;;  %v4837_v54 = vld [vmem:[#allocation21_spill] sm:$0xff]  ;;  %v4841_v63 = vld [vmem:[#allocation23_spill] sm:$0xff] }
 0x1a7   :  { %v1205_v34 = vmin.f32 %v1197_v53, 1.0  ;;  %v1204_v35 = vmin.f32 %v1196_v19, 1.0  ;;  %v1190_v55 = vadd.f32 %v1608_v10, %v1182_v43  ;;  %v838_v29 = vsub.f32 %v830_v18, %v3937_v20  ;;  %v4838_v20 = vld [vmem:[#allocation107_spill] sm:$0xff]  ;;  %v746_v28 = vpop.permute.xlu0 %745  ;;  %v4840_v49 = vld [vmem:[#allocation98_spill] sm:$0xff]  ;;  %v4842_v19 = vld [vmem:[#allocation124_spill] sm:$0xff] }
 0x1a8   :  { %v821_v32 = vmul.f32 %v813_v39, %v4833_v58  ;;  %v816_v5 = vsub.f32 %v800_v56, %v4834_v8  ;;  %v799_v14 = vadd.f32 %v791_v9, %v4835_v3  ;;  %v802_v16 = vadd.f32 %v794_v38, %v4836_v61  ;;  %v4843_v43 = vld [vmem:[#allocation117_spill] sm:$0xff]  ;;  %v4845_v36 = vld [vmem:[#allocation96_spill] sm:$0xff] }
 0x1a9   :  { %1213 = vst [vmem:[#allocation11 + $0x30] sm:$0xff] %v1205_v34  ;;  %1212 = vst [vmem:[#allocation11 + $0x28] sm:$0xff] %v1204_v35  ;;  %v1198_v37 = vmax.f32 %v1190_v55, 0.0  ;;  %v846_v52 = vmul.f32 0.01, %v838_v29  ;;  %v785_v1 = vadd.f32 %v742_v23, %v4837_v54  ;;  %v788_v42 = vadd.f32 %v748_v15, %v4065_v57  ;;  %v4844_v17 = vld [vmem:[#allocation77_spill] sm:$0xff] }
 0x1aa   :  { %v829_v62 = vadd.f32 %v821_v32, %v4838_v20  ;;  %v824_v22 = vmul.f32 %v816_v5, %v4015_v13  ;;  %v815_v41 = vsub.f32 %v799_v14, %v4839_v26  ;;  %v818_v45 = vsub.f32 %v802_v16, %v4018_v24  ;;  %v4846_v44 = vld [vmem:[#allocation65_spill] sm:$0xff]  ;;  %v4848_v34 = vld [vmem:[#allocation126_spill] sm:$0xff] }
 0x1ab   :  { %v1206_v31 = vmin.f32 %v1198_v37, 1.0  ;;  %v854_v6 = vadd.f32 %v4840_v49, %v846_v52  ;;  %v793_v53 = vadd.f32 %v785_v1, %v4841_v63  ;;  %v796_v23 = vadd.f32 %v788_v42, %v4842_v19  ;;  %v4847_v38 = vld [vmem:[#allocation105_spill] sm:$0xff] }
 0x1ac   :  { %v837_v57 = vsub.f32 %v829_v62, %v4025_v7  ;;  %v832_v13 = vadd.f32 %v824_v22, %v4843_v43  ;;  %v823_v25 = vmul.f32 %v815_v41, %v4029_v33  ;;  %v826_v24 = vmul.f32 %v818_v45, %v4033_v21 }
 0x1ad   :  { %1214 = vst [vmem:[#allocation11 + $0x38] sm:$0xff] %v1206_v31  ;;  %v862_v18 = vmax.f32 %v854_v6, 0.0  ;;  %v801_v39 = vadd.f32 %v793_v53, %v4844_v17  ;;  %v804_v56 = vadd.f32 %v796_v23, %v4845_v36  ;;  %v787_v9 = vadd.f32 %v746_v28, %v4846_v44 }
 0x1ae   :  { %v845_v30 = vmul.f32 0.01, %v837_v57  ;;  %v840_v7 = vsub.f32 %v832_v13, %v3955_v40  ;;  %v831_v15 = vadd.f32 %v823_v25, %v4847_v38  ;;  %v834_v35 = vadd.f32 %v826_v24, %v4848_v34 }
 0x1af   :  { %1699 = shalt.err (!%p1696_p5)
}
 0x1b0   :  { %s1700_s12 = scalar_lea.hbm %s4232_s7, 1024 }
 0x1b1   :  { %p1701_p6 = scmp.ne.s32.totalorder %s4232_s7, %s1700_s12  ;;  %p1704_p7 = scmp.lt.u32.totalorder %s1700_s12, %s4232_s7 }
 0x1b3   :  { %p1706_p8 = pnand %p1704_p7, %p1701_p6 }
 0x1b5   :  { %1709 = shalt.err (!%p1706_p8)
}
 0x1b6   :  { %1457 = dma.vmem_to_hbm [thread:$0]  %s4134_s2, 1024, %s4232_s7, [#allocation12], %s1765_s0, %s1765_s0, %s1766_s18   ;;  %v870_v40 = vmin.f32 %v862_v18, 1.0  ;;  %v817_v33 = vsub.f32 %v801_v39, %v4045_v47  ;;  %v820_v21 = vsub.f32 %v804_v56, %v4048_v51  ;;  %v4849_v10 = vld [vmem:[#allocation122_spill] sm:$0xff] }
 0x1b7   :  { %v795_v55 = vadd.f32 %v787_v9, %v4849_v10  ;;  %s1710_s19 = scalar_lea.vmem %s4140_s9, 1024  ;;  %p1715_p10 = scmp.lt.s32.totalorder %s4140_s9, %s4140_s9 }
 0x1b8   :  { %p1711_p9 = scmp.ne.s32.totalorder %s4140_s9, %s1710_s19  ;;  %p1716_p11 = scmp.lt.s32.totalorder %s1710_s19, %s1710_s19 }
 0x1ba   :  { %p1717_p12 = por %p1716_p11, %p1715_p10 }
 0x1bc   :  { %p1718_p13 = pnand %p1717_p12, %p1711_p9 }
 0x1be   :  { %1721 = shalt.err (!%p1718_p13)
}
 0x1bf   :  { %s1722_s21 = scalar_lea.hbm %s4233_s8, 1024 }
 0x1c0   :  { %p1723_p0 = scmp.ne.s32.totalorder %s4233_s8, %s1722_s21  ;;  %p1726_p1 = scmp.lt.u32.totalorder %s1722_s21, %s4233_s8 }
 0x1c2   :  { %p1728_p2 = pnand %p1726_p1, %p1723_p0 }
 0x1c4   :  { %1731 = shalt.err (!%p1728_p2)
}
 0x1c5   :  { %1469 = dma.vmem_to_hbm [thread:$0]  %s4140_s9, 1024, %s4233_s8, [#allocation12], %s1765_s0, %s1765_s0, %s1766_s18   ;;  %v4850_v51 = vld [vmem:[#allocation123_spill] sm:$0xff]  ;;  %v848_v29 = vmul.f32 0.01, %v840_v7  ;;  %v839_v58 = vsub.f32 %v831_v15, %v3932_v2  ;;  %v842_v32 = vsub.f32 %v834_v35, %v3967_v46  ;;  %878 = vst [vmem:[#allocation10 + $0x8] sm:$0xff] %v870_v40  ;;  %v825_v8 = vmul.f32 %v817_v33, %v4042_v50 }
 0x1c6   :  { %v853_v47 = vadd.f32 %v4850_v51, %v845_v30  ;;  %v828_v5 = vmul.f32 %v820_v21, %v4057_v12  ;;  %v4851_v3 = vld [vmem:[#allocation59_spill] sm:$0xff]  ;;  %v4852_v61 = vld [vmem:[#allocation36_spill] sm:$0xff]  ;;  %v4853_v42 = vld [vmem:[#allocation29_spill] sm:$0xff]  ;;  %s1774_s8 = smov [#allocation10]  }
 0x1c7   :  { %v811_v14 = vmul.f32 4.0, %v4851_v3  ;;  %v803_v16 = vadd.f32 %v795_v55, %v4852_v61  ;;  %v856_v52 = vadd.f32 %v3909_v0, %v848_v29  ;;  %v847_v54 = vmul.f32 0.01, %v839_v58  ;;  %v4854_v62 = vld [vmem:[#allocation80_spill] sm:$0xff]  ;;  %v4855_v41 = vld [vmem:[#allocation115_spill] sm:$0xff]  ;;  %v1609_v25 = vld [vmem:[#allocation6 + $0x38] sm:$0xff] }
 0x1c8   :  { %v861_v37 = vmax.f32 %v853_v47, 0.0  ;;  %v850_v1 = vmul.f32 0.01, %v842_v32  ;;  %v833_v20 = vadd.f32 %v825_v8, %v4853_v42  ;;  %v836_v2 = vadd.f32 %v828_v5, %v4854_v62  ;;  %v4856_v19 = vld [vmem:[#allocation127_spill] sm:$0xff]  ;;  %s1439_s25 = sshll.u32 %s1774_s8, 4  ;;  %s1440_s25 = int_to_ptr.vmem [resolvable:$true] %s1439_s25 }
 0x1c9   :  { %v819_v22 = vsub.f32 %v803_v16, %v811_v14  ;;  %v864_v26 = vmax.f32 %v856_v52, 0.0  ;;  %v855_v50 = vadd.f32 %v3889_v48, %v847_v54  ;;  %v4857_v48 = vld [vmem:[#allocation99_spill] sm:$0xff]  ;;  %s1732_s26 = scalar_lea.vmem %s1440_s25, 1024  ;;  %p1737_p4 = scmp.lt.s32.totalorder %s1440_s25, %s1440_s25 }
 0x1ca   :  { %v869_v46 = vmin.f32 %v861_v37, 1.0  ;;  %v858_v12 = vadd.f32 %v4855_v41, %v850_v1  ;;  %v841_v45 = vsub.f32 %v833_v20, %v3950_v27  ;;  %v844_v28 = vsub.f32 %v836_v2, %v4822_v60  ;;  %p1733_p3 = scmp.ne.s32.totalorder %s1440_s25, %s1732_s26  ;;  %p1738_p5 = scmp.lt.s32.totalorder %s1732_s26, %s1732_s26 }
 0x1cb   :  { %v827_v31 = vmul.f32 %v819_v22, %v4071_v11  ;;  %v872_v0 = vmin.f32 %v864_v26, 1.0  ;;  %v863_v49 = vmax.f32 %v855_v50, 0.0 }
 0x1cc   :  { %877 = vst [vmem:[#allocation10] sm:$0xff] %v869_v46  ;;  %v866_v6 = vmax.f32 %v858_v12, 0.0  ;;  %v849_v63 = vmul.f32 0.01, %v841_v45  ;;  %v852_v53 = vmul.f32 0.01, %v844_v28  ;;  %p1739_p6 = por %p1738_p5, %p1737_p4 }
 0x1cd   :  { %v835_v23 = vadd.f32 %v827_v31, %v4856_v19  ;;  %880 = vst [vmem:[#allocation10 + $0x18] sm:$0xff] %v872_v0  ;;  %v871_v57 = vmin.f32 %v863_v49, 1.0 }
 0x1ce   :  { %v874_v43 = vmin.f32 %v866_v6, 1.0  ;;  %v857_v13 = vadd.f32 %v4857_v48, %v849_v63  ;;  %v860_v24 = vadd.f32 %v1609_v25, %v852_v53  ;;  %p1740_p7 = pnand %p1739_p6, %p1733_p3 }
 0x1cf   :  { %v843_v27 = vsub.f32 %v835_v23, %v3958_v59  ;;  %879 = vst [vmem:[#allocation10 + $0x10] sm:$0xff] %v871_v57 }
 0x1d0   :  { %882 = vst [vmem:[#allocation10 + $0x28] sm:$0xff] %v874_v43  ;;  %v865_v11 = vmax.f32 %v857_v13, 0.0  ;;  %v868_v60 = vmax.f32 %v860_v24, 0.0 }
 0x1d1   :  { %v851_v18 = vmul.f32 0.01, %v843_v27 }
 0x1d2   :  { %v873_v17 = vmin.f32 %v865_v11, 1.0  ;;  %v876_v39 = vmin.f32 %v868_v60, 1.0 }
 0x1d3   :  { %v859_v36 = vadd.f32 %v4067_v4, %v851_v18 }
 0x1d4   :  { %881 = vst [vmem:[#allocation10 + $0x20] sm:$0xff] %v873_v17  ;;  %884 = vst [vmem:[#allocation10 + $0x38] sm:$0xff] %v876_v39 }
 0x1d5   :  { %v867_v56 = vmax.f32 %v859_v36, 0.0 }
 0x1d7   :  { %v875_v44 = vmin.f32 %v867_v56, 1.0 }
 0x1d9   :  { %883 = vst [vmem:[#allocation10 + $0x30] sm:$0xff] %v875_v44 }
 0x1da   :  { %1743 = shalt.err (!%p1740_p7)
}
 0x1db   :  { %s1744_s2 = scalar_lea.hbm %s4231_s6, 1024 }
 0x1dc   :  { %p1745_p8 = scmp.ne.s32.totalorder %s4231_s6, %s1744_s2  ;;  %p1748_p9 = scmp.lt.u32.totalorder %s1744_s2, %s4231_s6 }
 0x1de   :  { %p1750_p10 = pnand %p1748_p9, %p1745_p8 }
 0x1e0   :  { %1753 = shalt.err (!%p1750_p10)
}
 0x1e1   :  { %1445 = dma.vmem_to_hbm [thread:$0]  %s1440_s25, 1024, %s4231_s6, [#allocation4], %s1765_s0, %s1765_s0, %s1766_s18  }
 0x1e2   :  { %1760 = dma.done.wait [#allocation4], 1024  }
 0x1e3   :  { %1761 = vsyncadd [#allocation4], 4294966272 }
 0x1e4   :  { %1762 = dma.done.wait [#allocation12], 2048  }
 0x1e5   :  { %1763 = vsyncadd [#allocation12], 4294965248 }
 0x1e6   :  { %1479 = vsyncpa [#allocation3], 1 }
 0x1e7   :  { %1480 = vsyncpa [#allocation8], 1 }
 0x1e8   :  { %1481 = vsyncpa [#allocation4], 1 }
 0x1e9   :  { %1482 = vsyncpa [#allocation12], 1 }
 0x1ea   :  { %1483 = vsyncpa [#allocation5], 1 }

</bundles_post_ra>
